<compile_context>
chip_gen: v7x
topology: tpu7x:2x2x1
jax: 0.10.0
libtpu: 0.0.40
codegen_flags: <defaults>
</compile_context>

<pallas_src>
import functools

import jax
import jax.numpy as jnp
from jax.experimental import pallas as pl
from jax.experimental.pallas import tpu as pltpu

# ---------------------------------------------------------------------------
# Model hyper-parameters (small, consistent with the PyTorch module defaults).
# ---------------------------------------------------------------------------
VOCAB = 50           # input_dim (embedding vocabulary)
HIDDEN = 32          # hidden_dim
NUM_LAYERS = 2       # num_layers
N_HEAD = 4           # n_head
OUT_DIM = 2          # output_dim
BI_DIR = True
NUM_DIR = 2 if BI_DIR else 1
EMB = HIDDEN * NUM_DIR   # 64 : embed_dim of attention / layernorm / fc input

BATCH = 2
SEQ = 8


# ---------------------------------------------------------------------------
# Single fused forward kernel (no grid, no scratch — everything in vregs).
# ---------------------------------------------------------------------------
def _fused_forward_kernel(
    # inputs
    x2l0_ref,
    wih0_ref, b0_ref, whh0_ref,
    wih1_ref, b1_ref, whh1_ref,
    qkvw_ref, qkvb_ref, ow_ref, ob_ref, lng_ref, lnb_ref, fcw_ref, fcb_ref,
    # outputs
    out_ref, wts_ref,
    *, batch, seq, hidden, n_head,
):
    b_, s_, h_ = batch, seq, hidden
    e_ = 2 * h_
    hd = e_ // n_head
    f32 = jnp.float32
    bf16 = jnp.bfloat16

    # ---------------- Bidirectional LSTM, both directions fused --------------
    # Fused gate column layout (each block h_ wide):
    #   [i_f, i_r, f_f, f_r, o_f, o_r, g_f, g_r]
    # so sigmoid covers [0:6H) and tanh covers [6H:8H), and i/f/o/g come out as
    # (B, 2H) tensors ordered [fwd | rev]; consequently c and h stay [fwd | rev].
    def bilstm(x2_flat_bf16, wih, b, whh):
        # x2_flat: (B*S, 2*Din) bf16, row b*S+t = [x(t) | x(S-1-t)]
        # wih: (2*Din, 8H) bf16 block-diag; b: (1, 8H) f32; whh: (2H, 8H) bf16.
        xg = (jnp.dot(x2_flat_bf16, wih, preferred_element_type=f32) + b
              ).reshape(b_, s_, 8 * h_)
        h = jnp.zeros((b_, 2 * h_), f32)
        c = jnp.zeros((b_, 2 * h_), f32)
        hs = []
        for t in range(s_):                           # static unroll over time
            gates = xg[:, t, :] + jnp.dot(h.astype(bf16), whh,
                                          preferred_element_type=f32)
            sg = jax.nn.sigmoid(gates[:, 0:6 * h_])
            g = jnp.tanh(gates[:, 6 * h_:8 * h_])
            i = sg[:, 0:2 * h_]
            f = sg[:, 2 * h_:4 * h_]
            o = sg[:, 4 * h_:6 * h_]
            c = f * c + i * g
            h = o * jnp.tanh(c)
            hs.append(h)                              # hs[t] = [h_f(t) | h_r(S-1-t)]
        # Per-timestep layer output rows: out[t] = [h_f(t) | h_r(t)].
        rows = [jnp.concatenate([hs[t][:, :h_], hs[s_ - 1 - t][:, h_:]], axis=-1)
                for t in range(s_)]
        return rows

    rows0 = bilstm(x2l0_ref[...], wih0_ref[...], b0_ref[...], whh0_ref[...])
    # TODO(synk): PyTorch applies inter-layer dropout in train mode; eval identity here.
    # Layer-1 input, pre-paired as [out0(t) | out0(S-1-t)] (pure list reorder).
    x2l1 = jnp.stack(
        [jnp.concatenate([rows0[t], rows0[s_ - 1 - t]], axis=-1)
         for t in range(s_)], axis=1).reshape(b_ * s_, 4 * h_)
    rows1 = bilstm(x2l1.astype(bf16), wih1_ref[...], b1_ref[...], whh1_ref[...])

    lstm_seq = jnp.stack(rows1, axis=1)               # (B, S, 2H)
    lstm_flat = lstm_seq.reshape(b_ * s_, e_)         # (B*S, E)

    # ---------------- Fused QKV projection (q/k/v linears ∘ attn in_proj) ----
    qkv = (jnp.dot(lstm_flat.astype(bf16), qkvw_ref[...],
                   preferred_element_type=f32) + qkvb_ref[...])   # (B*S, 3E)
    q = qkv[:, 0 * e_:1 * e_].reshape(b_, s_, e_)
    k = qkv[:, 1 * e_:2 * e_].reshape(b_, s_, e_)
    v = qkv[:, 2 * e_:3 * e_].reshape(b_, s_, e_)

    # ---------------- Multi-head attention: all heads in one batched dot -----
    def to_heads(x):                                  # (B,S,E) -> (n_head*B, S, hd)
        return jnp.concatenate(
            [x[:, :, hh * hd:(hh + 1) * hd] for hh in range(n_head)], axis=0)

    qh, kh, vh = to_heads(q), to_heads(k), to_heads(v)
    scale = 1.0 / (float(hd) ** 0.5)
    sc = jnp.einsum('bsd,btd->bst', qh, kh, preferred_element_type=f32) * scale
    sc = sc - jnp.max(sc, axis=-1, keepdims=True)
    p = jnp.exp(sc)
    p = p / jnp.sum(p, axis=-1, keepdims=True)        # exact softmax (weights output)
    ao = jnp.einsum('bst,btd->bsd', p, vh, preferred_element_type=f32)
    attn = jnp.concatenate(                           # (B, S, E), heads in order
        [ao[hh * b_:(hh + 1) * b_] for hh in range(n_head)], axis=-1)
    wts_ref[...] = sum(p[hh * b_:(hh + 1) * b_] for hh in range(n_head)) \
        * (1.0 / n_head)                              # average_attn_weights=True

    # ---------------- out_proj + residual + LayerNorm + mean-pool + FC -------
    proj = (jnp.dot(attn.reshape(b_ * s_, e_).astype(bf16), ow_ref[...],
                    preferred_element_type=f32) + ob_ref[...])    # (B*S, E)
    x = proj + lstm_flat                              # residual
    mean = jnp.mean(x, axis=-1, keepdims=True)
    xc = x - mean
    var = jnp.mean(xc * xc, axis=-1, keepdims=True)
    y = xc * jax.lax.rsqrt(var + 1e-5) * lng_ref[...] + lnb_ref[...]
    pooled = jnp.mean(y.reshape(b_, s_, e_), axis=1)                # (B, E)
    out_ref[...] = (jnp.dot(pooled.astype(bf16), fcw_ref[...],
                            preferred_element_type=f32) + fcb_ref[...])


# ---------------------------------------------------------------------------
# Trace-time weight fusion helpers.
# ---------------------------------------------------------------------------
def _fuse_dir_blockdiag(w_f, w_r, hidden):
    """w_f, w_r: (Din, 4H), columns in PyTorch gate order (i, f, g, o).
    Returns (2*Din, 8H) block-diagonal weight with column order
    (i_f, i_r, f_f, f_r, o_f, o_r, g_f, g_r); rows 0:Din -> forward input,
    rows Din:2Din -> reverse input."""
    din = w_f.shape[0]
    h = hidden
    zeros = jnp.zeros((din, h), w_f.dtype)
    gate_idx = {'i': 0, 'f': 1, 'o': 3, 'g': 2}
    cols = []
    for gate in ('i', 'f', 'o', 'g'):
        gi = gate_idx[gate]
        cf = w_f[:, gi * h:(gi + 1) * h]
        cr = w_r[:, gi * h:(gi + 1) * h]
        cols.append(jnp.concatenate([cf, zeros], axis=0))   # forward block
        cols.append(jnp.concatenate([zeros, cr], axis=0))   # reverse block
    return jnp.concatenate(cols, axis=1)                    # (2*Din, 8H)


def _fuse_bias(b_f, b_r, hidden):
    """b_f, b_r: (4H,) folded (b_ih + b_hh) biases in (i, f, g, o) order.
    Returns (8H,) bias in fused column order."""
    h = hidden
    gate_idx = {'i': 0, 'f': 1, 'o': 3, 'g': 2}
    parts = []
    for gate in ('i', 'f', 'o', 'g'):
        gi = gate_idx[gate]
        parts.append(b_f[gi * h:(gi + 1) * h])
        parts.append(b_r[gi * h:(gi + 1) * h])
    return jnp.concatenate(parts)


# ---------------------------------------------------------------------------
# Wrapper: embedding gather, weight fusion, QKV composition, one pallas_call.
# ---------------------------------------------------------------------------
def lstm_attention_forward(params, tokens):
    bsz, s = tokens.shape
    h = HIDDEN
    bf16 = jnp.bfloat16

    # Embedding lookup in the wrapper; build [x(t) | x(S-1-t)] for layer 0.
    emb = jnp.take(params["embedding"], tokens.astype(jnp.int32), axis=0)  # (B,S,H)
    x2l0 = jnp.concatenate([emb, emb[:, ::-1, :]], axis=-1).reshape(bsz * s, 2 * h)

    (l0f, l0r), (l1f, l1r) = params["lstm"]
    wih0 = _fuse_dir_blockdiag(l0f["w_ih"], l0r["w_ih"], h)   # (2H, 8H)
    whh0 = _fuse_dir_blockdiag(l0f["w_hh"], l0r["w_hh"], h)   # (2H, 8H)
    b0 = _fuse_bias(l0f["b"], l0r["b"], h).reshape(1, 8 * h)
    wih1 = _fuse_dir_blockdiag(l1f["w_ih"], l1r["w_ih"], h)   # (4H, 8H)
    whh1 = _fuse_dir_blockdiag(l1f["w_hh"], l1r["w_hh"], h)   # (2H, 8H)
    b1 = _fuse_bias(l1f["b"], l1r["b"], h).reshape(1, 8 * h)

    # Compose q/k/v Linear layers with the MHA in_proj at trace time
    # (x @ Wq @ Win + (bq @ Win + bin)); tiny f32 rounding delta vs two-step.
    def compose(w, b, in_w, in_b):
        return w @ in_w, b @ in_w + in_b

    qw, qb = compose(params["q_w"], params["q_b"], params["in_q_w"], params["in_q_b"])
    kw, kb = compose(params["k_w"], params["k_b"], params["in_k_w"], params["in_k_b"])
    vw, vb = compose(params["v_w"], params["v_b"], params["in_v_w"], params["in_v_b"])
    qkv_w = jnp.concatenate([qw, kw, vw], axis=1)             # (E, 3E)
    qkv_b = jnp.concatenate([qb, kb, vb]).reshape(1, 3 * EMB)

    kernel = functools.partial(
        _fused_forward_kernel, batch=bsz, seq=s, hidden=h, n_head=N_HEAD)

    vmem_spec = pl.BlockSpec(memory_space=pltpu.MemorySpace.VMEM)
    out, weights = pl.pallas_call(
        kernel,
        out_shape=(
            jax.ShapeDtypeStruct((bsz, OUT_DIM), jnp.float32),
            jax.ShapeDtypeStruct((bsz, s, s), jnp.float32),
        ),
        in_specs=[vmem_spec] * 15,
        out_specs=(vmem_spec, vmem_spec),
    )(
        x2l0.astype(bf16),
        wih0.astype(bf16), b0, whh0.astype(bf16),
        wih1.astype(bf16), b1, whh1.astype(bf16),
        qkv_w.astype(bf16), qkv_b,
        params["out_w"].astype(bf16), params["out_b"].reshape(1, -1),
        params["ln_g"].reshape(1, -1), params["ln_b"].reshape(1, -1),
        params["fc_w"].astype(bf16), params["fc_b"].reshape(1, -1),
    )
    return out, weights


# ---------------------------------------------------------------------------
# Parameter construction (deterministic, synthetic).
# ---------------------------------------------------------------------------
def make_params(key):
    def nxt():
        nonlocal key
        key, sub = jax.random.split(key)
        return sub

    def dense(din, dout, scale=0.1):
        return (scale * jax.random.normal(nxt(), (din, dout), jnp.float32),
                scale * jax.random.normal(nxt(), (dout,), jnp.float32))

    params = {}
    params["embedding"] = jax.random.normal(nxt(), (VOCAB, HIDDEN), jnp.float32)

    # Bidirectional multi-layer LSTM weights (stored (in, out), gate cols i,f,g,o).
    lstm = []
    for layer in range(NUM_LAYERS):
        din = HIDDEN if layer == 0 else HIDDEN * NUM_DIR
        dirs = []
        for _ in range(NUM_DIR):
            w_ih = 0.1 * jax.random.normal(nxt(), (din, 4 * HIDDEN), jnp.float32)
            w_hh = 0.1 * jax.random.normal(nxt(), (HIDDEN, 4 * HIDDEN), jnp.float32)
            b = 0.1 * jax.random.normal(nxt(), (4 * HIDDEN,), jnp.float32)  # b_ih+b_hh
            dirs.append({"w_ih": w_ih, "w_hh": w_hh, "b": b})
        lstm.append(dirs)
    params["lstm"] = lstm

    # q / k / v linear layers.
    params["q_w"], params["q_b"] = dense(EMB, EMB)
    params["k_w"], params["k_b"] = dense(EMB, EMB)
    params["v_w"], params["v_b"] = dense(EMB, EMB)

    # MultiheadAttention in_proj (split into q/k/v pieces) and out_proj.
    params["in_q_w"], params["in_q_b"] = dense(EMB, EMB)
    params["in_k_w"], params["in_k_b"] = dense(EMB, EMB)
    params["in_v_w"], params["in_v_b"] = dense(EMB, EMB)
    params["out_w"], params["out_b"] = dense(EMB, EMB)

    # LayerNorm affine.
    params["ln_g"] = jnp.ones((EMB,), jnp.float32)
    params["ln_b"] = jnp.zeros((EMB,), jnp.float32)

    # Final FC.
    params["fc_w"], params["fc_b"] = dense(EMB, OUT_DIM)
    return params


# ---------------------------------------------------------------------------
if __name__ == "__main__":
    key = jax.random.PRNGKey(0)
    key_in, key_par = jax.random.split(key)

    tokens = jax.random.randint(key_in, (BATCH, SEQ), 0, VOCAB, dtype=jnp.int32)
    params = make_params(key_par)

    fwd = jax.jit(lstm_attention_forward)
    out, weights = fwd(params, tokens)
    jax.block_until_ready(out)
    jax.block_until_ready(weights)

    assert out.shape == (BATCH, OUT_DIM)
    assert weights.shape == (BATCH, SEQ, SEQ)
    print("KERNEL_OK")
</pallas_src>

<mosaic_0001>
module attributes {stable_mosaic.version = 11 : i64} {
  func.func @_fused_forward_kernel(%arg0: memref<16x64xbf16, #tpu.memory_space<vmem>>, %arg1: memref<64x256xbf16, #tpu.memory_space<vmem>>, %arg2: memref<1x256xf32, #tpu.memory_space<vmem>>, %arg3: memref<64x256xbf16, #tpu.memory_space<vmem>>, %arg4: memref<128x256xbf16, #tpu.memory_space<vmem>>, %arg5: memref<1x256xf32, #tpu.memory_space<vmem>>, %arg6: memref<64x256xbf16, #tpu.memory_space<vmem>>, %arg7: memref<64x192xbf16, #tpu.memory_space<vmem>>, %arg8: memref<1x192xf32, #tpu.memory_space<vmem>>, %arg9: memref<64x64xbf16, #tpu.memory_space<vmem>>, %arg10: memref<1x64xf32, #tpu.memory_space<vmem>>, %arg11: memref<1x64xf32, #tpu.memory_space<vmem>>, %arg12: memref<1x64xf32, #tpu.memory_space<vmem>>, %arg13: memref<64x2xbf16, #tpu.memory_space<vmem>>, %arg14: memref<1x2xf32, #tpu.memory_space<vmem>>, %arg15: memref<2x2xf32, #tpu.memory_space<vmem>>, %arg16: memref<2x8x8xf32, #tpu.memory_space<vmem>>) attributes {dimension_semantics = [], scalar_prefetch = 0 : i64, scratch_operands = 0 : i64, tpu.core_type = #tpu.core_type<tc>} {
    %c0 = arith.constant 0 : index
    %c0_0 = arith.constant 0 : index
    %0 = vector.load %arg0[%c0, %c0_0] : memref<16x64xbf16, #tpu.memory_space<vmem>>, vector<16x64xbf16>
    %c0_1 = arith.constant 0 : index
    %c0_2 = arith.constant 0 : index
    %1 = vector.load %arg1[%c0_1, %c0_2] : memref<64x256xbf16, #tpu.memory_space<vmem>>, vector<64x256xbf16>
    %c0_3 = arith.constant 0 : index
    %c0_4 = arith.constant 0 : index
    %2 = vector.load %arg2[%c0_3, %c0_4] : memref<1x256xf32, #tpu.memory_space<vmem>>, vector<1x256xf32>
    %c0_5 = arith.constant 0 : index
    %c0_6 = arith.constant 0 : index
    %3 = vector.load %arg3[%c0_5, %c0_6] : memref<64x256xbf16, #tpu.memory_space<vmem>>, vector<64x256xbf16>
    %cst = arith.constant dense<0.000000e+00> : vector<16x256xf32>
    %4 = tpu.matmul %0, %1, %cst {dimension_numbers = #tpu.dot_dimension_numbers<[1], [0], [0], [1], [0, 0, 1, 1], [], []>} : vector<16x64xbf16>, vector<64x256xbf16>, vector<16x256xf32> -> vector<16x256xf32>
    %5 = vector.broadcast %2 : vector<1x256xf32> to vector<16x256xf32>
    %6 = arith.addf %4, %5 : vector<16x256xf32>
    %7 = vector.shape_cast %6 : vector<16x256xf32> to vector<2x8x256xf32>
    %cst_7 = arith.constant 0.000000e+00 : f32
    %8 = vector.broadcast %cst_7 : f32 to vector<2x64xf32>
    %cst_8 = arith.constant 0.000000e+00 : f32
    %9 = vector.broadcast %cst_8 : f32 to vector<2x64xf32>
    %10 = vector.extract_strided_slice %7 {offsets = [0, 0, 0], sizes = [2, 1, 256], strides = [1, 1, 1]} : vector<2x8x256xf32> to vector<2x1x256xf32>
    %11 = vector.shape_cast %10 : vector<2x1x256xf32> to vector<2x256xf32>
    %12 = arith.truncf %8 : vector<2x64xf32> to vector<2x64xbf16>
    %cst_9 = arith.constant dense<0.000000e+00> : vector<2x256xf32>
    %13 = tpu.matmul %12, %3, %cst_9 {dimension_numbers = #tpu.dot_dimension_numbers<[1], [0], [0], [1], [0, 0, 1, 1], [], []>} : vector<2x64xbf16>, vector<64x256xbf16>, vector<2x256xf32> -> vector<2x256xf32>
    %14 = arith.addf %11, %13 : vector<2x256xf32>
    %15 = vector.extract_strided_slice %14 {offsets = [0, 0], sizes = [2, 192], strides = [1, 1]} : vector<2x256xf32> to vector<2x192xf32>
    %16 = arith.negf %15 : vector<2x192xf32>
    %17 = math.exp %16 : vector<2x192xf32>
    %cst_10 = arith.constant 1.000000e+00 : f32
    %18 = vector.broadcast %cst_10 : f32 to vector<2x192xf32>
    %19 = arith.addf %18, %17 : vector<2x192xf32>
    %20 = arith.divf %18, %19 : vector<2x192xf32>
    %21 = vector.extract_strided_slice %14 {offsets = [0, 192], sizes = [2, 64], strides = [1, 1]} : vector<2x256xf32> to vector<2x64xf32>
    %22 = math.tanh %21 : vector<2x64xf32>
    %23 = vector.extract_strided_slice %20 {offsets = [0, 0], sizes = [2, 64], strides = [1, 1]} : vector<2x192xf32> to vector<2x64xf32>
    %24 = vector.extract_strided_slice %20 {offsets = [0, 64], sizes = [2, 64], strides = [1, 1]} : vector<2x192xf32> to vector<2x64xf32>
    %25 = vector.extract_strided_slice %20 {offsets = [0, 128], sizes = [2, 64], strides = [1, 1]} : vector<2x192xf32> to vector<2x64xf32>
    %26 = arith.mulf %24, %9 : vector<2x64xf32>
    %27 = arith.mulf %23, %22 : vector<2x64xf32>
    %28 = arith.addf %26, %27 : vector<2x64xf32>
    %29 = math.tanh %28 : vector<2x64xf32>
    %30 = arith.mulf %25, %29 : vector<2x64xf32>
    %31 = vector.extract_strided_slice %7 {offsets = [0, 1, 0], sizes = [2, 1, 256], strides = [1, 1, 1]} : vector<2x8x256xf32> to vector<2x1x256xf32>
    %32 = vector.shape_cast %31 : vector<2x1x256xf32> to vector<2x256xf32>
    %33 = arith.truncf %30 : vector<2x64xf32> to vector<2x64xbf16>
    %cst_11 = arith.constant dense<0.000000e+00> : vector<2x256xf32>
    %34 = tpu.matmul %33, %3, %cst_11 {dimension_numbers = #tpu.dot_dimension_numbers<[1], [0], [0], [1], [0, 0, 1, 1], [], []>} : vector<2x64xbf16>, vector<64x256xbf16>, vector<2x256xf32> -> vector<2x256xf32>
    %35 = arith.addf %32, %34 : vector<2x256xf32>
    %36 = vector.extract_strided_slice %35 {offsets = [0, 0], sizes = [2, 192], strides = [1, 1]} : vector<2x256xf32> to vector<2x192xf32>
    %37 = arith.negf %36 : vector<2x192xf32>
    %38 = math.exp %37 : vector<2x192xf32>
    %cst_12 = arith.constant 1.000000e+00 : f32
    %39 = vector.broadcast %cst_12 : f32 to vector<2x192xf32>
    %40 = arith.addf %39, %38 : vector<2x192xf32>
    %41 = arith.divf %39, %40 : vector<2x192xf32>
    %42 = vector.extract_strided_slice %35 {offsets = [0, 192], sizes = [2, 64], strides = [1, 1]} : vector<2x256xf32> to vector<2x64xf32>
    %43 = math.tanh %42 : vector<2x64xf32>
    %44 = vector.extract_strided_slice %41 {offsets = [0, 0], sizes = [2, 64], strides = [1, 1]} : vector<2x192xf32> to vector<2x64xf32>
    %45 = vector.extract_strided_slice %41 {offsets = [0, 64], sizes = [2, 64], strides = [1, 1]} : vector<2x192xf32> to vector<2x64xf32>
    %46 = vector.extract_strided_slice %41 {offsets = [0, 128], sizes = [2, 64], strides = [1, 1]} : vector<2x192xf32> to vector<2x64xf32>
    %47 = arith.mulf %45, %28 : vector<2x64xf32>
    %48 = arith.mulf %44, %43 : vector<2x64xf32>
    %49 = arith.addf %47, %48 : vector<2x64xf32>
    %50 = math.tanh %49 : vector<2x64xf32>
    %51 = arith.mulf %46, %50 : vector<2x64xf32>
    %52 = vector.extract_strided_slice %7 {offsets = [0, 2, 0], sizes = [2, 1, 256], strides = [1, 1, 1]} : vector<2x8x256xf32> to vector<2x1x256xf32>
    %53 = vector.shape_cast %52 : vector<2x1x256xf32> to vector<2x256xf32>
    %54 = arith.truncf %51 : vector<2x64xf32> to vector<2x64xbf16>
    %cst_13 = arith.constant dense<0.000000e+00> : vector<2x256xf32>
    %55 = tpu.matmul %54, %3, %cst_13 {dimension_numbers = #tpu.dot_dimension_numbers<[1], [0], [0], [1], [0, 0, 1, 1], [], []>} : vector<2x64xbf16>, vector<64x256xbf16>, vector<2x256xf32> -> vector<2x256xf32>
    %56 = arith.addf %53, %55 : vector<2x256xf32>
    %57 = vector.extract_strided_slice %56 {offsets = [0, 0], sizes = [2, 192], strides = [1, 1]} : vector<2x256xf32> to vector<2x192xf32>
    %58 = arith.negf %57 : vector<2x192xf32>
    %59 = math.exp %58 : vector<2x192xf32>
    %cst_14 = arith.constant 1.000000e+00 : f32
    %60 = vector.broadcast %cst_14 : f32 to vector<2x192xf32>
    %61 = arith.addf %60, %59 : vector<2x192xf32>
    %62 = arith.divf %60, %61 : vector<2x192xf32>
    %63 = vector.extract_strided_slice %56 {offsets = [0, 192], sizes = [2, 64], strides = [1, 1]} : vector<2x256xf32> to vector<2x64xf32>
    %64 = math.tanh %63 : vector<2x64xf32>
    %65 = vector.extract_strided_slice %62 {offsets = [0, 0], sizes = [2, 64], strides = [1, 1]} : vector<2x192xf32> to vector<2x64xf32>
    %66 = vector.extract_strided_slice %62 {offsets = [0, 64], sizes = [2, 64], strides = [1, 1]} : vector<2x192xf32> to vector<2x64xf32>
    %67 = vector.extract_strided_slice %62 {offsets = [0, 128], sizes = [2, 64], strides = [1, 1]} : vector<2x192xf32> to vector<2x64xf32>
    %68 = arith.mulf %66, %49 : vector<2x64xf32>
    %69 = arith.mulf %65, %64 : vector<2x64xf32>
    %70 = arith.addf %68, %69 : vector<2x64xf32>
    %71 = math.tanh %70 : vector<2x64xf32>
    %72 = arith.mulf %67, %71 : vector<2x64xf32>
    %73 = vector.extract_strided_slice %7 {offsets = [0, 3, 0], sizes = [2, 1, 256], strides = [1, 1, 1]} : vector<2x8x256xf32> to vector<2x1x256xf32>
    %74 = vector.shape_cast %73 : vector<2x1x256xf32> to vector<2x256xf32>
    %75 = arith.truncf %72 : vector<2x64xf32> to vector<2x64xbf16>
    %cst_15 = arith.constant dense<0.000000e+00> : vector<2x256xf32>
    %76 = tpu.matmul %75, %3, %cst_15 {dimension_numbers = #tpu.dot_dimension_numbers<[1], [0], [0], [1], [0, 0, 1, 1], [], []>} : vector<2x64xbf16>, vector<64x256xbf16>, vector<2x256xf32> -> vector<2x256xf32>
    %77 = arith.addf %74, %76 : vector<2x256xf32>
    %78 = vector.extract_strided_slice %77 {offsets = [0, 0], sizes = [2, 192], strides = [1, 1]} : vector<2x256xf32> to vector<2x192xf32>
    %79 = arith.negf %78 : vector<2x192xf32>
    %80 = math.exp %79 : vector<2x192xf32>
    %cst_16 = arith.constant 1.000000e+00 : f32
    %81 = vector.broadcast %cst_16 : f32 to vector<2x192xf32>
    %82 = arith.addf %81, %80 : vector<2x192xf32>
    %83 = arith.divf %81, %82 : vector<2x192xf32>
    %84 = vector.extract_strided_slice %77 {offsets = [0, 192], sizes = [2, 64], strides = [1, 1]} : vector<2x256xf32> to vector<2x64xf32>
    %85 = math.tanh %84 : vector<2x64xf32>
    %86 = vector.extract_strided_slice %83 {offsets = [0, 0], sizes = [2, 64], strides = [1, 1]} : vector<2x192xf32> to vector<2x64xf32>
    %87 = vector.extract_strided_slice %83 {offsets = [0, 64], sizes = [2, 64], strides = [1, 1]} : vector<2x192xf32> to vector<2x64xf32>
    %88 = vector.extract_strided_slice %83 {offsets = [0, 128], sizes = [2, 64], strides = [1, 1]} : vector<2x192xf32> to vector<2x64xf32>
    %89 = arith.mulf %87, %70 : vector<2x64xf32>
    %90 = arith.mulf %86, %85 : vector<2x64xf32>
    %91 = arith.addf %89, %90 : vector<2x64xf32>
    %92 = math.tanh %91 : vector<2x64xf32>
    %93 = arith.mulf %88, %92 : vector<2x64xf32>
    %94 = vector.extract_strided_slice %7 {offsets = [0, 4, 0], sizes = [2, 1, 256], strides = [1, 1, 1]} : vector<2x8x256xf32> to vector<2x1x256xf32>
    %95 = vector.shape_cast %94 : vector<2x1x256xf32> to vector<2x256xf32>
    %96 = arith.truncf %93 : vector<2x64xf32> to vector<2x64xbf16>
    %cst_17 = arith.constant dense<0.000000e+00> : vector<2x256xf32>
    %97 = tpu.matmul %96, %3, %cst_17 {dimension_numbers = #tpu.dot_dimension_numbers<[1], [0], [0], [1], [0, 0, 1, 1], [], []>} : vector<2x64xbf16>, vector<64x256xbf16>, vector<2x256xf32> -> vector<2x256xf32>
    %98 = arith.addf %95, %97 : vector<2x256xf32>
    %99 = vector.extract_strided_slice %98 {offsets = [0, 0], sizes = [2, 192], strides = [1, 1]} : vector<2x256xf32> to vector<2x192xf32>
    %100 = arith.negf %99 : vector<2x192xf32>
    %101 = math.exp %100 : vector<2x192xf32>
    %cst_18 = arith.constant 1.000000e+00 : f32
    %102 = vector.broadcast %cst_18 : f32 to vector<2x192xf32>
    %103 = arith.addf %102, %101 : vector<2x192xf32>
    %104 = arith.divf %102, %103 : vector<2x192xf32>
    %105 = vector.extract_strided_slice %98 {offsets = [0, 192], sizes = [2, 64], strides = [1, 1]} : vector<2x256xf32> to vector<2x64xf32>
    %106 = math.tanh %105 : vector<2x64xf32>
    %107 = vector.extract_strided_slice %104 {offsets = [0, 0], sizes = [2, 64], strides = [1, 1]} : vector<2x192xf32> to vector<2x64xf32>
    %108 = vector.extract_strided_slice %104 {offsets = [0, 64], sizes = [2, 64], strides = [1, 1]} : vector<2x192xf32> to vector<2x64xf32>
    %109 = vector.extract_strided_slice %104 {offsets = [0, 128], sizes = [2, 64], strides = [1, 1]} : vector<2x192xf32> to vector<2x64xf32>
    %110 = arith.mulf %108, %91 : vector<2x64xf32>
    %111 = arith.mulf %107, %106 : vector<2x64xf32>
    %112 = arith.addf %110, %111 : vector<2x64xf32>
    %113 = math.tanh %112 : vector<2x64xf32>
    %114 = arith.mulf %109, %113 : vector<2x64xf32>
    %115 = vector.extract_strided_slice %7 {offsets = [0, 5, 0], sizes = [2, 1, 256], strides = [1, 1, 1]} : vector<2x8x256xf32> to vector<2x1x256xf32>
    %116 = vector.shape_cast %115 : vector<2x1x256xf32> to vector<2x256xf32>
    %117 = arith.truncf %114 : vector<2x64xf32> to vector<2x64xbf16>
    %cst_19 = arith.constant dense<0.000000e+00> : vector<2x256xf32>
    %118 = tpu.matmul %117, %3, %cst_19 {dimension_numbers = #tpu.dot_dimension_numbers<[1], [0], [0], [1], [0, 0, 1, 1], [], []>} : vector<2x64xbf16>, vector<64x256xbf16>, vector<2x256xf32> -> vector<2x256xf32>
    %119 = arith.addf %116, %118 : vector<2x256xf32>
    %120 = vector.extract_strided_slice %119 {offsets = [0, 0], sizes = [2, 192], strides = [1, 1]} : vector<2x256xf32> to vector<2x192xf32>
    %121 = arith.negf %120 : vector<2x192xf32>
    %122 = math.exp %121 : vector<2x192xf32>
    %cst_20 = arith.constant 1.000000e+00 : f32
    %123 = vector.broadcast %cst_20 : f32 to vector<2x192xf32>
    %124 = arith.addf %123, %122 : vector<2x192xf32>
    %125 = arith.divf %123, %124 : vector<2x192xf32>
    %126 = vector.extract_strided_slice %119 {offsets = [0, 192], sizes = [2, 64], strides = [1, 1]} : vector<2x256xf32> to vector<2x64xf32>
    %127 = math.tanh %126 : vector<2x64xf32>
    %128 = vector.extract_strided_slice %125 {offsets = [0, 0], sizes = [2, 64], strides = [1, 1]} : vector<2x192xf32> to vector<2x64xf32>
    %129 = vector.extract_strided_slice %125 {offsets = [0, 64], sizes = [2, 64], strides = [1, 1]} : vector<2x192xf32> to vector<2x64xf32>
    %130 = vector.extract_strided_slice %125 {offsets = [0, 128], sizes = [2, 64], strides = [1, 1]} : vector<2x192xf32> to vector<2x64xf32>
    %131 = arith.mulf %129, %112 : vector<2x64xf32>
    %132 = arith.mulf %128, %127 : vector<2x64xf32>
    %133 = arith.addf %131, %132 : vector<2x64xf32>
    %134 = math.tanh %133 : vector<2x64xf32>
    %135 = arith.mulf %130, %134 : vector<2x64xf32>
    %136 = vector.extract_strided_slice %7 {offsets = [0, 6, 0], sizes = [2, 1, 256], strides = [1, 1, 1]} : vector<2x8x256xf32> to vector<2x1x256xf32>
    %137 = vector.shape_cast %136 : vector<2x1x256xf32> to vector<2x256xf32>
    %138 = arith.truncf %135 : vector<2x64xf32> to vector<2x64xbf16>
    %cst_21 = arith.constant dense<0.000000e+00> : vector<2x256xf32>
    %139 = tpu.matmul %138, %3, %cst_21 {dimension_numbers = #tpu.dot_dimension_numbers<[1], [0], [0], [1], [0, 0, 1, 1], [], []>} : vector<2x64xbf16>, vector<64x256xbf16>, vector<2x256xf32> -> vector<2x256xf32>
    %140 = arith.addf %137, %139 : vector<2x256xf32>
    %141 = vector.extract_strided_slice %140 {offsets = [0, 0], sizes = [2, 192], strides = [1, 1]} : vector<2x256xf32> to vector<2x192xf32>
    %142 = arith.negf %141 : vector<2x192xf32>
    %143 = math.exp %142 : vector<2x192xf32>
    %cst_22 = arith.constant 1.000000e+00 : f32
    %144 = vector.broadcast %cst_22 : f32 to vector<2x192xf32>
    %145 = arith.addf %144, %143 : vector<2x192xf32>
    %146 = arith.divf %144, %145 : vector<2x192xf32>
    %147 = vector.extract_strided_slice %140 {offsets = [0, 192], sizes = [2, 64], strides = [1, 1]} : vector<2x256xf32> to vector<2x64xf32>
    %148 = math.tanh %147 : vector<2x64xf32>
    %149 = vector.extract_strided_slice %146 {offsets = [0, 0], sizes = [2, 64], strides = [1, 1]} : vector<2x192xf32> to vector<2x64xf32>
    %150 = vector.extract_strided_slice %146 {offsets = [0, 64], sizes = [2, 64], strides = [1, 1]} : vector<2x192xf32> to vector<2x64xf32>
    %151 = vector.extract_strided_slice %146 {offsets = [0, 128], sizes = [2, 64], strides = [1, 1]} : vector<2x192xf32> to vector<2x64xf32>
    %152 = arith.mulf %150, %133 : vector<2x64xf32>
    %153 = arith.mulf %149, %148 : vector<2x64xf32>
    %154 = arith.addf %152, %153 : vector<2x64xf32>
    %155 = math.tanh %154 : vector<2x64xf32>
    %156 = arith.mulf %151, %155 : vector<2x64xf32>
    %157 = vector.extract_strided_slice %7 {offsets = [0, 7, 0], sizes = [2, 1, 256], strides = [1, 1, 1]} : vector<2x8x256xf32> to vector<2x1x256xf32>
    %158 = vector.shape_cast %157 : vector<2x1x256xf32> to vector<2x256xf32>
    %159 = arith.truncf %156 : vector<2x64xf32> to vector<2x64xbf16>
    %cst_23 = arith.constant dense<0.000000e+00> : vector<2x256xf32>
    %160 = tpu.matmul %159, %3, %cst_23 {dimension_numbers = #tpu.dot_dimension_numbers<[1], [0], [0], [1], [0, 0, 1, 1], [], []>} : vector<2x64xbf16>, vector<64x256xbf16>, vector<2x256xf32> -> vector<2x256xf32>
    %161 = arith.addf %158, %160 : vector<2x256xf32>
    %162 = vector.extract_strided_slice %161 {offsets = [0, 0], sizes = [2, 192], strides = [1, 1]} : vector<2x256xf32> to vector<2x192xf32>
    %163 = arith.negf %162 : vector<2x192xf32>
    %164 = math.exp %163 : vector<2x192xf32>
    %cst_24 = arith.constant 1.000000e+00 : f32
    %165 = vector.broadcast %cst_24 : f32 to vector<2x192xf32>
    %166 = arith.addf %165, %164 : vector<2x192xf32>
    %167 = arith.divf %165, %166 : vector<2x192xf32>
    %168 = vector.extract_strided_slice %161 {offsets = [0, 192], sizes = [2, 64], strides = [1, 1]} : vector<2x256xf32> to vector<2x64xf32>
    %169 = math.tanh %168 : vector<2x64xf32>
    %170 = vector.extract_strided_slice %167 {offsets = [0, 0], sizes = [2, 64], strides = [1, 1]} : vector<2x192xf32> to vector<2x64xf32>
    %171 = vector.extract_strided_slice %167 {offsets = [0, 64], sizes = [2, 64], strides = [1, 1]} : vector<2x192xf32> to vector<2x64xf32>
    %172 = vector.extract_strided_slice %167 {offsets = [0, 128], sizes = [2, 64], strides = [1, 1]} : vector<2x192xf32> to vector<2x64xf32>
    %173 = arith.mulf %171, %154 : vector<2x64xf32>
    %174 = arith.mulf %170, %169 : vector<2x64xf32>
    %175 = arith.addf %173, %174 : vector<2x64xf32>
    %176 = math.tanh %175 : vector<2x64xf32>
    %177 = arith.mulf %172, %176 : vector<2x64xf32>
    %178 = vector.extract_strided_slice %30 {offsets = [0, 0], sizes = [2, 32], strides = [1, 1]} : vector<2x64xf32> to vector<2x32xf32>
    %179 = vector.extract_strided_slice %177 {offsets = [0, 32], sizes = [2, 32], strides = [1, 1]} : vector<2x64xf32> to vector<2x32xf32>
    %180 = tpu.concatenate %178, %179 in 1 : vector<2x32xf32>, vector<2x32xf32> -> vector<2x64xf32>
    %181 = vector.extract_strided_slice %51 {offsets = [0, 0], sizes = [2, 32], strides = [1, 1]} : vector<2x64xf32> to vector<2x32xf32>
    %182 = vector.extract_strided_slice %156 {offsets = [0, 32], sizes = [2, 32], strides = [1, 1]} : vector<2x64xf32> to vector<2x32xf32>
    %183 = tpu.concatenate %181, %182 in 1 : vector<2x32xf32>, vector<2x32xf32> -> vector<2x64xf32>
    %184 = vector.extract_strided_slice %72 {offsets = [0, 0], sizes = [2, 32], strides = [1, 1]} : vector<2x64xf32> to vector<2x32xf32>
    %185 = vector.extract_strided_slice %135 {offsets = [0, 32], sizes = [2, 32], strides = [1, 1]} : vector<2x64xf32> to vector<2x32xf32>
    %186 = tpu.concatenate %184, %185 in 1 : vector<2x32xf32>, vector<2x32xf32> -> vector<2x64xf32>
    %187 = vector.extract_strided_slice %93 {offsets = [0, 0], sizes = [2, 32], strides = [1, 1]} : vector<2x64xf32> to vector<2x32xf32>
    %188 = vector.extract_strided_slice %114 {offsets = [0, 32], sizes = [2, 32], strides = [1, 1]} : vector<2x64xf32> to vector<2x32xf32>
    %189 = tpu.concatenate %187, %188 in 1 : vector<2x32xf32>, vector<2x32xf32> -> vector<2x64xf32>
    %190 = vector.extract_strided_slice %114 {offsets = [0, 0], sizes = [2, 32], strides = [1, 1]} : vector<2x64xf32> to vector<2x32xf32>
    %191 = vector.extract_strided_slice %93 {offsets = [0, 32], sizes = [2, 32], strides = [1, 1]} : vector<2x64xf32> to vector<2x32xf32>
    %192 = tpu.concatenate %190, %191 in 1 : vector<2x32xf32>, vector<2x32xf32> -> vector<2x64xf32>
    %193 = vector.extract_strided_slice %135 {offsets = [0, 0], sizes = [2, 32], strides = [1, 1]} : vector<2x64xf32> to vector<2x32xf32>
    %194 = vector.extract_strided_slice %72 {offsets = [0, 32], sizes = [2, 32], strides = [1, 1]} : vector<2x64xf32> to vector<2x32xf32>
    %195 = tpu.concatenate %193, %194 in 1 : vector<2x32xf32>, vector<2x32xf32> -> vector<2x64xf32>
    %196 = vector.extract_strided_slice %156 {offsets = [0, 0], sizes = [2, 32], strides = [1, 1]} : vector<2x64xf32> to vector<2x32xf32>
    %197 = vector.extract_strided_slice %51 {offsets = [0, 32], sizes = [2, 32], strides = [1, 1]} : vector<2x64xf32> to vector<2x32xf32>
    %198 = tpu.concatenate %196, %197 in 1 : vector<2x32xf32>, vector<2x32xf32> -> vector<2x64xf32>
    %199 = vector.extract_strided_slice %177 {offsets = [0, 0], sizes = [2, 32], strides = [1, 1]} : vector<2x64xf32> to vector<2x32xf32>
    %200 = vector.extract_strided_slice %30 {offsets = [0, 32], sizes = [2, 32], strides = [1, 1]} : vector<2x64xf32> to vector<2x32xf32>
    %201 = tpu.concatenate %199, %200 in 1 : vector<2x32xf32>, vector<2x32xf32> -> vector<2x64xf32>
    %202 = tpu.concatenate %180, %201 in 1 : vector<2x64xf32>, vector<2x64xf32> -> vector<2x128xf32>
    %203 = tpu.concatenate %183, %198 in 1 : vector<2x64xf32>, vector<2x64xf32> -> vector<2x128xf32>
    %204 = tpu.concatenate %186, %195 in 1 : vector<2x64xf32>, vector<2x64xf32> -> vector<2x128xf32>
    %205 = tpu.concatenate %189, %192 in 1 : vector<2x64xf32>, vector<2x64xf32> -> vector<2x128xf32>
    %206 = tpu.concatenate %192, %189 in 1 : vector<2x64xf32>, vector<2x64xf32> -> vector<2x128xf32>
    %207 = tpu.concatenate %195, %186 in 1 : vector<2x64xf32>, vector<2x64xf32> -> vector<2x128xf32>
    %208 = tpu.concatenate %198, %183 in 1 : vector<2x64xf32>, vector<2x64xf32> -> vector<2x128xf32>
    %209 = tpu.concatenate %201, %180 in 1 : vector<2x64xf32>, vector<2x64xf32> -> vector<2x128xf32>
    %210 = vector.shape_cast %202 : vector<2x128xf32> to vector<2x1x128xf32>
    %211 = vector.shape_cast %203 : vector<2x128xf32> to vector<2x1x128xf32>
    %212 = vector.shape_cast %204 : vector<2x128xf32> to vector<2x1x128xf32>
    %213 = vector.shape_cast %205 : vector<2x128xf32> to vector<2x1x128xf32>
    %214 = vector.shape_cast %206 : vector<2x128xf32> to vector<2x1x128xf32>
    %215 = vector.shape_cast %207 : vector<2x128xf32> to vector<2x1x128xf32>
    %216 = vector.shape_cast %208 : vector<2x128xf32> to vector<2x1x128xf32>
    %217 = vector.shape_cast %209 : vector<2x128xf32> to vector<2x1x128xf32>
    %218 = tpu.concatenate %210, %211, %212, %213, %214, %215, %216, %217 in 1 : vector<2x1x128xf32>, vector<2x1x128xf32>, vector<2x1x128xf32>, vector<2x1x128xf32>, vector<2x1x128xf32>, vector<2x1x128xf32>, vector<2x1x128xf32>, vector<2x1x128xf32> -> vector<2x8x128xf32>
    %219 = vector.shape_cast %218 : vector<2x8x128xf32> to vector<16x128xf32>
    %220 = arith.truncf %219 : vector<16x128xf32> to vector<16x128xbf16>
    %c0_25 = arith.constant 0 : index
    %c0_26 = arith.constant 0 : index
    %221 = vector.load %arg4[%c0_25, %c0_26] : memref<128x256xbf16, #tpu.memory_space<vmem>>, vector<128x256xbf16>
    %c0_27 = arith.constant 0 : index
    %c0_28 = arith.constant 0 : index
    %222 = vector.load %arg5[%c0_27, %c0_28] : memref<1x256xf32, #tpu.memory_space<vmem>>, vector<1x256xf32>
    %c0_29 = arith.constant 0 : index
    %c0_30 = arith.constant 0 : index
    %223 = vector.load %arg6[%c0_29, %c0_30] : memref<64x256xbf16, #tpu.memory_space<vmem>>, vector<64x256xbf16>
    %cst_31 = arith.constant dense<0.000000e+00> : vector<16x256xf32>
    %224 = tpu.matmul %220, %221, %cst_31 {dimension_numbers = #tpu.dot_dimension_numbers<[1], [0], [0], [1], [0, 0, 1, 1], [], []>} : vector<16x128xbf16>, vector<128x256xbf16>, vector<16x256xf32> -> vector<16x256xf32>
    %225 = vector.broadcast %222 : vector<1x256xf32> to vector<16x256xf32>
    %226 = arith.addf %224, %225 : vector<16x256xf32>
    %227 = vector.shape_cast %226 : vector<16x256xf32> to vector<2x8x256xf32>
    %cst_32 = arith.constant 0.000000e+00 : f32
    %228 = vector.broadcast %cst_32 : f32 to vector<2x64xf32>
    %cst_33 = arith.constant 0.000000e+00 : f32
    %229 = vector.broadcast %cst_33 : f32 to vector<2x64xf32>
    %230 = vector.extract_strided_slice %227 {offsets = [0, 0, 0], sizes = [2, 1, 256], strides = [1, 1, 1]} : vector<2x8x256xf32> to vector<2x1x256xf32>
    %231 = vector.shape_cast %230 : vector<2x1x256xf32> to vector<2x256xf32>
    %232 = arith.truncf %228 : vector<2x64xf32> to vector<2x64xbf16>
    %cst_34 = arith.constant dense<0.000000e+00> : vector<2x256xf32>
    %233 = tpu.matmul %232, %223, %cst_34 {dimension_numbers = #tpu.dot_dimension_numbers<[1], [0], [0], [1], [0, 0, 1, 1], [], []>} : vector<2x64xbf16>, vector<64x256xbf16>, vector<2x256xf32> -> vector<2x256xf32>
    %234 = arith.addf %231, %233 : vector<2x256xf32>
    %235 = vector.extract_strided_slice %234 {offsets = [0, 0], sizes = [2, 192], strides = [1, 1]} : vector<2x256xf32> to vector<2x192xf32>
    %236 = arith.negf %235 : vector<2x192xf32>
    %237 = math.exp %236 : vector<2x192xf32>
    %cst_35 = arith.constant 1.000000e+00 : f32
    %238 = vector.broadcast %cst_35 : f32 to vector<2x192xf32>
    %239 = arith.addf %238, %237 : vector<2x192xf32>
    %240 = arith.divf %238, %239 : vector<2x192xf32>
    %241 = vector.extract_strided_slice %234 {offsets = [0, 192], sizes = [2, 64], strides = [1, 1]} : vector<2x256xf32> to vector<2x64xf32>
    %242 = math.tanh %241 : vector<2x64xf32>
    %243 = vector.extract_strided_slice %240 {offsets = [0, 0], sizes = [2, 64], strides = [1, 1]} : vector<2x192xf32> to vector<2x64xf32>
    %244 = vector.extract_strided_slice %240 {offsets = [0, 64], sizes = [2, 64], strides = [1, 1]} : vector<2x192xf32> to vector<2x64xf32>
    %245 = vector.extract_strided_slice %240 {offsets = [0, 128], sizes = [2, 64], strides = [1, 1]} : vector<2x192xf32> to vector<2x64xf32>
    %246 = arith.mulf %244, %229 : vector<2x64xf32>
    %247 = arith.mulf %243, %242 : vector<2x64xf32>
    %248 = arith.addf %246, %247 : vector<2x64xf32>
    %249 = math.tanh %248 : vector<2x64xf32>
    %250 = arith.mulf %245, %249 : vector<2x64xf32>
    %251 = vector.extract_strided_slice %227 {offsets = [0, 1, 0], sizes = [2, 1, 256], strides = [1, 1, 1]} : vector<2x8x256xf32> to vector<2x1x256xf32>
    %252 = vector.shape_cast %251 : vector<2x1x256xf32> to vector<2x256xf32>
    %253 = arith.truncf %250 : vector<2x64xf32> to vector<2x64xbf16>
    %cst_36 = arith.constant dense<0.000000e+00> : vector<2x256xf32>
    %254 = tpu.matmul %253, %223, %cst_36 {dimension_numbers = #tpu.dot_dimension_numbers<[1], [0], [0], [1], [0, 0, 1, 1], [], []>} : vector<2x64xbf16>, vector<64x256xbf16>, vector<2x256xf32> -> vector<2x256xf32>
    %255 = arith.addf %252, %254 : vector<2x256xf32>
    %256 = vector.extract_strided_slice %255 {offsets = [0, 0], sizes = [2, 192], strides = [1, 1]} : vector<2x256xf32> to vector<2x192xf32>
    %257 = arith.negf %256 : vector<2x192xf32>
    %258 = math.exp %257 : vector<2x192xf32>
    %cst_37 = arith.constant 1.000000e+00 : f32
    %259 = vector.broadcast %cst_37 : f32 to vector<2x192xf32>
    %260 = arith.addf %259, %258 : vector<2x192xf32>
    %261 = arith.divf %259, %260 : vector<2x192xf32>
    %262 = vector.extract_strided_slice %255 {offsets = [0, 192], sizes = [2, 64], strides = [1, 1]} : vector<2x256xf32> to vector<2x64xf32>
    %263 = math.tanh %262 : vector<2x64xf32>
    %264 = vector.extract_strided_slice %261 {offsets = [0, 0], sizes = [2, 64], strides = [1, 1]} : vector<2x192xf32> to vector<2x64xf32>
    %265 = vector.extract_strided_slice %261 {offsets = [0, 64], sizes = [2, 64], strides = [1, 1]} : vector<2x192xf32> to vector<2x64xf32>
    %266 = vector.extract_strided_slice %261 {offsets = [0, 128], sizes = [2, 64], strides = [1, 1]} : vector<2x192xf32> to vector<2x64xf32>
    %267 = arith.mulf %265, %248 : vector<2x64xf32>
    %268 = arith.mulf %264, %263 : vector<2x64xf32>
    %269 = arith.addf %267, %268 : vector<2x64xf32>
    %270 = math.tanh %269 : vector<2x64xf32>
    %271 = arith.mulf %266, %270 : vector<2x64xf32>
    %272 = vector.extract_strided_slice %227 {offsets = [0, 2, 0], sizes = [2, 1, 256], strides = [1, 1, 1]} : vector<2x8x256xf32> to vector<2x1x256xf32>
    %273 = vector.shape_cast %272 : vector<2x1x256xf32> to vector<2x256xf32>
    %274 = arith.truncf %271 : vector<2x64xf32> to vector<2x64xbf16>
    %cst_38 = arith.constant dense<0.000000e+00> : vector<2x256xf32>
    %275 = tpu.matmul %274, %223, %cst_38 {dimension_numbers = #tpu.dot_dimension_numbers<[1], [0], [0], [1], [0, 0, 1, 1], [], []>} : vector<2x64xbf16>, vector<64x256xbf16>, vector<2x256xf32> -> vector<2x256xf32>
    %276 = arith.addf %273, %275 : vector<2x256xf32>
    %277 = vector.extract_strided_slice %276 {offsets = [0, 0], sizes = [2, 192], strides = [1, 1]} : vector<2x256xf32> to vector<2x192xf32>
    %278 = arith.negf %277 : vector<2x192xf32>
    %279 = math.exp %278 : vector<2x192xf32>
    %cst_39 = arith.constant 1.000000e+00 : f32
    %280 = vector.broadcast %cst_39 : f32 to vector<2x192xf32>
    %281 = arith.addf %280, %279 : vector<2x192xf32>
    %282 = arith.divf %280, %281 : vector<2x192xf32>
    %283 = vector.extract_strided_slice %276 {offsets = [0, 192], sizes = [2, 64], strides = [1, 1]} : vector<2x256xf32> to vector<2x64xf32>
    %284 = math.tanh %283 : vector<2x64xf32>
    %285 = vector.extract_strided_slice %282 {offsets = [0, 0], sizes = [2, 64], strides = [1, 1]} : vector<2x192xf32> to vector<2x64xf32>
    %286 = vector.extract_strided_slice %282 {offsets = [0, 64], sizes = [2, 64], strides = [1, 1]} : vector<2x192xf32> to vector<2x64xf32>
    %287 = vector.extract_strided_slice %282 {offsets = [0, 128], sizes = [2, 64], strides = [1, 1]} : vector<2x192xf32> to vector<2x64xf32>
    %288 = arith.mulf %286, %269 : vector<2x64xf32>
    %289 = arith.mulf %285, %284 : vector<2x64xf32>
    %290 = arith.addf %288, %289 : vector<2x64xf32>
    %291 = math.tanh %290 : vector<2x64xf32>
    %292 = arith.mulf %287, %291 : vector<2x64xf32>
    %293 = vector.extract_strided_slice %227 {offsets = [0, 3, 0], sizes = [2, 1, 256], strides = [1, 1, 1]} : vector<2x8x256xf32> to vector<2x1x256xf32>
    %294 = vector.shape_cast %293 : vector<2x1x256xf32> to vector<2x256xf32>
    %295 = arith.truncf %292 : vector<2x64xf32> to vector<2x64xbf16>
    %cst_40 = arith.constant dense<0.000000e+00> : vector<2x256xf32>
    %296 = tpu.matmul %295, %223, %cst_40 {dimension_numbers = #tpu.dot_dimension_numbers<[1], [0], [0], [1], [0, 0, 1, 1], [], []>} : vector<2x64xbf16>, vector<64x256xbf16>, vector<2x256xf32> -> vector<2x256xf32>
    %297 = arith.addf %294, %296 : vector<2x256xf32>
    %298 = vector.extract_strided_slice %297 {offsets = [0, 0], sizes = [2, 192], strides = [1, 1]} : vector<2x256xf32> to vector<2x192xf32>
    %299 = arith.negf %298 : vector<2x192xf32>
    %300 = math.exp %299 : vector<2x192xf32>
    %cst_41 = arith.constant 1.000000e+00 : f32
    %301 = vector.broadcast %cst_41 : f32 to vector<2x192xf32>
    %302 = arith.addf %301, %300 : vector<2x192xf32>
    %303 = arith.divf %301, %302 : vector<2x192xf32>
    %304 = vector.extract_strided_slice %297 {offsets = [0, 192], sizes = [2, 64], strides = [1, 1]} : vector<2x256xf32> to vector<2x64xf32>
    %305 = math.tanh %304 : vector<2x64xf32>
    %306 = vector.extract_strided_slice %303 {offsets = [0, 0], sizes = [2, 64], strides = [1, 1]} : vector<2x192xf32> to vector<2x64xf32>
    %307 = vector.extract_strided_slice %303 {offsets = [0, 64], sizes = [2, 64], strides = [1, 1]} : vector<2x192xf32> to vector<2x64xf32>
    %308 = vector.extract_strided_slice %303 {offsets = [0, 128], sizes = [2, 64], strides = [1, 1]} : vector<2x192xf32> to vector<2x64xf32>
    %309 = arith.mulf %307, %290 : vector<2x64xf32>
    %310 = arith.mulf %306, %305 : vector<2x64xf32>
    %311 = arith.addf %309, %310 : vector<2x64xf32>
    %312 = math.tanh %311 : vector<2x64xf32>
    %313 = arith.mulf %308, %312 : vector<2x64xf32>
    %314 = vector.extract_strided_slice %227 {offsets = [0, 4, 0], sizes = [2, 1, 256], strides = [1, 1, 1]} : vector<2x8x256xf32> to vector<2x1x256xf32>
    %315 = vector.shape_cast %314 : vector<2x1x256xf32> to vector<2x256xf32>
    %316 = arith.truncf %313 : vector<2x64xf32> to vector<2x64xbf16>
    %cst_42 = arith.constant dense<0.000000e+00> : vector<2x256xf32>
    %317 = tpu.matmul %316, %223, %cst_42 {dimension_numbers = #tpu.dot_dimension_numbers<[1], [0], [0], [1], [0, 0, 1, 1], [], []>} : vector<2x64xbf16>, vector<64x256xbf16>, vector<2x256xf32> -> vector<2x256xf32>
    %318 = arith.addf %315, %317 : vector<2x256xf32>
    %319 = vector.extract_strided_slice %318 {offsets = [0, 0], sizes = [2, 192], strides = [1, 1]} : vector<2x256xf32> to vector<2x192xf32>
    %320 = arith.negf %319 : vector<2x192xf32>
    %321 = math.exp %320 : vector<2x192xf32>
    %cst_43 = arith.constant 1.000000e+00 : f32
    %322 = vector.broadcast %cst_43 : f32 to vector<2x192xf32>
    %323 = arith.addf %322, %321 : vector<2x192xf32>
    %324 = arith.divf %322, %323 : vector<2x192xf32>
    %325 = vector.extract_strided_slice %318 {offsets = [0, 192], sizes = [2, 64], strides = [1, 1]} : vector<2x256xf32> to vector<2x64xf32>
    %326 = math.tanh %325 : vector<2x64xf32>
    %327 = vector.extract_strided_slice %324 {offsets = [0, 0], sizes = [2, 64], strides = [1, 1]} : vector<2x192xf32> to vector<2x64xf32>
    %328 = vector.extract_strided_slice %324 {offsets = [0, 64], sizes = [2, 64], strides = [1, 1]} : vector<2x192xf32> to vector<2x64xf32>
    %329 = vector.extract_strided_slice %324 {offsets = [0, 128], sizes = [2, 64], strides = [1, 1]} : vector<2x192xf32> to vector<2x64xf32>
    %330 = arith.mulf %328, %311 : vector<2x64xf32>
    %331 = arith.mulf %327, %326 : vector<2x64xf32>
    %332 = arith.addf %330, %331 : vector<2x64xf32>
    %333 = math.tanh %332 : vector<2x64xf32>
    %334 = arith.mulf %329, %333 : vector<2x64xf32>
    %335 = vector.extract_strided_slice %227 {offsets = [0, 5, 0], sizes = [2, 1, 256], strides = [1, 1, 1]} : vector<2x8x256xf32> to vector<2x1x256xf32>
    %336 = vector.shape_cast %335 : vector<2x1x256xf32> to vector<2x256xf32>
    %337 = arith.truncf %334 : vector<2x64xf32> to vector<2x64xbf16>
    %cst_44 = arith.constant dense<0.000000e+00> : vector<2x256xf32>
    %338 = tpu.matmul %337, %223, %cst_44 {dimension_numbers = #tpu.dot_dimension_numbers<[1], [0], [0], [1], [0, 0, 1, 1], [], []>} : vector<2x64xbf16>, vector<64x256xbf16>, vector<2x256xf32> -> vector<2x256xf32>
    %339 = arith.addf %336, %338 : vector<2x256xf32>
    %340 = vector.extract_strided_slice %339 {offsets = [0, 0], sizes = [2, 192], strides = [1, 1]} : vector<2x256xf32> to vector<2x192xf32>
    %341 = arith.negf %340 : vector<2x192xf32>
    %342 = math.exp %341 : vector<2x192xf32>
    %cst_45 = arith.constant 1.000000e+00 : f32
    %343 = vector.broadcast %cst_45 : f32 to vector<2x192xf32>
    %344 = arith.addf %343, %342 : vector<2x192xf32>
    %345 = arith.divf %343, %344 : vector<2x192xf32>
    %346 = vector.extract_strided_slice %339 {offsets = [0, 192], sizes = [2, 64], strides = [1, 1]} : vector<2x256xf32> to vector<2x64xf32>
    %347 = math.tanh %346 : vector<2x64xf32>
    %348 = vector.extract_strided_slice %345 {offsets = [0, 0], sizes = [2, 64], strides = [1, 1]} : vector<2x192xf32> to vector<2x64xf32>
    %349 = vector.extract_strided_slice %345 {offsets = [0, 64], sizes = [2, 64], strides = [1, 1]} : vector<2x192xf32> to vector<2x64xf32>
    %350 = vector.extract_strided_slice %345 {offsets = [0, 128], sizes = [2, 64], strides = [1, 1]} : vector<2x192xf32> to vector<2x64xf32>
    %351 = arith.mulf %349, %332 : vector<2x64xf32>
    %352 = arith.mulf %348, %347 : vector<2x64xf32>
    %353 = arith.addf %351, %352 : vector<2x64xf32>
    %354 = math.tanh %353 : vector<2x64xf32>
    %355 = arith.mulf %350, %354 : vector<2x64xf32>
    %356 = vector.extract_strided_slice %227 {offsets = [0, 6, 0], sizes = [2, 1, 256], strides = [1, 1, 1]} : vector<2x8x256xf32> to vector<2x1x256xf32>
    %357 = vector.shape_cast %356 : vector<2x1x256xf32> to vector<2x256xf32>
    %358 = arith.truncf %355 : vector<2x64xf32> to vector<2x64xbf16>
    %cst_46 = arith.constant dense<0.000000e+00> : vector<2x256xf32>
    %359 = tpu.matmul %358, %223, %cst_46 {dimension_numbers = #tpu.dot_dimension_numbers<[1], [0], [0], [1], [0, 0, 1, 1], [], []>} : vector<2x64xbf16>, vector<64x256xbf16>, vector<2x256xf32> -> vector<2x256xf32>
    %360 = arith.addf %357, %359 : vector<2x256xf32>
    %361 = vector.extract_strided_slice %360 {offsets = [0, 0], sizes = [2, 192], strides = [1, 1]} : vector<2x256xf32> to vector<2x192xf32>
    %362 = arith.negf %361 : vector<2x192xf32>
    %363 = math.exp %362 : vector<2x192xf32>
    %cst_47 = arith.constant 1.000000e+00 : f32
    %364 = vector.broadcast %cst_47 : f32 to vector<2x192xf32>
    %365 = arith.addf %364, %363 : vector<2x192xf32>
    %366 = arith.divf %364, %365 : vector<2x192xf32>
    %367 = vector.extract_strided_slice %360 {offsets = [0, 192], sizes = [2, 64], strides = [1, 1]} : vector<2x256xf32> to vector<2x64xf32>
    %368 = math.tanh %367 : vector<2x64xf32>
    %369 = vector.extract_strided_slice %366 {offsets = [0, 0], sizes = [2, 64], strides = [1, 1]} : vector<2x192xf32> to vector<2x64xf32>
    %370 = vector.extract_strided_slice %366 {offsets = [0, 64], sizes = [2, 64], strides = [1, 1]} : vector<2x192xf32> to vector<2x64xf32>
    %371 = vector.extract_strided_slice %366 {offsets = [0, 128], sizes = [2, 64], strides = [1, 1]} : vector<2x192xf32> to vector<2x64xf32>
    %372 = arith.mulf %370, %353 : vector<2x64xf32>
    %373 = arith.mulf %369, %368 : vector<2x64xf32>
    %374 = arith.addf %372, %373 : vector<2x64xf32>
    %375 = math.tanh %374 : vector<2x64xf32>
    %376 = arith.mulf %371, %375 : vector<2x64xf32>
    %377 = vector.extract_strided_slice %227 {offsets = [0, 7, 0], sizes = [2, 1, 256], strides = [1, 1, 1]} : vector<2x8x256xf32> to vector<2x1x256xf32>
    %378 = vector.shape_cast %377 : vector<2x1x256xf32> to vector<2x256xf32>
    %379 = arith.truncf %376 : vector<2x64xf32> to vector<2x64xbf16>
    %cst_48 = arith.constant dense<0.000000e+00> : vector<2x256xf32>
    %380 = tpu.matmul %379, %223, %cst_48 {dimension_numbers = #tpu.dot_dimension_numbers<[1], [0], [0], [1], [0, 0, 1, 1], [], []>} : vector<2x64xbf16>, vector<64x256xbf16>, vector<2x256xf32> -> vector<2x256xf32>
    %381 = arith.addf %378, %380 : vector<2x256xf32>
    %382 = vector.extract_strided_slice %381 {offsets = [0, 0], sizes = [2, 192], strides = [1, 1]} : vector<2x256xf32> to vector<2x192xf32>
    %383 = arith.negf %382 : vector<2x192xf32>
    %384 = math.exp %383 : vector<2x192xf32>
    %cst_49 = arith.constant 1.000000e+00 : f32
    %385 = vector.broadcast %cst_49 : f32 to vector<2x192xf32>
    %386 = arith.addf %385, %384 : vector<2x192xf32>
    %387 = arith.divf %385, %386 : vector<2x192xf32>
    %388 = vector.extract_strided_slice %381 {offsets = [0, 192], sizes = [2, 64], strides = [1, 1]} : vector<2x256xf32> to vector<2x64xf32>
    %389 = math.tanh %388 : vector<2x64xf32>
    %390 = vector.extract_strided_slice %387 {offsets = [0, 0], sizes = [2, 64], strides = [1, 1]} : vector<2x192xf32> to vector<2x64xf32>
    %391 = vector.extract_strided_slice %387 {offsets = [0, 64], sizes = [2, 64], strides = [1, 1]} : vector<2x192xf32> to vector<2x64xf32>
    %392 = vector.extract_strided_slice %387 {offsets = [0, 128], sizes = [2, 64], strides = [1, 1]} : vector<2x192xf32> to vector<2x64xf32>
    %393 = arith.mulf %391, %374 : vector<2x64xf32>
    %394 = arith.mulf %390, %389 : vector<2x64xf32>
    %395 = arith.addf %393, %394 : vector<2x64xf32>
    %396 = math.tanh %395 : vector<2x64xf32>
    %397 = arith.mulf %392, %396 : vector<2x64xf32>
    %398 = vector.extract_strided_slice %250 {offsets = [0, 0], sizes = [2, 32], strides = [1, 1]} : vector<2x64xf32> to vector<2x32xf32>
    %399 = vector.extract_strided_slice %397 {offsets = [0, 32], sizes = [2, 32], strides = [1, 1]} : vector<2x64xf32> to vector<2x32xf32>
    %400 = tpu.concatenate %398, %399 in 1 : vector<2x32xf32>, vector<2x32xf32> -> vector<2x64xf32>
    %401 = vector.extract_strided_slice %271 {offsets = [0, 0], sizes = [2, 32], strides = [1, 1]} : vector<2x64xf32> to vector<2x32xf32>
    %402 = vector.extract_strided_slice %376 {offsets = [0, 32], sizes = [2, 32], strides = [1, 1]} : vector<2x64xf32> to vector<2x32xf32>
    %403 = tpu.concatenate %401, %402 in 1 : vector<2x32xf32>, vector<2x32xf32> -> vector<2x64xf32>
    %404 = vector.extract_strided_slice %292 {offsets = [0, 0], sizes = [2, 32], strides = [1, 1]} : vector<2x64xf32> to vector<2x32xf32>
    %405 = vector.extract_strided_slice %355 {offsets = [0, 32], sizes = [2, 32], strides = [1, 1]} : vector<2x64xf32> to vector<2x32xf32>
    %406 = tpu.concatenate %404, %405 in 1 : vector<2x32xf32>, vector<2x32xf32> -> vector<2x64xf32>
    %407 = vector.extract_strided_slice %313 {offsets = [0, 0], sizes = [2, 32], strides = [1, 1]} : vector<2x64xf32> to vector<2x32xf32>
    %408 = vector.extract_strided_slice %334 {offsets = [0, 32], sizes = [2, 32], strides = [1, 1]} : vector<2x64xf32> to vector<2x32xf32>
    %409 = tpu.concatenate %407, %408 in 1 : vector<2x32xf32>, vector<2x32xf32> -> vector<2x64xf32>
    %410 = vector.extract_strided_slice %334 {offsets = [0, 0], sizes = [2, 32], strides = [1, 1]} : vector<2x64xf32> to vector<2x32xf32>
    %411 = vector.extract_strided_slice %313 {offsets = [0, 32], sizes = [2, 32], strides = [1, 1]} : vector<2x64xf32> to vector<2x32xf32>
    %412 = tpu.concatenate %410, %411 in 1 : vector<2x32xf32>, vector<2x32xf32> -> vector<2x64xf32>
    %413 = vector.extract_strided_slice %355 {offsets = [0, 0], sizes = [2, 32], strides = [1, 1]} : vector<2x64xf32> to vector<2x32xf32>
    %414 = vector.extract_strided_slice %292 {offsets = [0, 32], sizes = [2, 32], strides = [1, 1]} : vector<2x64xf32> to vector<2x32xf32>
    %415 = tpu.concatenate %413, %414 in 1 : vector<2x32xf32>, vector<2x32xf32> -> vector<2x64xf32>
    %416 = vector.extract_strided_slice %376 {offsets = [0, 0], sizes = [2, 32], strides = [1, 1]} : vector<2x64xf32> to vector<2x32xf32>
    %417 = vector.extract_strided_slice %271 {offsets = [0, 32], sizes = [2, 32], strides = [1, 1]} : vector<2x64xf32> to vector<2x32xf32>
    %418 = tpu.concatenate %416, %417 in 1 : vector<2x32xf32>, vector<2x32xf32> -> vector<2x64xf32>
    %419 = vector.extract_strided_slice %397 {offsets = [0, 0], sizes = [2, 32], strides = [1, 1]} : vector<2x64xf32> to vector<2x32xf32>
    %420 = vector.extract_strided_slice %250 {offsets = [0, 32], sizes = [2, 32], strides = [1, 1]} : vector<2x64xf32> to vector<2x32xf32>
    %421 = tpu.concatenate %419, %420 in 1 : vector<2x32xf32>, vector<2x32xf32> -> vector<2x64xf32>
    %422 = vector.shape_cast %400 : vector<2x64xf32> to vector<2x1x64xf32>
    %423 = vector.shape_cast %403 : vector<2x64xf32> to vector<2x1x64xf32>
    %424 = vector.shape_cast %406 : vector<2x64xf32> to vector<2x1x64xf32>
    %425 = vector.shape_cast %409 : vector<2x64xf32> to vector<2x1x64xf32>
    %426 = vector.shape_cast %412 : vector<2x64xf32> to vector<2x1x64xf32>
    %427 = vector.shape_cast %415 : vector<2x64xf32> to vector<2x1x64xf32>
    %428 = vector.shape_cast %418 : vector<2x64xf32> to vector<2x1x64xf32>
    %429 = vector.shape_cast %421 : vector<2x64xf32> to vector<2x1x64xf32>
    %430 = tpu.concatenate %422, %423, %424, %425, %426, %427, %428, %429 in 1 : vector<2x1x64xf32>, vector<2x1x64xf32>, vector<2x1x64xf32>, vector<2x1x64xf32>, vector<2x1x64xf32>, vector<2x1x64xf32>, vector<2x1x64xf32>, vector<2x1x64xf32> -> vector<2x8x64xf32>
    %431 = vector.shape_cast %430 : vector<2x8x64xf32> to vector<16x64xf32>
    %432 = arith.truncf %431 : vector<16x64xf32> to vector<16x64xbf16>
    %c0_50 = arith.constant 0 : index
    %c0_51 = arith.constant 0 : index
    %433 = vector.load %arg7[%c0_50, %c0_51] : memref<64x192xbf16, #tpu.memory_space<vmem>>, vector<64x192xbf16>
    %cst_52 = arith.constant dense<0.000000e+00> : vector<16x192xf32>
    %434 = tpu.matmul %432, %433, %cst_52 {dimension_numbers = #tpu.dot_dimension_numbers<[1], [0], [0], [1], [0, 0, 1, 1], [], []>} : vector<16x64xbf16>, vector<64x192xbf16>, vector<16x192xf32> -> vector<16x192xf32>
    %c0_53 = arith.constant 0 : index
    %c0_54 = arith.constant 0 : index
    %435 = vector.load %arg8[%c0_53, %c0_54] : memref<1x192xf32, #tpu.memory_space<vmem>>, vector<1x192xf32>
    %436 = vector.broadcast %435 : vector<1x192xf32> to vector<16x192xf32>
    %437 = arith.addf %434, %436 : vector<16x192xf32>
    %438 = vector.extract_strided_slice %437 {offsets = [0, 0], sizes = [16, 64], strides = [1, 1]} : vector<16x192xf32> to vector<16x64xf32>
    %439 = vector.shape_cast %438 : vector<16x64xf32> to vector<2x8x64xf32>
    %440 = vector.extract_strided_slice %437 {offsets = [0, 64], sizes = [16, 64], strides = [1, 1]} : vector<16x192xf32> to vector<16x64xf32>
    %441 = vector.shape_cast %440 : vector<16x64xf32> to vector<2x8x64xf32>
    %442 = vector.extract_strided_slice %437 {offsets = [0, 128], sizes = [16, 64], strides = [1, 1]} : vector<16x192xf32> to vector<16x64xf32>
    %443 = vector.shape_cast %442 : vector<16x64xf32> to vector<2x8x64xf32>
    %444 = vector.extract_strided_slice %439 {offsets = [0, 0, 0], sizes = [2, 8, 16], strides = [1, 1, 1]} : vector<2x8x64xf32> to vector<2x8x16xf32>
    %445 = vector.extract_strided_slice %439 {offsets = [0, 0, 16], sizes = [2, 8, 16], strides = [1, 1, 1]} : vector<2x8x64xf32> to vector<2x8x16xf32>
    %446 = vector.extract_strided_slice %439 {offsets = [0, 0, 32], sizes = [2, 8, 16], strides = [1, 1, 1]} : vector<2x8x64xf32> to vector<2x8x16xf32>
    %447 = vector.extract_strided_slice %439 {offsets = [0, 0, 48], sizes = [2, 8, 16], strides = [1, 1, 1]} : vector<2x8x64xf32> to vector<2x8x16xf32>
    %448 = tpu.concatenate %444, %445, %446, %447 in 0 : vector<2x8x16xf32>, vector<2x8x16xf32>, vector<2x8x16xf32>, vector<2x8x16xf32> -> vector<8x8x16xf32>
    %449 = vector.extract_strided_slice %441 {offsets = [0, 0, 0], sizes = [2, 8, 16], strides = [1, 1, 1]} : vector<2x8x64xf32> to vector<2x8x16xf32>
    %450 = vector.extract_strided_slice %441 {offsets = [0, 0, 16], sizes = [2, 8, 16], strides = [1, 1, 1]} : vector<2x8x64xf32> to vector<2x8x16xf32>
    %451 = vector.extract_strided_slice %441 {offsets = [0, 0, 32], sizes = [2, 8, 16], strides = [1, 1, 1]} : vector<2x8x64xf32> to vector<2x8x16xf32>
    %452 = vector.extract_strided_slice %441 {offsets = [0, 0, 48], sizes = [2, 8, 16], strides = [1, 1, 1]} : vector<2x8x64xf32> to vector<2x8x16xf32>
    %453 = tpu.concatenate %449, %450, %451, %452 in 0 : vector<2x8x16xf32>, vector<2x8x16xf32>, vector<2x8x16xf32>, vector<2x8x16xf32> -> vector<8x8x16xf32>
    %454 = vector.extract_strided_slice %443 {offsets = [0, 0, 0], sizes = [2, 8, 16], strides = [1, 1, 1]} : vector<2x8x64xf32> to vector<2x8x16xf32>
    %455 = vector.extract_strided_slice %443 {offsets = [0, 0, 16], sizes = [2, 8, 16], strides = [1, 1, 1]} : vector<2x8x64xf32> to vector<2x8x16xf32>
    %456 = vector.extract_strided_slice %443 {offsets = [0, 0, 32], sizes = [2, 8, 16], strides = [1, 1, 1]} : vector<2x8x64xf32> to vector<2x8x16xf32>
    %457 = vector.extract_strided_slice %443 {offsets = [0, 0, 48], sizes = [2, 8, 16], strides = [1, 1, 1]} : vector<2x8x64xf32> to vector<2x8x16xf32>
    %458 = tpu.concatenate %454, %455, %456, %457 in 0 : vector<2x8x16xf32>, vector<2x8x16xf32>, vector<2x8x16xf32>, vector<2x8x16xf32> -> vector<8x8x16xf32>
    "tpu.trace_start"() <{level = 10 : i32, message = "bsd,btd->bst"}> : () -> ()
    %cst_55 = arith.constant dense<0.000000e+00> : vector<8x8x8xf32>
    %459 = tpu.matmul %448, %453, %cst_55 {dimension_numbers = #tpu.dot_dimension_numbers<[2], [2], [1], [1], [0, 0, 0, 1, 1, 1], [0], [0]>} : vector<8x8x16xf32>, vector<8x8x16xf32>, vector<8x8x8xf32> -> vector<8x8x8xf32>
    "tpu.trace_stop"() : () -> ()
    %cst_56 = arith.constant 2.500000e-01 : f32
    %460 = vector.broadcast %cst_56 : f32 to vector<8x8x8xf32>
    %461 = arith.mulf %459, %460 : vector<8x8x8xf32>
    %cst_57 = arith.constant dense<0xFF800000> : vector<8x8xf32>
    %462 = vector.multi_reduction <maximumf>, %461, %cst_57 [2] : vector<8x8x8xf32> to vector<8x8xf32>
    %463 = vector.shape_cast %462 : vector<8x8xf32> to vector<8x8x1xf32>
    %464 = vector.broadcast %463 : vector<8x8x1xf32> to vector<8x8x8xf32>
    %465 = arith.subf %461, %464 : vector<8x8x8xf32>
    %466 = math.exp %465 : vector<8x8x8xf32>
    %cst_58 = arith.constant dense<0.000000e+00> : vector<8x8xf32>
    %467 = vector.multi_reduction <add>, %466, %cst_58 [2] : vector<8x8x8xf32> to vector<8x8xf32>
    %468 = vector.shape_cast %467 : vector<8x8xf32> to vector<8x8x1xf32>
    %469 = vector.broadcast %468 : vector<8x8x1xf32> to vector<8x8x8xf32>
    %470 = arith.divf %466, %469 : vector<8x8x8xf32>
    "tpu.trace_start"() <{level = 10 : i32, message = "bst,btd->bsd"}> : () -> ()
    %cst_59 = arith.constant dense<0.000000e+00> : vector<8x8x16xf32>
    %471 = tpu.matmul %470, %458, %cst_59 {dimension_numbers = #tpu.dot_dimension_numbers<[2], [1], [1], [2], [0, 0, 0, 1, 1, 2], [0], [0]>} : vector<8x8x8xf32>, vector<8x8x16xf32>, vector<8x8x16xf32> -> vector<8x8x16xf32>
    "tpu.trace_stop"() : () -> ()
    %472 = vector.extract_strided_slice %471 {offsets = [0, 0, 0], sizes = [2, 8, 16], strides = [1, 1, 1]} : vector<8x8x16xf32> to vector<2x8x16xf32>
    %473 = vector.extract_strided_slice %471 {offsets = [2, 0, 0], sizes = [2, 8, 16], strides = [1, 1, 1]} : vector<8x8x16xf32> to vector<2x8x16xf32>
    %474 = vector.extract_strided_slice %471 {offsets = [4, 0, 0], sizes = [2, 8, 16], strides = [1, 1, 1]} : vector<8x8x16xf32> to vector<2x8x16xf32>
    %475 = vector.extract_strided_slice %471 {offsets = [6, 0, 0], sizes = [2, 8, 16], strides = [1, 1, 1]} : vector<8x8x16xf32> to vector<2x8x16xf32>
    %476 = tpu.concatenate %472, %473, %474, %475 in 2 : vector<2x8x16xf32>, vector<2x8x16xf32>, vector<2x8x16xf32>, vector<2x8x16xf32> -> vector<2x8x64xf32>
    %477 = vector.extract_strided_slice %470 {offsets = [0, 0, 0], sizes = [2, 8, 8], strides = [1, 1, 1]} : vector<8x8x8xf32> to vector<2x8x8xf32>
    %cst_60 = arith.constant 0.000000e+00 : f32
    %478 = vector.broadcast %cst_60 : f32 to vector<2x8x8xf32>
    %479 = arith.addf %478, %477 : vector<2x8x8xf32>
    %480 = vector.extract_strided_slice %470 {offsets = [2, 0, 0], sizes = [2, 8, 8], strides = [1, 1, 1]} : vector<8x8x8xf32> to vector<2x8x8xf32>
    %481 = arith.addf %479, %480 : vector<2x8x8xf32>
    %482 = vector.extract_strided_slice %470 {offsets = [4, 0, 0], sizes = [2, 8, 8], strides = [1, 1, 1]} : vector<8x8x8xf32> to vector<2x8x8xf32>
    %483 = arith.addf %481, %482 : vector<2x8x8xf32>
    %484 = vector.extract_strided_slice %470 {offsets = [6, 0, 0], sizes = [2, 8, 8], strides = [1, 1, 1]} : vector<8x8x8xf32> to vector<2x8x8xf32>
    %485 = arith.addf %483, %484 : vector<2x8x8xf32>
    %cst_61 = arith.constant 2.500000e-01 : f32
    %486 = vector.broadcast %cst_61 : f32 to vector<2x8x8xf32>
    %487 = arith.mulf %485, %486 : vector<2x8x8xf32>
    %c0_62 = arith.constant 0 : index
    %c0_63 = arith.constant 0 : index
    %c0_64 = arith.constant 0 : index
    %488 = vector.load %arg16[%c0_62, %c0_63, %c0_64] : memref<2x8x8xf32, #tpu.memory_space<vmem>>, vector<2x8x8xf32>
    tpu.vector_store %arg16[%c0_62, %c0_63, %c0_64], %487 {strides = array<i32>} : memref<2x8x8xf32, #tpu.memory_space<vmem>>, vector<2x8x8xf32>,
    %489 = vector.shape_cast %476 : vector<2x8x64xf32> to vector<16x64xf32>
    %490 = arith.truncf %489 : vector<16x64xf32> to vector<16x64xbf16>
    %c0_65 = arith.constant 0 : index
    %c0_66 = arith.constant 0 : index
    %491 = vector.load %arg9[%c0_65, %c0_66] : memref<64x64xbf16, #tpu.memory_space<vmem>>, vector<64x64xbf16>
    %cst_67 = arith.constant dense<0.000000e+00> : vector<16x64xf32>
    %492 = tpu.matmul %490, %491, %cst_67 {dimension_numbers = #tpu.dot_dimension_numbers<[1], [0], [0], [1], [0, 0, 1, 1], [], []>} : vector<16x64xbf16>, vector<64x64xbf16>, vector<16x64xf32> -> vector<16x64xf32>
    %c0_68 = arith.constant 0 : index
    %c0_69 = arith.constant 0 : index
    %493 = vector.load %arg10[%c0_68, %c0_69] : memref<1x64xf32, #tpu.memory_space<vmem>>, vector<1x64xf32>
    %494 = vector.broadcast %493 : vector<1x64xf32> to vector<16x64xf32>
    %495 = arith.addf %492, %494 : vector<16x64xf32>
    %496 = arith.addf %495, %431 : vector<16x64xf32>
    %cst_70 = arith.constant dense<0.000000e+00> : vector<16xf32>
    %497 = vector.multi_reduction <add>, %496, %cst_70 [1] : vector<16x64xf32> to vector<16xf32>
    %498 = vector.shape_cast %497 : vector<16xf32> to vector<16x1xf32>
    %cst_71 = arith.constant 6.400000e+01 : f32
    %499 = vector.broadcast %cst_71 : f32 to vector<16x1xf32>
    %500 = arith.divf %498, %499 : vector<16x1xf32>
    %501 = vector.broadcast %500 : vector<16x1xf32> to vector<16x64xf32>
    %502 = arith.subf %496, %501 : vector<16x64xf32>
    %503 = arith.mulf %502, %502 : vector<16x64xf32>
    %cst_72 = arith.constant dense<0.000000e+00> : vector<16xf32>
    %504 = vector.multi_reduction <add>, %503, %cst_72 [1] : vector<16x64xf32> to vector<16xf32>
    %505 = vector.shape_cast %504 : vector<16xf32> to vector<16x1xf32>
    %cst_73 = arith.constant 6.400000e+01 : f32
    %506 = vector.broadcast %cst_73 : f32 to vector<16x1xf32>
    %507 = arith.divf %505, %506 : vector<16x1xf32>
    %cst_74 = arith.constant 9.99999974E-6 : f32
    %508 = vector.broadcast %cst_74 : f32 to vector<16x1xf32>
    %509 = arith.addf %507, %508 : vector<16x1xf32>
    %510 = math.rsqrt %509 : vector<16x1xf32>
    %511 = vector.broadcast %510 : vector<16x1xf32> to vector<16x64xf32>
    %512 = arith.mulf %502, %511 : vector<16x64xf32>
    %c0_75 = arith.constant 0 : index
    %c0_76 = arith.constant 0 : index
    %513 = vector.load %arg11[%c0_75, %c0_76] : memref<1x64xf32, #tpu.memory_space<vmem>>, vector<1x64xf32>
    %514 = vector.broadcast %513 : vector<1x64xf32> to vector<16x64xf32>
    %515 = arith.mulf %512, %514 : vector<16x64xf32>
    %c0_77 = arith.constant 0 : index
    %c0_78 = arith.constant 0 : index
    %516 = vector.load %arg12[%c0_77, %c0_78] : memref<1x64xf32, #tpu.memory_space<vmem>>, vector<1x64xf32>
    %517 = vector.broadcast %516 : vector<1x64xf32> to vector<16x64xf32>
    %518 = arith.addf %515, %517 : vector<16x64xf32>
    %519 = vector.shape_cast %518 : vector<16x64xf32> to vector<2x8x64xf32>
    %cst_79 = arith.constant dense<0.000000e+00> : vector<2x64xf32>
    %520 = vector.multi_reduction <add>, %519, %cst_79 [1] : vector<2x8x64xf32> to vector<2x64xf32>
    %cst_80 = arith.constant 8.000000e+00 : f32
    %521 = vector.broadcast %cst_80 : f32 to vector<2x64xf32>
    %522 = arith.divf %520, %521 : vector<2x64xf32>
    %523 = arith.truncf %522 : vector<2x64xf32> to vector<2x64xbf16>
    %c0_81 = arith.constant 0 : index
    %c0_82 = arith.constant 0 : index
    %524 = vector.load %arg13[%c0_81, %c0_82] : memref<64x2xbf16, #tpu.memory_space<vmem>>, vector<64x2xbf16>
    %cst_83 = arith.constant dense<0.000000e+00> : vector<2x2xf32>
    %525 = tpu.matmul %523, %524, %cst_83 {dimension_numbers = #tpu.dot_dimension_numbers<[1], [0], [0], [1], [0, 0, 1, 1], [], []>} : vector<2x64xbf16>, vector<64x2xbf16>, vector<2x2xf32> -> vector<2x2xf32>
    %c0_84 = arith.constant 0 : index
    %c0_85 = arith.constant 0 : index
    %526 = vector.load %arg14[%c0_84, %c0_85] : memref<1x2xf32, #tpu.memory_space<vmem>>, vector<1x2xf32>
    %527 = vector.broadcast %526 : vector<1x2xf32> to vector<2x2xf32>
    %528 = arith.addf %525, %527 : vector<2x2xf32>
    %c0_86 = arith.constant 0 : index
    %c0_87 = arith.constant 0 : index
    %529 = vector.load %arg15[%c0_86, %c0_87] : memref<2x2xf32, #tpu.memory_space<vmem>>, vector<2x2xf32>
    tpu.vector_store %arg15[%c0_86, %c0_87], %528 {strides = array<i32>} : memref<2x2xf32, #tpu.memory_space<vmem>>, vector<2x2xf32>,
    return
  }
}

</mosaic_0001>

<bundles_post_ra>
// kernel: lstm_attention_forward.1
= control target key start
LH: loop header
LB: loop body
LE: loop exit
PB: predicated region body
PF: predicated region fallthrough
CT: control target
= control target key end

     0   :  { %s7312_s0 = inlined_call_operand.vmem [shape: bf16[16,64], index: 0, kind: input, shape index: {}]   ;;  %s7313_s1 = inlined_call_operand.vmem [shape: bf16[64,256], index: 1, kind: input, shape index: {}]   ;;  %s7314_s2 = inlined_call_operand.vmem [shape: f32[1,256], index: 2, kind: input, shape index: {}]   ;;  %s7315_s3 = inlined_call_operand.vmem [shape: bf16[64,256], index: 3, kind: input, shape index: {}]   ;;  %s7316_s4 = inlined_call_operand.vmem [shape: bf16[128,256], index: 4, kind: input, shape index: {}]   ;;  %s7317_s5 = inlined_call_operand.vmem [shape: f32[1,256], index: 5, kind: input, shape index: {}]   ;;  %s7318_s6 = inlined_call_operand.vmem [shape: bf16[64,256], index: 6, kind: input, shape index: {}]   ;;  %s7319_s7 = inlined_call_operand.vmem [shape: bf16[64,192], index: 7, kind: input, shape index: {}]   ;;  %s7320_s8 = inlined_call_operand.vmem [shape: f32[1,192], index: 8, kind: input, shape index: {}]   ;;  %s7321_s9 = inlined_call_operand.vmem [shape: bf16[64,64], index: 9, kind: input, shape index: {}]   ;;  %s7322_s10 = inlined_call_operand.vmem [shape: f32[1,64], index: 10, kind: input, shape index: {}]   ;;  %s7323_s11 = inlined_call_operand.vmem [shape: f32[1,64], index: 11, kind: input, shape index: {}]   ;;  %s7324_s12 = inlined_call_operand.vmem [shape: f32[1,64], index: 12, kind: input, shape index: {}]   ;;  %s7325_s13 = inlined_call_operand.vmem [shape: bf16[64,2], index: 13, kind: input, shape index: {}]   ;;  %s7326_s14 = inlined_call_operand.vmem [shape: f32[1,2], index: 14, kind: input, shape index: {}]   ;;  %s7327_s15 = inlined_call_operand.hbm [shape: f32[2,2], index: 15, kind: output, shape index: {0}]   ;;  %s7328_s16 = inlined_call_operand.hbm [shape: f32[2,8,8], index: 16, kind: output, shape index: {1}]  }
   0x1   :  { %7329 = sst [smem:[#allocation8_spill]] %s7312_s0 }
   0x2   :  { %22 = vsyncpa [#allocation3], 0  ;;  %v5422_v0 = vld [vmem:[%s7313_s1 + $0x4] ss:$8 sps:$4 sm:$0xff]   ;;  %v5985_v2 = vmov 0   ;;  %s7330_s25 = sld [smem:[#allocation8_spill]] }
   0x3   :  { %v6091_v1 = vld [vmem:[%s7315_s3 + $0x4] ss:$8 sps:$4 sm:$0xff]   ;;  %166 = vmatprep.mubr.bf16.mxu0 %v5985_v2  ;;  %252 = vmatprep.mubr.bf16.mxu1 %v5985_v2  ;;  %v5426_v3 = vld [vmem:[%s7313_s1] ss:$8 sps:$4 sm:$0xff]   ;;  %v5428_v5 = vld [vmem:[%s7313_s1 + $0x14] ss:$8 sps:$4 sm:$0xff]  }
   0x4   :  { %134 = vmatprep.subr.bf16.mxu0 %v5422_v0  ;;  %v6101_v4 = vld [vmem:[%s7315_s3] ss:$8 sps:$4 sm:$0xff]   ;;  %220 = vmatprep.subr.bf16.mxu1 %v6091_v1  ;;  %v6111_v6 = vld [vmem:[%s7315_s3 + $0x14] ss:$8 sps:$4 sm:$0xff]   ;;  %v5432_v7 = vld [vmem:[%s7313_s1 + $0x10] ss:$8 sps:$4 sm:$0xff]  }
   0x5   :  { %135 = vmatpush1.bf16.msra.mxu0 %v5426_v3  ;;  %221 = vmatpush1.bf16.msra.mxu1 %v6101_v4  ;;  %v6119_v8 = vld [vmem:[%s7315_s3 + $0x10] ss:$8 sps:$4 sm:$0xff]   ;;  %v5434_v9 = vld [vmem:[%s7313_s1 + $0x24] ss:$8 sps:$4 sm:$0xff]   ;;  %v5438_v11 = vld [vmem:[%s7313_s1 + $0x20] ss:$8 sps:$4 sm:$0xff]  }
   0x6   :  { %136 = vmatprep.subr.bf16.mxu0 %v5428_v5  ;;  %222 = vmatprep.subr.bf16.mxu1 %v6111_v6  ;;  %v6128_v10 = vld [vmem:[%s7315_s3 + $0x24] ss:$8 sps:$4 sm:$0xff]   ;;  %v6136_v12 = vld [vmem:[%s7315_s3 + $0x20] ss:$8 sps:$4 sm:$0xff]   ;;  %v5440_v13 = vld [vmem:[%s7313_s1 + $0x34] ss:$8 sps:$4 sm:$0xff]  }
   0x7   :  { %v6146_v14 = vld [vmem:[%s7315_s3 + $0x34] ss:$8 sps:$4 sm:$0xff]   ;;  %v5444_v15 = vld [vmem:[%s7313_s1 + $0x30] ss:$8 sps:$4 sm:$0xff]   ;;  %vm130_vm0 = vcmask 523264  }
   0x8   :  { %v6154_v16 = vld [vmem:[%s7315_s3 + $0x30] ss:$8 sps:$4 sm:$0xff]   ;;  %v5446_v17 = vld [vmem:[%s7330_s25] sm:$0xff]  }
   0x9   :  { %137 = vmatpush1.bf16.msra.mxu0 %v5432_v7  ;;  %223 = vmatpush1.bf16.msra.mxu1 %v6119_v8 }
   0xa   :  { %138 = vmatprep.subr.bf16.mxu0 %v5434_v9  ;;  %224 = vmatprep.subr.bf16.mxu1 %v6128_v10 }
   0xd   :  { %139 = vmatpush1.bf16.msra.mxu0 %v5438_v11  ;;  %225 = vmatpush1.bf16.msra.mxu1 %v6136_v12 }
   0xe   :  { %140 = vmatprep.subr.bf16.mxu0 %v5440_v13  ;;  %226 = vmatprep.subr.bf16.mxu1 %v6146_v14 }
  0x11   :  { %141 = vmatpush1.bf16.msra.mxu0 %v5444_v15  ;;  %227 = vmatpush1.bf16.msra.mxu1 %v6154_v16 }
  0x12   :  { %346 = vmatprep.subr.bf16.mxu0 %v6091_v1  ;;  %477 = vmatprep.subr.bf16.mxu1 %v6091_v1 }
  0x14   :  { %5088 = vmatmul.mubr.msk.bf16.vlgmr.msra.gmra.mrb[0].mxu0 %vm130_vm0, %v5446_v17  ;;  %253 = vmatmul.mubr.bf16.vlgmr.msra.gmra.mrb[0].mxu1 %v5985_v2 }
  0x15   :  { %347 = vmatpush1.bf16.msra.mxu0 %v6101_v4  ;;  %378 = vmatprep.mubr.bf16.mxu0 %v5985_v2 }
  0x16   :  { %348 = vmatprep.subr.bf16.mxu0 %v6111_v6  ;;  %478 = vmatpush1.bf16.msra.mxu1 %v6101_v4 }
  0x17   :  { %479 = vmatprep.subr.bf16.mxu1 %v6111_v6  ;;  %509 = vmatprep.mubr.bf16.mxu1 %v5985_v2 }
  0x19   :  { %349 = vmatpush1.bf16.msra.mxu0 %v6119_v8 }
  0x1a   :  { %350 = vmatprep.subr.bf16.mxu0 %v6128_v10  ;;  %480 = vmatpush1.bf16.msra.mxu1 %v6119_v8 }
  0x1b   :  { %481 = vmatprep.subr.bf16.mxu1 %v6128_v10 }
  0x1d   :  { %351 = vmatpush1.bf16.msra.mxu0 %v6136_v12 }
  0x1e   :  { %23 = vsyncpa [#allocation5], 0  ;;  %352 = vmatprep.subr.bf16.mxu0 %v6146_v14  ;;  %482 = vmatpush1.bf16.msra.mxu1 %v6136_v12  ;;  %v75_v18 = vlaneseq  ;;  %v65_v21 = vld [vmem:[%s7314_s2] sm:$0x3]  ;;  %s5986_s2 = smov 64   ;;  %vm340_vm1 = vcmask 1041409  }
  0x1f   :  { %483 = vmatprep.subr.bf16.mxu1 %v6146_v14  ;;  %vm1284_vm2 = vcmask 1042434   ;;  %vm1338_vm3 = vcmask 1047559   ;;  %vm1297_vm4 = vcmask 1043459   ;;  %vm1329_vm5 = vcmask 1046534   ;;  %s5989_s17 = smov 112   ;;  %s5992_s18 = smov 80  }
  0x20   :  { %v6184_v19 = vshrl.u32 %v75_v18, 7  ;;  %vm1310_vm6 = vcmask 1044484   ;;  %vm1320_vm7 = vcmask 1045509   ;;  %vm1279_vm8 = vcmask 261120   ;;  %s5994_s24 = smov 32   ;;  %s5995_s25 = smov 48  }
  0x21   :  { %353 = vmatpush1.bf16.msra.mxu0 %v6154_v16  ;;  %vm1356_vm9 = vcmask 1040384   ;;  %vm1693_vm10 = vcmask 1041408   ;;  %vm1696_vm11 = vcmask 1042432   ;;  %vm1699_vm12 = vcmask 1043456  }
  0x22   :  { %484 = vmatpush1.bf16.msra.mxu1 %v6154_v16  ;;  %611 = vmatprep.subr.bf16.mxu0 %v6091_v1  ;;  %v6187_v20 = vsub.s32 1, %v6184_v19  ;;  %v6202_v38 = vsub.s32 0, %v6184_v19  ;;  %vm1702_vm13 = vcmask 1044480   ;;  %vm1705_vm14 = vcmask 1045504  }
  0x23   :  { %745 = vmatprep.subr.bf16.mxu1 %v6091_v1  ;;  %vm1708_vm15 = vcmask 1046528  }
  0x24   :  { %v82_v24 = vrot.slane %v65_v21, %v6187_v20  ;;  %v78_v39 = vrot.slane %v65_v21, %v6202_v38 }
  0xe7   :  { %v168_v22 = vpop.f32.mrb[0].mxu0  ;;  %v254_v23 = vpop.f32.mrb[0].mxu1 }
  0xe8   :  { %v170_v25 = vpop.f32.mrb[1].mxu0  ;;  %v256_v26 = vpop.f32.mrb[1].mxu1  ;;  %v263_v40 = vrot.slane %v254_v23, 1  ;;  %v6207_v42 = vadd.f32 %v168_v22, %v78_v39 }
  0xe9   :  { %v264_v27 = vrot.slane %v256_v26, 1  ;;  %v172_v28 = vpop.f32.mrb[2].mxu0  ;;  %v258_v29 = vpop.f32.mrb[2].mxu1  ;;  %v6195_v33 = vadd.f32 %v170_v25, %v82_v24 }
  0xea   :  { %v174_v30 = vpop.f32.mrb[3].mxu0  ;;  %v259_v31 = vpop.f32.mrb[3].mxu1  ;;  %v6205_v41 = vadd.f32 %v172_v28, %v78_v39  ;;  %v269_v44 = vadd.f32 %v254_v23, %v6207_v42 }
  0xeb   :  { %v6193_v32 = vadd.f32 %v174_v30, %v82_v24  ;;  %v270_v35 = vadd.f32 %v256_v26, %v6195_v33 }
  0xec   :  { %v271_v43 = vadd.f32 %v263_v40, %v6205_v41  ;;  %v5097_v46 = vmul.f32 -1.442695, %v269_v44 }
  0xed   :  { %v272_v34 = vadd.f32 %v264_v27, %v6193_v32  ;;  %v5098_v5 = vmul.f32 -1.442695, %v270_v35 }
  0xee   :  { %v5099_v45 = vmul.f32 -1.442695, %v271_v43 }
  0xef   :  { %5503 = vtanh.f32 %v272_v34  ;;  %v5100_v3 = vmul.f32 -1.442695, %v272_v34 }
  0xf0   :  { %5505 = vtanh.f32 %v270_v35 }
  0xf1   :  { %5507 = vpow2.f32 %v5099_v45 }
  0xf2   :  { %5509 = vpow2.f32 %v5097_v46 }
  0xf9   :  { %v5504_v36 = vpop.eup %5503 }
  0xfa   :  { %305 = vrot.lane.b32.xlu0 %v5504_v36, %s5986_s2  ;;  %v5506_v37 = vpop.eup %5505 }
  0xfb   :  { %v5508_v47 = vpop.eup %5507 }
  0xfc   :  { %v287_v48 = vadd.f32 1.0, %v5508_v47  ;;  %v5510_v49 = vpop.eup %5509 }
  0xfd   :  { %v285_v50 = vadd.f32 1.0, %v5510_v49 }
  0xfe   :  { %303 = vrot.lane.b32.xlu0 %v5506_v37, %s5986_s2  ;;  %5511 = vrcp.f32 %v287_v48 }
  0xff   :  { %5513 = vrcp.f32 %v285_v50 }
 0x108   :  { %v5512_v51 = vpop.eup %5511 }
 0x109   :  { %v5514_v54 = vpop.eup %5513  ;;  %v300_v57 = vmul.f32 0.0, %v5512_v51 }
 0x10a   :  { %v299_v60 = vmul.f32 0.0, %v5514_v54 }
 0x16c   :  { %v306_v52 = vpop.permute.xlu0 %305 }
 0x16d   :  { %v310_v53 = vmul.f32 %v5512_v51, %v306_v52 }
 0x16f   :  { %315 = vrot.lane.b32.xlu1 %v310_v53, %s5986_s2 }
 0x170   :  { %v304_v55 = vpop.permute.xlu0 %303 }
 0x171   :  { %v309_v56 = vmul.f32 %v5514_v54, %v304_v55 }
 0x173   :  { %313 = vrot.lane.b32.xlu1 %v309_v56, %s5986_s2 }
 0x1e1   :  { %v316_v58 = vpop.permute.xlu1 %315 }
 0x1e2   :  { %v6213_v59 = vadd.f32 %v316_v58, %v300_v57 }
 0x1e4   :  { %5515 = vtanh.f32 %v6213_v59 }
 0x1e5   :  { %v314_v61 = vpop.permute.xlu1 %313 }
 0x1e6   :  { %v6216_v62 = vadd.f32 %v314_v61, %v299_v60  ;;  %v428_v61 = vrot.slane %v6213_v59, 7 }
 0x1e8   :  { %5517 = vtanh.f32 %v6216_v62 }
 0x1e9   :  { %5519 = vpow2.f32 %v5100_v3 }
 0x1ea   :  { %5521 = vpow2.f32 %v5098_v5  ;;  %v427_v5 = vrot.slane %v6216_v62, 7 }
 0x1ee   :  { %v5516_v63 = vpop.eup %5515 }
 0x1ef   :  { %327 = vrot.lane.b32.xlu0 %v5516_v63, %s5986_s2 }
 0x1f2   :  { %v5518_v0 = vpop.eup %5517 }
 0x1f3   :  { %325 = vrot.lane.b32.xlu1 %v5518_v0, %s5986_s2  ;;  %v5520_v7 = vpop.eup %5519 }
 0x1f4   :  { %v288_v9 = vadd.f32 1.0, %v5520_v7  ;;  %v5522_v11 = vpop.eup %5521 }
 0x1f5   :  { %v286_v13 = vadd.f32 1.0, %v5522_v11 }
 0x1f6   :  { %5523 = vrcp.f32 %v288_v9 }
 0x1f7   :  { %5525 = vrcp.f32 %v286_v13 }
 0x200   :  { %v5524_v15 = vpop.eup %5523 }
 0x201   :  { %v5526_v22 = vpop.eup %5525 }
 0x261   :  { %v328_v17 = vpop.permute.xlu0 %327 }
 0x262   :  { %v6221_v18 = vmul.f32 %v5524_v15, %v328_v17 }
 0x264   :  { %v334_v21 = vpack.c.bf16 %v6221_v18, %v6221_v18 }
 0x265   :  { %v326_v23 = vpop.permute.xlu1 %325 }
 0x266   :  { %v338_v24 = vunpack.c.l.b16 %v334_v21  ;;  %v6225_v25 = vmul.f32 %v5526_v22, %v326_v23 }
 0x268   :  { %v333_v26 = vpack.c.bf16 %v6225_v25, %v6225_v25  ;;  %v339_v27 = vrot.slane %v338_v24, 7 }
 0x26a   :  { %v337_v28 = vunpack.c.l.b16 %v333_v26 }
 0x26c   :  { %v341_v29 = vsel %vm340_vm1, %v339_v27, %v337_v28 }
 0x26d   :  { %v342_v30 = vpack.c.b16 %v341_v29, %v341_v29 }
 0x26f   :  { %5101 = vmatmul.mubr.msk.bf16.vlgmr.msra.gmra.mrb[4].mxu0 %vm130_vm0, %v342_v30 }
 0x270   :  { %612 = vmatpush1.bf16.msra.mxu0 %v6101_v4  ;;  %643 = vmatprep.mubr.bf16.mxu0 %v5985_v2 }
 0x271   :  { %613 = vmatprep.subr.bf16.mxu0 %v6111_v6 }
 0x274   :  { %614 = vmatpush1.bf16.msra.mxu0 %v6119_v8 }
 0x275   :  { %615 = vmatprep.subr.bf16.mxu0 %v6128_v10 }
 0x278   :  { %616 = vmatpush1.bf16.msra.mxu0 %v6136_v12 }
 0x279   :  { %617 = vmatprep.subr.bf16.mxu0 %v6146_v14 }
 0x27c   :  { %618 = vmatpush1.bf16.msra.mxu0 %v6154_v16 }
 0x27d   :  { %879 = vmatprep.subr.bf16.mxu0 %v6091_v1 }
 0x342   :  { %v380_v31 = vpop.f32.mrb[4].mxu0 }
 0x343   :  { %v382_v34 = vpop.f32.mrb[5].mxu0  ;;  %v397_v45 = vadd.f32 %v380_v31, %v6205_v41  ;;  %v389_v46 = vrot.slane %v380_v31, 7 }
 0x344   :  { %v390_v35 = vrot.slane %v382_v34, 7  ;;  %v398_v36 = vadd.f32 %v382_v34, %v6193_v32  ;;  %v384_v37 = vpop.f32.mrb[6].mxu0 }
 0x345   :  { %v385_v39 = vpop.f32.mrb[7].mxu0  ;;  %v5104_v47 = vmul.f32 -1.442695, %v397_v45  ;;  %v395_v48 = vadd.f32 %v389_v46, %v6207_v42 }
 0x346   :  { %5527 = vtanh.f32 %v398_v36  ;;  %v396_v40 = vadd.f32 %v390_v35, %v6195_v33  ;;  %v5105_v59 = vmul.f32 -1.442695, %v398_v36 }
 0x347   :  { %v5102_v49 = vmul.f32 -1.442695, %v395_v48 }
 0x348   :  { %5529 = vtanh.f32 %v396_v40  ;;  %v5103_v17 = vmul.f32 -1.442695, %v396_v40 }
 0x349   :  { %5531 = vpow2.f32 %v5104_v47 }
 0x34a   :  { %5533 = vpow2.f32 %v5102_v49 }
 0x350   :  { %v5528_v43 = vpop.eup %5527 }
 0x351   :  { %437 = vrot.lane.b32.xlu1 %v5528_v43, %s5986_s2 }
 0x352   :  { %v5530_v44 = vpop.eup %5529 }
 0x353   :  { %435 = vrot.lane.b32.xlu0 %v5530_v44, %s5986_s2  ;;  %v5532_v50 = vpop.eup %5531 }
 0x354   :  { %v413_v51 = vadd.f32 1.0, %v5532_v50  ;;  %v5534_v52 = vpop.eup %5533 }
 0x355   :  { %v411_v53 = vadd.f32 1.0, %v5534_v52 }
 0x356   :  { %5535 = vrcp.f32 %v413_v51 }
 0x357   :  { %5537 = vrcp.f32 %v411_v53 }
 0x360   :  { %v5536_v54 = vpop.eup %5535 }
 0x361   :  { %v5538_v57 = vpop.eup %5537  ;;  %v432_v63 = vmul.f32 %v5536_v54, %v428_v61 }
 0x362   :  { %v431_v7 = vmul.f32 %v5538_v57, %v427_v5 }
 0x3c3   :  { %v438_v55 = vpop.permute.xlu1 %437 }
 0x3c4   :  { %v442_v56 = vmul.f32 %v5536_v54, %v438_v55 }
 0x3c5   :  { %v436_v58 = vpop.permute.xlu0 %435 }
 0x3c6   :  { %447 = vrot.lane.b32.xlu1 %v442_v56, %s5986_s2  ;;  %v441_v60 = vmul.f32 %v5538_v57, %v436_v58 }
 0x3c8   :  { %445 = vrot.lane.b32.xlu0 %v441_v60, %s5986_s2 }
 0x438   :  { %v448_v0 = vpop.permute.xlu1 %447 }
 0x439   :  { %v6249_v3 = vadd.f32 %v448_v0, %v432_v63 }
 0x43a   :  { %v446_v9 = vpop.permute.xlu0 %445 }
 0x43b   :  { %5539 = vtanh.f32 %v6249_v3  ;;  %v6253_v11 = vadd.f32 %v446_v9, %v431_v7 }
 0x43d   :  { %5541 = vtanh.f32 %v6253_v11 }
 0x43e   :  { %5543 = vpow2.f32 %v5105_v59 }
 0x43f   :  { %5545 = vpow2.f32 %v5103_v17 }
 0x445   :  { %v5540_v13 = vpop.eup %5539 }
 0x446   :  { %459 = vrot.lane.b32.xlu1 %v5540_v13, %s5986_s2 }
 0x447   :  { %v5542_v15 = vpop.eup %5541 }
 0x448   :  { %457 = vrot.lane.b32.xlu0 %v5542_v15, %s5986_s2  ;;  %v5544_v21 = vpop.eup %5543 }
 0x449   :  { %v414_v62 = vadd.f32 1.0, %v5544_v21  ;;  %v5546_v22 = vpop.eup %5545 }
 0x44a   :  { %v412_v23 = vadd.f32 1.0, %v5546_v22 }
 0x44b   :  { %5547 = vrcp.f32 %v414_v62 }
 0x44c   :  { %5549 = vrcp.f32 %v412_v23 }
 0x455   :  { %v5548_v24 = vpop.eup %5547 }
 0x456   :  { %v5550_v29 = vpop.eup %5549 }
 0x4b8   :  { %v460_v26 = vpop.permute.xlu1 %459 }
 0x4b9   :  { %v464_v27 = vmul.f32 %v5548_v24, %v460_v26  ;;  %v560_v24 = vrot.slane %v6253_v11, 7 }
 0x4ba   :  { %v458_v30 = vpop.permute.xlu0 %457 }
 0x4bb   :  { %v1283_v28 = vrot.slane %v464_v27, 7  ;;  %v463_v31 = vmul.f32 %v5550_v29, %v458_v30  ;;  %v466_v34 = vpack.c.bf16 %v464_v27, %v464_v27  ;;  %v1342_v35 = vrot.slane %v464_v27, 2 }
 0x4bc   :  { %v561_v29 = vrot.slane %v6249_v3, 7 }
 0x4bd   :  { %v465_v36 = vpack.c.bf16 %v463_v31, %v463_v31  ;;  %v6259_v37 = vsel %vm1284_vm2, %v1283_v28, %v463_v31  ;;  %v1341_v39 = vrot.slane %v463_v31, 3  ;;  %v470_v44 = vunpack.c.l.b16 %v466_v34 }
 0x4bf   :  { %v469_v40 = vunpack.c.l.b16 %v465_v36  ;;  %v6262_v43 = vsel %vm1338_vm3, %v1342_v35, %v1341_v39 }
 0x4c1   :  { %v471_v45 = vrot.slane %v469_v40, 1 }
 0x4c3   :  { %v472_v46 = vsel %vm340_vm1, %v470_v44, %v471_v45 }
 0x4c4   :  { %v473_v47 = vpack.c.b16 %v472_v46, %v472_v46 }
 0x4c6   :  { %5106 = vmatmul.mubr.msk.bf16.vlgmr.msra.gmra.mrb[4].mxu1 %vm130_vm0, %v473_v47 }
 0x4c7   :  { %746 = vmatpush1.bf16.msra.mxu1 %v6101_v4  ;;  %777 = vmatprep.mubr.bf16.mxu1 %v5985_v2 }
 0x4c8   :  { %747 = vmatprep.subr.bf16.mxu1 %v6111_v6 }
 0x4cb   :  { %748 = vmatpush1.bf16.msra.mxu1 %v6119_v8 }
 0x4cc   :  { %749 = vmatprep.subr.bf16.mxu1 %v6128_v10 }
 0x4cf   :  { %750 = vmatpush1.bf16.msra.mxu1 %v6136_v12 }
 0x4d0   :  { %751 = vmatprep.subr.bf16.mxu1 %v6146_v14 }
 0x4d3   :  { %752 = vmatpush1.bf16.msra.mxu1 %v6154_v16 }
 0x4d4   :  { %1013 = vmatprep.subr.bf16.mxu1 %v6091_v1 }
 0x599   :  { %v511_v48 = vpop.f32.mrb[4].mxu1 }
 0x59a   :  { %v513_v49 = vpop.f32.mrb[5].mxu1  ;;  %v520_v58 = vrot.slane %v511_v48, 6  ;;  %v522_v61 = vrot.slane %v511_v48, 7 }
 0x59b   :  { %v521_v50 = vrot.slane %v513_v49, 6  ;;  %v515_v51 = vpop.f32.mrb[6].mxu1  ;;  %v523_v52 = vrot.slane %v513_v49, 7 }
 0x59c   :  { %v516_v53 = vpop.f32.mrb[7].mxu1  ;;  %v528_v60 = vadd.f32 %v520_v58, %v6207_v42  ;;  %v530_v0 = vadd.f32 %v522_v61, %v6205_v41 }
 0x59d   :  { %v529_v54 = vadd.f32 %v521_v50, %v6195_v33  ;;  %v531_v55 = vadd.f32 %v523_v52, %v6193_v32 }
 0x59e   :  { %v5107_v63 = vmul.f32 -1.442695, %v528_v60  ;;  %v5109_v5 = vmul.f32 -1.442695, %v530_v0 }
 0x59f   :  { %5551 = vtanh.f32 %v529_v54  ;;  %v5108_v11 = vmul.f32 -1.442695, %v529_v54  ;;  %v5110_v39 = vmul.f32 -1.442695, %v531_v55 }
 0x5a0   :  { %5553 = vtanh.f32 %v531_v55 }
 0x5a1   :  { %5555 = vpow2.f32 %v5107_v63 }
 0x5a2   :  { %5557 = vpow2.f32 %v5109_v5 }
 0x5a9   :  { %v5552_v56 = vpop.eup %5551 }
 0x5aa   :  { %568 = vrot.lane.b32.xlu0 %v5552_v56, %s5986_s2  ;;  %v5554_v57 = vpop.eup %5553 }
 0x5ab   :  { %570 = vrot.lane.b32.xlu1 %v5554_v57, %s5986_s2  ;;  %v5556_v7 = vpop.eup %5555 }
 0x5ac   :  { %v544_v9 = vadd.f32 1.0, %v5556_v7  ;;  %v5558_v13 = vpop.eup %5557 }
 0x5ad   :  { %v546_v15 = vadd.f32 1.0, %v5558_v13 }
 0x5ae   :  { %5559 = vrcp.f32 %v544_v9 }
 0x5af   :  { %5561 = vrcp.f32 %v546_v15 }
 0x5b8   :  { %v5560_v59 = vpop.eup %5559 }
 0x5b9   :  { %v5562_v62 = vpop.eup %5561  ;;  %v564_v26 = vmul.f32 %v5560_v59, %v560_v24 }
 0x5ba   :  { %v565_v30 = vmul.f32 %v5562_v62, %v561_v29 }
 0x61c   :  { %v569_v17 = vpop.permute.xlu0 %568 }
 0x61d   :  { %v574_v21 = vmul.f32 %v5560_v59, %v569_v17  ;;  %v571_v22 = vpop.permute.xlu1 %570 }
 0x61e   :  { %v575_v23 = vmul.f32 %v5562_v62, %v571_v22 }
 0x61f   :  { %578 = vrot.lane.b32.xlu0 %v574_v21, %s5986_s2 }
 0x620   :  { %580 = vrot.lane.b32.xlu1 %v575_v23, %s5986_s2 }
 0x691   :  { %v579_v27 = vpop.permute.xlu0 %578 }
 0x692   :  { %v6284_v28 = vadd.f32 %v579_v27, %v564_v26  ;;  %v581_v31 = vpop.permute.xlu1 %580 }
 0x693   :  { %v6288_v34 = vadd.f32 %v581_v31, %v565_v30 }
 0x694   :  { %5563 = vtanh.f32 %v6284_v28 }
 0x695   :  { %5565 = vtanh.f32 %v6288_v34 }
 0x696   :  { %5567 = vpow2.f32 %v5108_v11 }
 0x697   :  { %5569 = vpow2.f32 %v5110_v39 }
 0x69e   :  { %v5564_v35 = vpop.eup %5563 }
 0x69f   :  { %590 = vrot.lane.b32.xlu0 %v5564_v35, %s5986_s2  ;;  %v5566_v36 = vpop.eup %5565 }
 0x6a0   :  { %592 = vrot.lane.b32.xlu1 %v5566_v36, %s5986_s2  ;;  %v5568_v40 = vpop.eup %5567 }
 0x6a1   :  { %v545_v3 = vadd.f32 1.0, %v5568_v40  ;;  %v5570_v44 = vpop.eup %5569 }
 0x6a2   :  { %v547_v45 = vadd.f32 1.0, %v5570_v44 }
 0x6a3   :  { %5571 = vrcp.f32 %v545_v3 }
 0x6a4   :  { %5573 = vrcp.f32 %v547_v45 }
 0x6ad   :  { %v5572_v46 = vpop.eup %5571 }
 0x6ae   :  { %v5574_v50 = vpop.eup %5573 }
 0x711   :  { %v591_v47 = vpop.permute.xlu0 %590 }
 0x712   :  { %v596_v48 = vmul.f32 %v5572_v46, %v591_v47  ;;  %v593_v51 = vpop.permute.xlu1 %592 }
 0x713   :  { %v597_v52 = vmul.f32 %v5574_v50, %v593_v51 }
 0x714   :  { %v598_v49 = vpack.c.bf16 %v596_v48, %v596_v48  ;;  %v1332_v56 = vrot.slane %v596_v48, 5 }
 0x715   :  { %v599_v54 = vpack.c.bf16 %v597_v52, %v597_v52  ;;  %v1296_v55 = vrot.slane %v597_v52, 7  ;;  %v1333_v57 = vrot.slane %v597_v52, 4  ;;  %v695_v52 = vrot.slane %v6288_v34, 7 }
 0x716   :  { %v602_v53 = vunpack.c.l.b16 %v598_v49 }
 0x717   :  { %v603_v58 = vunpack.c.l.b16 %v599_v54  ;;  %v6294_v61 = vsel %vm1297_vm4, %v1296_v55, %v596_v48  ;;  %v6297_v63 = vsel %vm1329_vm5, %v1333_v57, %v1332_v56  ;;  %v694_v48 = vrot.slane %v6284_v28, 7 }
 0x718   :  { %v604_v60 = vrot.slane %v602_v53, 2 }
 0x719   :  { %v605_v0 = vrot.slane %v603_v58, 1 }
 0x71b   :  { %v606_v5 = vsel %vm340_vm1, %v605_v0, %v604_v60 }
 0x71c   :  { %v607_v7 = vpack.c.b16 %v606_v5, %v606_v5 }
 0x71e   :  { %5111 = vmatmul.mubr.msk.bf16.vlgmr.msra.gmra.mrb[8].mxu0 %vm130_vm0, %v607_v7 }
 0x71f   :  { %880 = vmatpush1.bf16.msra.mxu0 %v6101_v4  ;;  %911 = vmatprep.mubr.bf16.mxu0 %v5985_v2 }
 0x720   :  { %881 = vmatprep.subr.bf16.mxu0 %v6111_v6 }
 0x723   :  { %882 = vmatpush1.bf16.msra.mxu0 %v6119_v8 }
 0x724   :  { %883 = vmatprep.subr.bf16.mxu0 %v6128_v10 }
 0x727   :  { %884 = vmatpush1.bf16.msra.mxu0 %v6136_v12 }
 0x728   :  { %885 = vmatprep.subr.bf16.mxu0 %v6146_v14 }
 0x72b   :  { %886 = vmatpush1.bf16.msra.mxu0 %v6154_v16 }
 0x72c   :  { %1147 = vmatprep.subr.bf16.mxu0 %v6091_v1 }
 0x7f1   :  { %v645_v9 = vpop.f32.mrb[8].mxu0 }
 0x7f2   :  { %v647_v13 = vpop.f32.mrb[9].mxu0  ;;  %v654_v26 = vrot.slane %v645_v9, 5  ;;  %v656_v27 = vrot.slane %v645_v9, 6 }
 0x7f3   :  { %v655_v15 = vrot.slane %v647_v13, 5  ;;  %v649_v59 = vpop.f32.mrb[10].mxu0  ;;  %v657_v17 = vrot.slane %v647_v13, 6 }
 0x7f4   :  { %v650_v21 = vpop.f32.mrb[11].mxu0  ;;  %v662_v1 = vadd.f32 %v654_v26, %v6207_v42  ;;  %v664_v30 = vadd.f32 %v656_v27, %v6205_v41 }
 0x7f5   :  { %v663_v62 = vadd.f32 %v655_v15, %v6195_v33  ;;  %v665_v22 = vadd.f32 %v657_v17, %v6193_v32 }
 0x7f6   :  { %v5112_v29 = vmul.f32 -1.442695, %v662_v1  ;;  %v5114_v31 = vmul.f32 -1.442695, %v664_v30 }
 0x7f7   :  { %5575 = vtanh.f32 %v663_v62  ;;  %v5113_v28 = vmul.f32 -1.442695, %v663_v62  ;;  %v5115_v58 = vmul.f32 -1.442695, %v665_v22 }
 0x7f8   :  { %5577 = vtanh.f32 %v665_v22 }
 0x7f9   :  { %5579 = vpow2.f32 %v5112_v29 }
 0x7fa   :  { %5581 = vpow2.f32 %v5114_v31 }
 0x801   :  { %v5576_v23 = vpop.eup %5575 }
 0x802   :  { %702 = vrot.lane.b32.xlu0 %v5576_v23, %s5986_s2  ;;  %v5578_v24 = vpop.eup %5577 }
 0x803   :  { %704 = vrot.lane.b32.xlu1 %v5578_v24, %s5986_s2  ;;  %v5580_v35 = vpop.eup %5579 }
 0x804   :  { %v678_v36 = vadd.f32 1.0, %v5580_v35  ;;  %v5582_v11 = vpop.eup %5581 }
 0x805   :  { %v680_v39 = vadd.f32 1.0, %v5582_v11 }
 0x806   :  { %5583 = vrcp.f32 %v678_v36 }
 0x807   :  { %5585 = vrcp.f32 %v680_v39 }
 0x810   :  { %v5584_v40 = vpop.eup %5583 }
 0x811   :  { %v5586_v45 = vpop.eup %5585  ;;  %v698_v49 = vmul.f32 %v5584_v40, %v694_v48 }
 0x812   :  { %v699_v53 = vmul.f32 %v5586_v45, %v695_v52 }
 0x874   :  { %v703_v3 = vpop.permute.xlu0 %702 }
 0x875   :  { %v708_v44 = vmul.f32 %v5584_v40, %v703_v3  ;;  %v705_v46 = vpop.permute.xlu1 %704 }
 0x876   :  { %v709_v47 = vmul.f32 %v5586_v45, %v705_v46 }
 0x877   :  { %712 = vrot.lane.b32.xlu0 %v708_v44, %s5986_s2 }
 0x878   :  { %714 = vrot.lane.b32.xlu1 %v709_v47, %s5986_s2 }
 0x8e9   :  { %v713_v50 = vpop.permute.xlu0 %712 }
 0x8ea   :  { %v6319_v51 = vadd.f32 %v713_v50, %v698_v49  ;;  %v715_v56 = vpop.permute.xlu1 %714 }
 0x8eb   :  { %v6323_v54 = vadd.f32 %v715_v56, %v699_v53 }
 0x8ec   :  { %5587 = vtanh.f32 %v6319_v51 }
 0x8ed   :  { %5589 = vtanh.f32 %v6323_v54 }
 0x8ee   :  { %5591 = vpow2.f32 %v5113_v28 }
 0x8ef   :  { %5593 = vpow2.f32 %v5115_v58 }
 0x8f6   :  { %v5588_v55 = vpop.eup %5587 }
 0x8f7   :  { %724 = vrot.lane.b32.xlu0 %v5588_v55, %s5986_s2  ;;  %v5590_v57 = vpop.eup %5589 }
 0x8f8   :  { %726 = vrot.lane.b32.xlu1 %v5590_v57, %s5986_s2  ;;  %v5592_v60 = vpop.eup %5591 }
 0x8f9   :  { %v679_v34 = vadd.f32 1.0, %v5592_v60  ;;  %v5594_v0 = vpop.eup %5593 }
 0x8fa   :  { %v681_v5 = vadd.f32 1.0, %v5594_v0 }
 0x8fb   :  { %5595 = vrcp.f32 %v679_v34  ;;  %v828_v34 = vrot.slane %v6319_v51, 7 }
 0x8fc   :  { %5597 = vrcp.f32 %v681_v5 }
 0x905   :  { %v5596_v7 = vpop.eup %5595 }
 0x906   :  { %v5598_v59 = vpop.eup %5597 }
 0x969   :  { %v725_v9 = vpop.permute.xlu0 %724 }
 0x96a   :  { %v730_v13 = vmul.f32 %v5596_v7, %v725_v9  ;;  %v727_v17 = vpop.permute.xlu1 %726  ;;  %v829_v9 = vrot.slane %v6323_v54, 7 }
 0x96b   :  { %v731_v21 = vmul.f32 %v5598_v59, %v727_v17 }
 0x96c   :  { %v732_v15 = vpack.c.bf16 %v730_v13, %v730_v13  ;;  %v1323_v24 = vrot.slane %v730_v13, 7 }
 0x96d   :  { %v733_v62 = vpack.c.bf16 %v731_v21, %v731_v21  ;;  %v1309_v22 = vrot.slane %v731_v21, 7  ;;  %v1324_v26 = vrot.slane %v731_v21, 6 }
 0x96e   :  { %v736_v23 = vunpack.c.l.b16 %v732_v15 }
 0x96f   :  { %v737_v1 = vunpack.c.l.b16 %v733_v62  ;;  %v6329_v29 = vsel %vm1310_vm6, %v1309_v22, %v730_v13  ;;  %v6332_v30 = vsel %vm1320_vm7, %v1324_v26, %v1323_v24 }
 0x970   :  { %v738_v27 = vrot.slane %v736_v23, 3 }
 0x971   :  { %v739_v31 = vrot.slane %v737_v1, 2 }
 0x973   :  { %v740_v35 = vsel %vm340_vm1, %v739_v31, %v738_v27 }
 0x974   :  { %v741_v36 = vpack.c.b16 %v740_v35, %v740_v35 }
 0x976   :  { %5116 = vmatmul.mubr.msk.bf16.vlgmr.msra.gmra.mrb[8].mxu1 %vm130_vm0, %v741_v36 }
 0x977   :  { %1014 = vmatpush1.bf16.msra.mxu1 %v6101_v4  ;;  %1045 = vmatprep.mubr.bf16.mxu1 %v5985_v2 }
 0x978   :  { %1015 = vmatprep.subr.bf16.mxu1 %v6111_v6 }
 0x97b   :  { %1016 = vmatpush1.bf16.msra.mxu1 %v6119_v8 }
 0x97c   :  { %1017 = vmatprep.subr.bf16.mxu1 %v6128_v10 }
 0x97f   :  { %1018 = vmatpush1.bf16.msra.mxu1 %v6136_v12 }
 0x980   :  { %1019 = vmatprep.subr.bf16.mxu1 %v6146_v14 }
 0x983   :  { %1020 = vmatpush1.bf16.msra.mxu1 %v6154_v16 }
 0xa49   :  { %v779_v11 = vpop.f32.mrb[8].mxu1 }
 0xa4a   :  { %v781_v39 = vpop.f32.mrb[9].mxu1  ;;  %v788_v12 = vrot.slane %v779_v11, 4  ;;  %v790_v16 = vrot.slane %v779_v11, 5 }
 0xa4b   :  { %v789_v40 = vrot.slane %v781_v39, 4  ;;  %v783_v3 = vpop.f32.mrb[10].mxu1  ;;  %v791_v44 = vrot.slane %v781_v39, 5 }
 0xa4c   :  { %v784_v4 = vpop.f32.mrb[11].mxu1  ;;  %v796_v14 = vadd.f32 %v788_v12, %v6207_v42  ;;  %v798_v47 = vadd.f32 %v790_v16, %v6205_v41 }
 0xa4d   :  { %v797_v45 = vadd.f32 %v789_v40, %v6195_v33  ;;  %v799_v6 = vadd.f32 %v791_v44, %v6193_v32 }
 0xa4e   :  { %v5117_v46 = vmul.f32 -1.442695, %v796_v14  ;;  %v5119_v48 = vmul.f32 -1.442695, %v798_v47  ;;  %v5923_v47 = vld [vmem:[%s7315_s3] ss:$8 sps:$4 sm:$0xff]  }
 0xa4f   :  { %5599 = vtanh.f32 %v797_v45  ;;  %v5118_v51 = vmul.f32 -1.442695, %v797_v45  ;;  %v5120_v23 = vmul.f32 -1.442695, %v799_v6 }
 0xa50   :  { %5601 = vtanh.f32 %v799_v6 }
 0xa51   :  { %5603 = vpow2.f32 %v5117_v46 }
 0xa52   :  { %5605 = vpow2.f32 %v5119_v48  ;;  %v5926_v48 = vld [vmem:[%s7315_s3 + $0x24] ss:$8 sps:$4 sm:$0xff]  }
 0xa59   :  { %v5600_v8 = vpop.eup %5599 }
 0xa5a   :  { %836 = vrot.lane.b32.xlu0 %v5600_v8, %s5986_s2  ;;  %v5602_v10 = vpop.eup %5601 }
 0xa5b   :  { %838 = vrot.lane.b32.xlu1 %v5602_v10, %s5986_s2  ;;  %v5604_v49 = vpop.eup %5603 }
 0xa5c   :  { %v812_v50 = vadd.f32 1.0, %v5604_v49  ;;  %v5606_v52 = vpop.eup %5605  ;;  %v5927_v49 = vld [vmem:[%s7315_s3 + $0x20] ss:$8 sps:$4 sm:$0xff]  }
 0xa5d   :  { %v814_v53 = vadd.f32 1.0, %v5606_v52  ;;  %v5929_v52 = vld [vmem:[%s7315_s3 + $0x30] ss:$8 sps:$4 sm:$0xff]  }
 0xa5e   :  { %5607 = vrcp.f32 %v812_v50  ;;  %v5928_v50 = vld [vmem:[%s7315_s3 + $0x34] ss:$8 sps:$4 sm:$0xff]  }
 0xa5f   :  { %5609 = vrcp.f32 %v814_v53 }
 0xa68   :  { %v5608_v56 = vpop.eup %5607 }
 0xa69   :  { %v5610_v28 = vpop.eup %5609  ;;  %v832_v0 = vmul.f32 %v5608_v56, %v828_v34 }
 0xa6a   :  { %v833_v13 = vmul.f32 %v5610_v28, %v829_v9 }
 0xacc   :  { %v837_v55 = vpop.permute.xlu0 %836 }
 0xacd   :  { %v842_v57 = vmul.f32 %v5608_v56, %v837_v55  ;;  %v839_v58 = vpop.permute.xlu1 %838 }
 0xace   :  { %v843_v60 = vmul.f32 %v5610_v28, %v839_v58 }
 0xacf   :  { %846 = vrot.lane.b32.xlu0 %v842_v57, %s5986_s2 }
 0xad0   :  { %848 = vrot.lane.b32.xlu1 %v843_v60, %s5986_s2 }
 0xb41   :  { %v847_v5 = vpop.permute.xlu0 %846 }
 0xb42   :  { %v6353_v7 = vadd.f32 %v847_v5, %v832_v0  ;;  %v849_v15 = vpop.permute.xlu1 %848 }
 0xb43   :  { %v6357_v59 = vadd.f32 %v849_v15, %v833_v13 }
 0xb44   :  { %5611 = vtanh.f32 %v6353_v7 }
 0xb45   :  { %5613 = vtanh.f32 %v6357_v59 }
 0xb46   :  { %5615 = vpow2.f32 %v5118_v51 }
 0xb47   :  { %5617 = vpow2.f32 %v5120_v23 }
 0xb4e   :  { %v5612_v17 = vpop.eup %5611 }
 0xb4f   :  { %858 = vrot.lane.b32.xlu0 %v5612_v17, %s5986_s2  ;;  %v5614_v21 = vpop.eup %5613 }
 0xb50   :  { %860 = vrot.lane.b32.xlu1 %v5614_v21, %s5986_s2  ;;  %v5616_v24 = vpop.eup %5615 }
 0xb51   :  { %v813_v54 = vadd.f32 1.0, %v5616_v24  ;;  %v5618_v62 = vpop.eup %5617 }
 0xb52   :  { %v815_v22 = vadd.f32 1.0, %v5618_v62 }
 0xb53   :  { %5619 = vrcp.f32 %v813_v54 }
 0xb54   :  { %5621 = vrcp.f32 %v815_v22 }
 0xb5d   :  { %v5620_v26 = vpop.eup %5619 }
 0xb5e   :  { %v5622_v36 = vpop.eup %5621 }
 0xbc1   :  { %v859_v1 = vpop.permute.xlu0 %858 }
 0xbc2   :  { %v864_v27 = vmul.f32 %v5620_v26, %v859_v1  ;;  %v861_v11 = vpop.permute.xlu1 %860 }
 0xbc3   :  { %v865_v39 = vmul.f32 %v5622_v36, %v861_v11  ;;  %v962_v36 = vrot.slane %v6353_v7, 7 }
 0xbc4   :  { %v866_v31 = vpack.c.bf16 %v864_v27, %v864_v27  ;;  %v1315_v35 = vrot.slane %v864_v27, 1 }
 0xbc5   :  { %v867_v3 = vpack.c.bf16 %v865_v39, %v865_v39  ;;  %v1319_v44 = vrot.slane %v865_v39, 7 }
 0xbc6   :  { %v870_v40 = vunpack.c.l.b16 %v866_v31  ;;  %v1316_v4 = vsel %vm1310_vm6, %v865_v39, %v1315_v35 }
 0xbc7   :  { %v6365_v45 = vsel %vm1279_vm8, %v6329_v29, %v1316_v4  ;;  %v871_v6 = vunpack.c.l.b16 %v867_v3  ;;  %v1321_v10 = vsel %vm1320_vm7, %v1319_v44, %v864_v27  ;;  %v5924_v29 = vld [vmem:[%s7315_s3 + $0x14] ss:$8 sps:$4 sm:$0xff]   ;;  %v963_v3 = vrot.slane %v6357_v59, 7 }
 0xbc8   :  { %v872_v8 = vrot.slane %v870_v40, 4  ;;  %v6370_v12 = vsel %vm1279_vm8, %v1321_v10, %v6332_v30  ;;  %v5925_v30 = vld [vmem:[%s7315_s3 + $0x10] ss:$8 sps:$4 sm:$0xff]  }
 0xbc9   :  { %v873_v14 = vrot.slane %v871_v6, 3 }
 0xbcb   :  { %v874_v16 = vsel %vm340_vm1, %v873_v14, %v872_v8 }
 0xbcc   :  { %v875_v46 = vpack.c.b16 %v874_v16, %v874_v16 }
 0xbce   :  { %5121 = vmatmul.mubr.msk.bf16.vlgmr.msra.gmra.mrb[12].mxu0 %vm130_vm0, %v875_v46 }
 0xbcf   :  { %1148 = vmatpush1.bf16.msra.mxu0 %v5923_v47  ;;  %1179 = vmatprep.mubr.bf16.mxu0 %v5985_v2 }
 0xbd0   :  { %1149 = vmatprep.subr.bf16.mxu0 %v5924_v29 }
 0xbd3   :  { %1150 = vmatpush1.bf16.msra.mxu0 %v5925_v30 }
 0xbd4   :  { %1151 = vmatprep.subr.bf16.mxu0 %v5926_v48 }
 0xbd7   :  { %1152 = vmatpush1.bf16.msra.mxu0 %v5927_v49 }
 0xbd8   :  { %1153 = vmatprep.subr.bf16.mxu0 %v5928_v50 }
 0xbdb   :  { %1154 = vmatpush1.bf16.msra.mxu0 %v5929_v52 }
 0xca1   :  { %v913_v53 = vpop.f32.mrb[12].mxu0 }
 0xca2   :  { %v915_v56 = vpop.f32.mrb[13].mxu0  ;;  %v922_v9 = vrot.slane %v913_v53, 3  ;;  %v924_v15 = vrot.slane %v913_v53, 4 }
 0xca3   :  { %v923_v55 = vrot.slane %v915_v56, 3  ;;  %v917_v57 = vpop.f32.mrb[14].mxu0  ;;  %v925_v28 = vrot.slane %v915_v56, 4 }
 0xca4   :  { %v918_v58 = vpop.f32.mrb[15].mxu0  ;;  %v930_v13 = vadd.f32 %v922_v9, %v6207_v42  ;;  %v932_v21 = vadd.f32 %v924_v15, %v6205_v41 }
 0xca5   :  { %v931_v60 = vadd.f32 %v923_v55, %v6195_v33  ;;  %v933_v34 = vadd.f32 %v925_v28, %v6193_v32 }
 0xca6   :  { %v5122_v17 = vmul.f32 -1.442695, %v930_v13  ;;  %v5124_v51 = vmul.f32 -1.442695, %v932_v21 }
 0xca7   :  { %5623 = vtanh.f32 %v931_v60  ;;  %v5123_v7 = vmul.f32 -1.442695, %v931_v60  ;;  %v5125_v14 = vmul.f32 -1.442695, %v933_v34 }
 0xca8   :  { %5625 = vtanh.f32 %v933_v34 }
 0xca9   :  { %5627 = vpow2.f32 %v5122_v17 }
 0xcaa   :  { %5629 = vpow2.f32 %v5124_v51 }
 0xcb1   :  { %v5624_v0 = vpop.eup %5623 }
 0xcb2   :  { %970 = vrot.lane.b32.xlu0 %v5624_v0, %s5986_s2  ;;  %v5626_v5 = vpop.eup %5625 }
 0xcb3   :  { %972 = vrot.lane.b32.xlu1 %v5626_v5, %s5986_s2  ;;  %v5628_v23 = vpop.eup %5627 }
 0xcb4   :  { %v946_v24 = vadd.f32 1.0, %v5628_v23  ;;  %v5630_v54 = vpop.eup %5629 }
 0xcb5   :  { %v948_v62 = vadd.f32 1.0, %v5630_v54 }
 0xcb6   :  { %5631 = vrcp.f32 %v946_v24 }
 0xcb7   :  { %5633 = vrcp.f32 %v948_v62 }
 0xcc0   :  { %v5632_v22 = vpop.eup %5631 }
 0xcc1   :  { %v5634_v27 = vpop.eup %5633  ;;  %v966_v11 = vmul.f32 %v5632_v22, %v962_v36 }
 0xcc2   :  { %v967_v44 = vmul.f32 %v5634_v27, %v963_v3 }
 0xd24   :  { %v971_v26 = vpop.permute.xlu0 %970 }
 0xd25   :  { %v976_v1 = vmul.f32 %v5632_v22, %v971_v26  ;;  %v973_v31 = vpop.permute.xlu1 %972 }
 0xd26   :  { %v977_v35 = vmul.f32 %v5634_v27, %v973_v31 }
 0xd27   :  { %980 = vrot.lane.b32.xlu0 %v976_v1, %s5986_s2 }
 0xd28   :  { %982 = vrot.lane.b32.xlu1 %v977_v35, %s5986_s2 }
 0xd99   :  { %v981_v39 = vpop.permute.xlu0 %980 }
 0xd9a   :  { %v6405_v40 = vadd.f32 %v981_v39, %v966_v11  ;;  %v983_v4 = vpop.permute.xlu1 %982 }
 0xd9b   :  { %v6409_v6 = vadd.f32 %v983_v4, %v967_v44 }
 0xd9c   :  { %5635 = vtanh.f32 %v6405_v40 }
 0xd9d   :  { %5637 = vtanh.f32 %v6409_v6 }
 0xd9e   :  { %5639 = vpow2.f32 %v5123_v7 }
 0xd9f   :  { %5641 = vpow2.f32 %v5125_v14 }
 0xda6   :  { %v5636_v8 = vpop.eup %5635 }
 0xda7   :  { %992 = vrot.lane.b32.xlu0 %v5636_v8, %s5986_s2  ;;  %v5638_v10 = vpop.eup %5637 }
 0xda8   :  { %994 = vrot.lane.b32.xlu1 %v5638_v10, %s5986_s2  ;;  %v5640_v16 = vpop.eup %5639 }
 0xda9   :  { %v947_v59 = vadd.f32 1.0, %v5640_v16  ;;  %v5642_v46 = vpop.eup %5641 }
 0xdaa   :  { %v949_v47 = vadd.f32 1.0, %v5642_v46 }
 0xdab   :  { %5643 = vrcp.f32 %v947_v59 }
 0xdac   :  { %5645 = vrcp.f32 %v949_v47  ;;  %v1096_v47 = vrot.slane %v6405_v40, 7 }
 0xdb5   :  { %v5644_v29 = vpop.eup %5643 }
 0xdb6   :  { %v5646_v50 = vpop.eup %5645 }
 0xe19   :  { %v993_v30 = vpop.permute.xlu0 %992 }
 0xe1a   :  { %v998_v48 = vmul.f32 %v5644_v29, %v993_v30  ;;  %v995_v52 = vpop.permute.xlu1 %994 }
 0xe1b   :  { %v999_v53 = vmul.f32 %v5646_v50, %v995_v52 }
 0xe1c   :  { %v1000_v49 = vpack.c.bf16 %v998_v48, %v998_v48  ;;  %v1302_v55 = vrot.slane %v998_v48, 3 }
 0xe1d   :  { %v1001_v57 = vpack.c.bf16 %v999_v53, %v999_v53  ;;  %v1303_v28 = vrot.slane %v999_v53, 2  ;;  %v1328_v58 = vrot.slane %v999_v53, 7 }
 0xe1e   :  { %v1004_v56 = vunpack.c.l.b16 %v1000_v49  ;;  %v1097_v49 = vrot.slane %v6409_v6, 7 }
 0xe1f   :  { %v1005_v60 = vunpack.c.l.b16 %v1001_v57  ;;  %v1330_v0 = vsel %vm1329_vm5, %v1328_v58, %v998_v48  ;;  %v1304_v5 = vsel %vm1297_vm4, %v1303_v28, %v1302_v55 }
 0xe20   :  { %v1006_v34 = vrot.slane %v1004_v56, 5  ;;  %v6418_v9 = vsel %vm1279_vm8, %v1330_v0, %v6297_v63  ;;  %v6422_v13 = vsel %vm1279_vm8, %v6294_v61, %v1304_v5 }
 0xe21   :  { %v1007_v15 = vrot.slane %v1005_v60, 4 }
 0xe23   :  { %v1008_v17 = vsel %vm340_vm1, %v1007_v15, %v1006_v34 }
 0xe24   :  { %v1009_v21 = vpack.c.b16 %v1008_v17, %v1008_v17 }
 0xe26   :  { %5126 = vmatmul.mubr.msk.bf16.vlgmr.msra.gmra.mrb[12].mxu1 %vm130_vm0, %v1009_v21 }
 0xe27   :  { %1860 = vmatprep.mubr.bf16.mxu1 %v5985_v2 }
 0xef9   :  { %v1047_v51 = vpop.f32.mrb[12].mxu1 }
 0xefa   :  { %v1049_v23 = vpop.f32.mrb[13].mxu1  ;;  %v1056_v27 = vrot.slane %v1047_v51, 2  ;;  %v1058_v35 = vrot.slane %v1047_v51, 3 }
 0xefb   :  { %v1057_v24 = vrot.slane %v1049_v23, 2  ;;  %v1051_v54 = vpop.f32.mrb[14].mxu1  ;;  %v1059_v62 = vrot.slane %v1049_v23, 3 }
 0xefc   :  { %v1052_v22 = vpop.f32.mrb[15].mxu1  ;;  %v1064_v31 = vadd.f32 %v1056_v27, %v6207_v42  ;;  %v1066_v11 = vadd.f32 %v1058_v35, %v6205_v41 }
 0xefd   :  { %v1065_v63 = vadd.f32 %v1057_v24, %v6195_v33  ;;  %v1067_v61 = vadd.f32 %v1059_v62, %v6193_v32 }
 0xefe   :  { %v5127_v36 = vmul.f32 -1.442695, %v1064_v31  ;;  %v5129_v39 = vmul.f32 -1.442695, %v1066_v11 }
 0xeff   :  { %5647 = vtanh.f32 %v1065_v63  ;;  %v5128_v40 = vmul.f32 -1.442695, %v1065_v63  ;;  %v5130_v57 = vmul.f32 -1.442695, %v1067_v61 }
 0xf00   :  { %5649 = vtanh.f32 %v1067_v61 }
 0xf01   :  { %5651 = vpow2.f32 %v5127_v36 }
 0xf02   :  { %5653 = vpow2.f32 %v5129_v39 }
 0xf09   :  { %v5648_v26 = vpop.eup %5647 }
 0xf0a   :  { %1104 = vrot.lane.b32.xlu0 %v5648_v26, %s5986_s2  ;;  %v5650_v1 = vpop.eup %5649 }
 0xf0b   :  { %1106 = vrot.lane.b32.xlu1 %v5650_v1, %s5986_s2  ;;  %v5652_v3 = vpop.eup %5651 }
 0xf0c   :  { %v1080_v44 = vadd.f32 1.0, %v5652_v3  ;;  %v5654_v4 = vpop.eup %5653 }
 0xf0d   :  { %v1082_v8 = vadd.f32 1.0, %v5654_v4 }
 0xf0e   :  { %5655 = vrcp.f32 %v1080_v44 }
 0xf0f   :  { %5657 = vrcp.f32 %v1082_v8 }
 0xf18   :  { %v5656_v10 = vpop.eup %5655 }
 0xf19   :  { %v5658_v16 = vpop.eup %5657  ;;  %v1100_v29 = vmul.f32 %v5656_v10, %v1096_v47 }
 0xf1a   :  { %v1101_v50 = vmul.f32 %v5658_v16, %v1097_v49 }
 0xf7c   :  { %v1105_v7 = vpop.permute.xlu0 %1104 }
 0xf7d   :  { %v1110_v14 = vmul.f32 %v5656_v10, %v1105_v7  ;;  %v1107_v59 = vpop.permute.xlu1 %1106 }
 0xf7e   :  { %v1111_v46 = vmul.f32 %v5658_v16, %v1107_v59 }
 0xf7f   :  { %1114 = vrot.lane.b32.xlu0 %v1110_v14, %s5986_s2 }
 0xf80   :  { %1116 = vrot.lane.b32.xlu1 %v1111_v46, %s5986_s2 }
 0xff1   :  { %v1115_v30 = vpop.permute.xlu0 %1114 }
 0xff2   :  { %v6436_v48 = vadd.f32 %v1115_v30, %v1100_v29  ;;  %v1117_v52 = vpop.permute.xlu1 %1116 }
 0xff3   :  { %v6440_v53 = vadd.f32 %v1117_v52, %v1101_v50 }
 0xff4   :  { %5659 = vtanh.f32 %v6436_v48 }
 0xff5   :  { %5661 = vtanh.f32 %v6440_v53 }
 0xff6   :  { %5663 = vpow2.f32 %v5128_v40 }
 0xff7   :  { %5665 = vpow2.f32 %v5130_v57 }
 0xffe   :  { %v5660_v56 = vpop.eup %5659 }
 0xfff   :  { %1126 = vrot.lane.b32.xlu0 %v5660_v56, %s5986_s2  ;;  %v5662_v55 = vpop.eup %5661 }
0x1000   :  { %1128 = vrot.lane.b32.xlu1 %v5662_v55, %s5986_s2  ;;  %v5664_v28 = vpop.eup %5663 }
0x1001   :  { %v1081_v6 = vadd.f32 1.0, %v5664_v28  ;;  %v5666_v58 = vpop.eup %5665 }
0x1002   :  { %v1083_v60 = vadd.f32 1.0, %v5666_v58 }
0x1003   :  { %5667 = vrcp.f32 %v1081_v6 }
0x1004   :  { %5669 = vrcp.f32 %v1083_v60  ;;  %v1231_v60 = vrot.slane %v6440_v53, 7 }
0x100d   :  { %v5668_v34 = vpop.eup %5667 }
0x100e   :  { %v5670_v17 = vpop.eup %5669 }
0x1071   :  { %v1127_v0 = vpop.permute.xlu0 %1126 }
0x1072   :  { %v1132_v5 = vmul.f32 %v5668_v34, %v1127_v0  ;;  %v1129_v21 = vpop.permute.xlu1 %1128 }
0x1073   :  { %v1133_v51 = vmul.f32 %v5670_v17, %v1129_v21  ;;  %v1371_v17 = vrot.slane %v6418_v9, 3 }
0x1074   :  { %v1134_v15 = vpack.c.bf16 %v1132_v5, %v1132_v5  ;;  %v1289_v24 = vrot.slane %v1132_v5, 5 }
0x1075   :  { %v1135_v54 = vpack.c.bf16 %v1133_v51, %v1133_v51  ;;  %v1290_v62 = vrot.slane %v1133_v51, 4  ;;  %v1337_v22 = vrot.slane %v1133_v51, 7 }
0x1076   :  { %v1138_v23 = vunpack.c.l.b16 %v1134_v15 }
0x1077   :  { %v1139_v63 = vunpack.c.l.b16 %v1135_v54  ;;  %v1339_v26 = vsel %vm1338_vm3, %v1337_v22, %v1132_v5  ;;  %v1291_v1 = vsel %vm1284_vm2, %v1290_v62, %v1289_v24  ;;  %v5447_v24 = vld [vmem:[%s7316_s4] ss:$8 sps:$4 sm:$0xff]   ;;  %v5449_v54 = vld [vmem:[%s7316_s4 + $0x4] ss:$8 sps:$4 sm:$0xff]   ;;  %v1389_v62 = vrot.slane %v6422_v13, 5 }
0x1078   :  { %v1140_v61 = vrot.slane %v1138_v23, 6  ;;  %v6449_v27 = vsel %vm1279_vm8, %v1339_v26, %v6262_v43  ;;  %v6453_v31 = vsel %vm1279_vm8, %v6259_v37, %v1291_v1  ;;  %v1383_v23 = vrot.slane %v6365_v45, 7  ;;  %v5452_v22 = vld [vmem:[%s7316_s4 + $0x14] ss:$8 sps:$4 sm:$0xff]   ;;  %1828 = vmatprep.subr.bf16.mxu1 %v5449_v54  ;;  %v5453_v26 = vld [vmem:[%s7316_s4 + $0x20] ss:$8 sps:$4 sm:$0xff]  }
0x1079   :  { %v1141_v35 = vrot.slane %v1139_v63, 5  ;;  %v1365_v51 = vrot.slane %v6449_v27, 5  ;;  %v1395_v53 = vrot.slane %v6453_v31, 3  ;;  %1829 = vmatpush1.bf16.msra.mxu1 %v5447_v24  ;;  %v5450_v63 = vld [vmem:[%s7316_s4 + $0x10] ss:$8 sps:$4 sm:$0xff]  }
0x107a   :  { %1830 = vmatprep.subr.bf16.mxu1 %v5452_v22 }
0x107b   :  { %v1142_v36 = vsel %vm340_vm1, %v1141_v35, %v1140_v61  ;;  %v5455_v61 = vld [vmem:[%s7316_s4 + $0x24] ss:$8 sps:$4 sm:$0xff]  }
0x107c   :  { %v1143_v11 = vpack.c.b16 %v1142_v36, %v1142_v36 }
0x107d   :  { %1831 = vmatpush1.bf16.msra.mxu1 %v5450_v63 }
0x107e   :  { %5131 = vmatmul.mubr.msk.bf16.vlgmr.msra.gmra.mrb[16].mxu0 %vm130_vm0, %v1143_v11  ;;  %1832 = vmatprep.subr.bf16.mxu1 %v5455_v61 }
0x107f   :  { %1943 = vmatprep.mubr.bf16.mxu0 %v5985_v2 }
0x1081   :  { %1833 = vmatpush1.bf16.msra.mxu1 %v5453_v26 }
0x1151   :  { %v1181_v39 = vpop.f32.mrb[16].mxu0 }
0x1152   :  { %v1183_v3 = vpop.f32.mrb[17].mxu0  ;;  %v1190_v16 = vrot.slane %v1181_v39, 1  ;;  %v1192_v46 = vrot.slane %v1181_v39, 2 }
0x1153   :  { %v1191_v44 = vrot.slane %v1183_v3, 1  ;;  %v1185_v4 = vpop.f32.mrb[18].mxu0  ;;  %v1193_v8 = vrot.slane %v1183_v3, 2 }
0x1154   :  { %v1186_v10 = vpop.f32.mrb[19].mxu0  ;;  %v1198_v59 = vadd.f32 %v1190_v16, %v6207_v42 }
0x1155   :  { %v6459_v43 = vadd.f32 %v1191_v44, %v6195_v33  ;;  %v6463_v37 = vadd.f32 %v1193_v8, %v6193_v32  ;;  %v1200_v33 = vadd.f32 %v1192_v46, %v6205_v41  ;;  %v1230_v41 = vrot.slane %v6436_v48, 7 }
0x1156   :  { %v5132_v47 = vmul.f32 -1.442695, %v1198_v59  ;;  %v1377_v48 = vrot.slane %v6370_v12, 1  ;;  %v1349_v8 = vrot.slane %v6225_v25, 1  ;;  %v5456_v59 = vld [vmem:[%s7316_s4 + $0x30] ss:$8 sps:$4 sm:$0xff]  }
0x1157   :  { %5671 = vtanh.f32 %v6459_v43  ;;  %v5134_v29 = vmul.f32 -1.442695, %v1200_v33  ;;  %v5133_v1 = vmul.f32 -1.442695, %v6459_v43  ;;  %v5135_v35 = vmul.f32 -1.442695, %v6463_v37 }
0x1158   :  { %5673 = vtanh.f32 %v6463_v37  ;;  %v5458_v37 = vld [vmem:[%s7316_s4 + $0x34] ss:$8 sps:$4 sm:$0xff]  }
0x1159   :  { %5675 = vpow2.f32 %v5132_v47  ;;  %1834 = vmatprep.subr.bf16.mxu1 %v5458_v37 }
0x115a   :  { %5677 = vpow2.f32 %v5134_v29  ;;  %1835 = vmatpush1.bf16.msra.mxu1 %v5456_v59  ;;  %v6521_v29 = vld [vmem:[%s7318_s6 + $0x4] ss:$8 sps:$4 sm:$0xff]  }
0x115b   :  { %1911 = vmatprep.subr.bf16.mxu0 %v6521_v29 }
0x1161   :  { %v5672_v7 = vpop.eup %5671 }
0x1162   :  { %1238 = vrot.lane.b32.xlu0 %v5672_v7, %s5986_s2  ;;  %v5674_v14 = vpop.eup %5673 }
0x1163   :  { %1240 = vrot.lane.b32.xlu1 %v5674_v14, %s5986_s2  ;;  %v5676_v32 = vpop.eup %5675 }
0x1164   :  { %v1214_v30 = vadd.f32 1.0, %v5676_v32  ;;  %v5678_v49 = vpop.eup %5677  ;;  %v5463_v32 = vld [vmem:[%s7316_s4 + $0x44] ss:$8 sps:$4 sm:$0xff]  }
0x1165   :  { %v1216_v50 = vadd.f32 1.0, %v5678_v49  ;;  %v5461_v49 = vld [vmem:[%s7316_s4 + $0x40] ss:$8 sps:$4 sm:$0xff]   ;;  %1836 = vmatprep.subr.bf16.mxu1 %v5463_v32 }
0x1166   :  { %5679 = vrcp.f32 %v1214_v30  ;;  %v6529_v30 = vld [vmem:[%s7318_s6] ss:$8 sps:$4 sm:$0xff]   ;;  %1837 = vmatpush1.bf16.msra.mxu1 %v5461_v49 }
0x1167   :  { %5681 = vrcp.f32 %v1216_v50  ;;  %1912 = vmatpush1.bf16.msra.mxu0 %v6529_v30 }
0x1170   :  { %v5680_v52 = vpop.eup %5679 }
0x1171   :  { %v5682_v40 = vpop.eup %5681  ;;  %v1234_v28 = vmul.f32 %v5680_v52, %v1230_v41  ;;  %v6555_v41 = vld [vmem:[%s7318_s6 + $0x10] ss:$8 sps:$4 sm:$0xff]  }
0x1172   :  { %v1235_v34 = vmul.f32 %v5682_v40, %v1231_v60  ;;  %v6572_v60 = vld [vmem:[%s7318_s6 + $0x24] ss:$8 sps:$4 sm:$0xff]  }
0x11d4   :  { %v1239_v56 = vpop.permute.xlu0 %1238 }
0x11d5   :  { %v1244_v55 = vmul.f32 %v5680_v52, %v1239_v56  ;;  %v1241_v42 = vpop.permute.xlu1 %1240 }
0x11d6   :  { %v1245_v57 = vmul.f32 %v5682_v40, %v1241_v42  ;;  %v6546_v40 = vld [vmem:[%s7318_s6 + $0x14] ss:$8 sps:$4 sm:$0xff]   ;;  %v1270_v42 = vrot.slane %v6221_v18, 7 }
0x11d7   :  { %1248 = vrot.lane.b32.xlu0 %v1244_v55, %s5986_s2  ;;  %1913 = vmatprep.subr.bf16.mxu0 %v6546_v40 }
0x11d8   :  { %1250 = vrot.lane.b32.xlu1 %v1245_v57, %s5986_s2  ;;  %v5469_v57 = vld [vmem:[%s7316_s4 + $0x54] ss:$8 sps:$4 sm:$0xff]   ;;  %1914 = vmatpush1.bf16.msra.mxu0 %v6555_v41 }
0x11d9   :  { %1838 = vmatprep.subr.bf16.mxu1 %v5469_v57  ;;  %1915 = vmatprep.subr.bf16.mxu0 %v6572_v60 }
0x1249   :  { %v1249_v6 = vpop.permute.xlu0 %1248 }
0x124a   :  { %v1254_v58 = vadd.f32 %v1249_v6, %v1234_v28  ;;  %v1251_v0 = vpop.permute.xlu1 %1250  ;;  %v5467_v6 = vld [vmem:[%s7316_s4 + $0x50] ss:$8 sps:$4 sm:$0xff]  }
0x124b   :  { %v1255_v5 = vadd.f32 %v1251_v0, %v1235_v34  ;;  %1839 = vmatpush1.bf16.msra.mxu1 %v5467_v6  ;;  %v5475_v34 = vld [vmem:[%s7316_s4 + $0x64] ss:$8 sps:$4 sm:$0xff]  }
0x124c   :  { %5683 = vtanh.f32 %v1254_v58  ;;  %1840 = vmatprep.subr.bf16.mxu1 %v5475_v34 }
0x124d   :  { %5685 = vtanh.f32 %v1255_v5  ;;  %v5473_v5 = vld [vmem:[%s7316_s4 + $0x60] ss:$8 sps:$4 sm:$0xff]  }
0x124e   :  { %5687 = vpow2.f32 %v5133_v1 }
0x124f   :  { %5689 = vpow2.f32 %v5135_v35  ;;  %1841 = vmatpush1.bf16.msra.mxu1 %v5473_v5 }
0x1256   :  { %v5684_v15 = vpop.eup %5683 }
0x1257   :  { %1260 = vrot.lane.b32.xlu0 %v5684_v15, %s5986_s2  ;;  %v5686_v21 = vpop.eup %5685  ;;  %v6590_v15 = vld [vmem:[%s7318_s6 + $0x34] ss:$8 sps:$4 sm:$0xff]  }
0x1258   :  { %1262 = vrot.lane.b32.xlu1 %v5686_v21, %s5986_s2  ;;  %v5688_v36 = vpop.eup %5687  ;;  %v6600_v21 = vld [vmem:[%s7318_s6 + $0x30] ss:$8 sps:$4 sm:$0xff]  }
0x1259   :  { %v1215_v11 = vadd.f32 1.0, %v5688_v36  ;;  %v5690_v39 = vpop.eup %5689 }
0x125a   :  { %v1217_v3 = vadd.f32 1.0, %v5690_v39 }
0x125b   :  { %1372 = vrot.lane.b32.xlu0 %v1371_v17, %s5986_s2  ;;  %5691 = vrcp.f32 %v1215_v11  ;;  %v5481_v17 = vld [vmem:[%s7316_s4 + $0x74] ss:$8 sps:$4 sm:$0xff]  }
0x125c   :  { %1366 = vrot.lane.b32.xlu1 %v1365_v51, %s5986_s2  ;;  %5693 = vrcp.f32 %v1217_v3  ;;  %1842 = vmatprep.subr.bf16.mxu1 %v5481_v17 }
0x125f   :  { %1378 = vrot.lane.b32.xlu0 %v1377_v48, %s5986_s2  ;;  %v5479_v48 = vld [vmem:[%s7316_s4 + $0x70] ss:$8 sps:$4 sm:$0xff]  }
0x1260   :  { %1384 = vrot.lane.b32.xlu1 %v1383_v23, %s5986_s2  ;;  %1843 = vmatpush1.bf16.msra.mxu1 %v5479_v48 }
0x1261   :  { %2167 = vmatprep.subr.bf16.mxu1 %v6521_v29 }
0x1263   :  { %1396 = vrot.lane.b32.xlu0 %v1395_v53, %s5986_s2  ;;  %v5987_v53 = vmov 1966171168  }
0x1264   :  { %v1409_v23 = vunpack.c.l.s4 %v5987_v53 }
0x1265   :  { %v5692_v44 = vpop.eup %5691 }
0x1266   :  { %v5694_v14 = vpop.eup %5693  ;;  %v1410_v54 = vunpack.c.0.s8 %v1409_v23 }
0x1267   :  { %1390 = vrot.lane.b32.xlu0 %v1389_v62, %s5986_s2 }
0x1268   :  { %v6620_v22 = vsub.s32 %v1410_v54, %v6184_v19 }
0x12c9   :  { %v1261_v4 = vpop.permute.xlu0 %1260 }
0x12ca   :  { %v1266_v10 = vmul.f32 %v5692_v44, %v1261_v4  ;;  %v1263_v43 = vpop.permute.xlu1 %1262 }
0x12cb   :  { %v1267_v16 = vmul.f32 %v5694_v14, %v1263_v43 }
0x12cc   :  { %v6510_v7 = vsel %vm1279_vm8, %v1266_v10, %v1349_v8  ;;  %v1275_v46 = vrot.slane %v1266_v10, 7 }
0x12cd   :  { %v1276_v47 = vrot.slane %v1267_v16, 6  ;;  %v1346_v33 = vrot.slane %v1267_v16, 7  ;;  %v1357_v56 = vrot.slane %v6510_v7, 7  ;;  %v1373_v51 = vpop.permute.xlu0 %1372 }
0x12ce   :  { %v1367_v62 = vpop.permute.xlu1 %1366  ;;  %v1375_v63 = vsel %vm130_vm0, %v6422_v13, %v1373_v51 }
0x12cf   :  { %v6537_v50 = vsel %vm1279_vm8, %v1346_v33, %v6221_v18  ;;  %v1277_v52 = vsel %vm340_vm1, %v1276_v47, %v1275_v46  ;;  %v1271_v18 = vsel %vm340_vm1, %v1270_v42, %v6225_v25  ;;  %v6580_v25 = vld [vmem:[%s7318_s6 + $0x20] ss:$8 sps:$4 sm:$0xff]   ;;  %v1463_v26 = vrot.slane %v1375_v63, %v6620_v22 }
0x12d0   :  { %v1358_v55 = vrot.slane %v6537_v50, 7  ;;  %v6566_v58 = vsel %vm1279_vm8, %v1271_v18, %v1277_v52  ;;  %1916 = vmatpush1.bf16.msra.mxu0 %v6580_v25  ;;  %v1369_v35 = vsel %vm130_vm0, %v6453_v31, %v1367_v62 }
0x12d1   :  { %v1401_v0 = vrot.slane %v6566_v58, 1  ;;  %1917 = vmatprep.subr.bf16.mxu0 %v6590_v15  ;;  %v1379_v24 = vpop.permute.xlu0 %1378  ;;  %v1464_v3 = vcombine.high %v1463_v26, %v1463_v26  ;;  %v1439_v13 = vrot.slane %v1369_v35, %v6620_v22 }
0x12d2   :  { %v1359_v28 = vsel %vm1356_vm9, %v1357_v56, %v1358_v55  ;;  %v1385_v1 = vpop.permute.xlu1 %1384  ;;  %v1381_v36 = vsel %vm130_vm0, %v6365_v45, %v1379_v24  ;;  %v1471_v45 = vrot.slane %v1463_v26, %v6620_v22 }
0x12d3   :  { %1360 = vrot.lane.b32.xlu1 %v1359_v28, %s5986_s2  ;;  %v1387_v11 = vsel %vm130_vm0, %v6370_v12, %v1385_v1  ;;  %v1482_v44 = vcombine.high %v1381_v36, %v1381_v36  ;;  %v1489_v4 = vrot.slane %v1381_v36, %v6620_v22  ;;  %v1478_v14 = vrot.slane %v1464_v3, %v6620_v22 }
0x12d4   :  { %1918 = vmatpush1.bf16.msra.mxu0 %v6600_v21  ;;  %v1514_v8 = vcombine.high %v1387_v11, %v1387_v11  ;;  %v1440_v12 = vcombine.high %v1439_v13, %v1439_v13  ;;  %v1447_v59 = vrot.slane %v1439_v13, %v6620_v22  ;;  %v1479_v47 = vcombine.high %v1471_v45, %v1471_v45 }
0x12d5   :  { %2036 = vmatprep.subr.bf16.mxu0 %v6521_v29  ;;  %v1397_v61 = vpop.permute.xlu0 %1396  ;;  %v1496_v43 = vrot.slane %v1482_v44, %v6620_v22  ;;  %v1497_v37 = vcombine.high %v1489_v4, %v1489_v4  ;;  %v1480_v33 = vcombine.high %v1478_v14, %v1478_v14 }
0x12d6   :  { %v1399_v19 = vsel %vm130_vm0, %v6449_v27, %v1397_v61  ;;  %v1521_v27 = vrot.slane %v1514_v8, %v6620_v22  ;;  %v1455_v42 = vcombine.high %v1447_v59, %v1447_v59  ;;  %v1634_v6 = vrot.slane %v1479_v47, %v6202_v38 }
0x12d7   :  { %1402 = vrot.lane.b32.xlu1 %v1401_v0, %s5986_s2  ;;  %1944 = vmatmul.mubr.bf16.vlgmr.msra.gmra.mrb[20].mxu0 %v5985_v2  ;;  %v1563_v10 = vcombine.high %v1399_v19, %v1399_v19  ;;  %v1504_v32 = vrot.slane %v1496_v43, %v6620_v22  ;;  %v1511_v49 = vrot.slane %v1497_v37, %v6620_v22 }
0x12d8   :  { %2037 = vmatpush1.bf16.msra.mxu0 %v6529_v30  ;;  %2068 = vmatprep.mubr.bf16.mxu0 %v5985_v2  ;;  %v1522_v56 = vcombine.high %v1521_v27, %v1521_v27  ;;  %v1638_v18 = vrot.slane %v1480_v33, %v6202_v38  ;;  %v1628_v24 = vrot.slane %v1455_v42, %v6202_v38 }
0x12d9   :  { %2038 = vmatprep.subr.bf16.mxu0 %v6546_v40  ;;  %v1391_v39 = vpop.permute.xlu0 %1390  ;;  %v1570_v46 = vrot.slane %v1563_v10, %v6620_v22  ;;  %v1512_v5 = vcombine.high %v1511_v49, %v1511_v49  ;;  %v1648_v17 = vrot.slane %v1504_v32, %v6202_v38  ;;  %v1529_v54 = vrot.slane %v1521_v27, %v6620_v22 }
0x12da   :  { %v1393_v31 = vsel %vm130_vm0, %v6418_v9, %v1391_v39  ;;  %v1454_v9 = vrot.slane %v1440_v12, %v6620_v22  ;;  %v1536_v51 = vrot.slane %v1522_v56, %v6620_v22 }
0x12db   :  { %v1538_v16 = vcombine.high %v1393_v31, %v1393_v31  ;;  %v1571_v57 = vcombine.high %v1570_v46, %v1570_v46  ;;  %v1644_v36 = vrot.slane %v1512_v5, %v6202_v38  ;;  %v1578_v13 = vrot.slane %v1570_v46, %v6620_v22 }
0x12dc   :  { %2039 = vmatpush1.bf16.msra.mxu0 %v6555_v41  ;;  %v1624_v0 = vrot.slane %v1454_v9, %v6202_v38  ;;  %v1658_v19 = vrot.slane %v1536_v51, %v6202_v38  ;;  %v1654_v10 = vrot.slane %v1529_v54, %v6202_v38 }
0x12dd   :  { %2040 = vmatprep.subr.bf16.mxu0 %v6572_v60  ;;  %v1545_v52 = vrot.slane %v1538_v16, %v6620_v22  ;;  %v1585_v62 = vrot.slane %v1571_v57, %v6620_v22  ;;  %v1586_v16 = vcombine.high %v1578_v13, %v1578_v13 }
0x12df   :  { %v1553_v48 = vrot.slane %v1545_v52, %v6620_v22  ;;  %v1546_v53 = vcombine.high %v1545_v52, %v1545_v52  ;;  %v1587_v45 = vcombine.high %v1585_v62, %v1585_v62  ;;  %v1674_v52 = vrot.slane %v1586_v16, %v6202_v38 }
0x12e0   :  { %2041 = vmatpush1.bf16.msra.mxu0 %v6580_v25 }
0x12e1   :  { %2042 = vmatprep.subr.bf16.mxu0 %v6590_v15  ;;  %v1561_v11 = vcombine.high %v1553_v48, %v1553_v48  ;;  %v1560_v44 = vrot.slane %v1546_v53, %v6620_v22  ;;  %v1678_v9 = vrot.slane %v1587_v45, %v6202_v38  ;;  %v1728_v48 = vld [vmem:[%s7317_s5] sm:$0x3]  ;;  %s5993_s5 = smov 16  }
0x12e2   :  { %v1745_v51 = vrot.slane %v1728_v48, %v6187_v20 }
0x12e3   :  { %v1668_v12 = vrot.slane %v1561_v11, %v6202_v38  ;;  %v1664_v59 = vrot.slane %v1560_v44, %v6202_v38 }
0x12e4   :  { %2043 = vmatpush1.bf16.msra.mxu0 %v6600_v21 }
0x12e5   :  { %2301 = vmatprep.subr.bf16.mxu0 %v6521_v29 }
0x1345   :  { %v1361_v55 = vpop.permute.xlu1 %1360 }
0x1346   :  { %v1363_v28 = vsel %vm130_vm0, %v6566_v58, %v1361_v55 }
0x1347   :  { %v1414_v34 = vrot.slane %v1363_v28, %v6620_v22 }
0x1349   :  { %v1415_v23 = vcombine.high %v1414_v34, %v1414_v34  ;;  %v1422_v58 = vrot.slane %v1414_v34, %v6620_v22  ;;  %v1403_v63 = vpop.permute.xlu1 %1402 }
0x134a   :  { %v1405_v1 = vsel %vm130_vm0, %v6510_v7, %v1403_v63  ;;  %v1406_v35 = vsel %vm130_vm0, %v6537_v50, %v1403_v63 }
0x134b   :  { %v1429_v61 = vrot.slane %v1415_v23, %v6620_v22  ;;  %v1691_v26 = vsel %vm1356_vm9, %v1422_v58, %v1624_v0  ;;  %v1590_v3 = vcombine.high %v1405_v1, %v1405_v1  ;;  %v1613_v31 = vrot.slane %v1406_v35, %v6620_v22 }
0x134c   :  { %v1694_v39 = vsel %vm1693_vm10, %v1691_v26, %v1634_v6 }
0x134d   :  { %v1692_v4 = vsel %vm1356_vm9, %v1429_v61, %v1628_v24  ;;  %v1697_v7 = vsel %vm1696_vm11, %v1694_v39, %v1644_v36  ;;  %v1597_v50 = vrot.slane %v1590_v3, %v6620_v22  ;;  %v1620_v47 = vrot.slane %v1613_v31, %v6620_v22 }
0x134e   :  { %v1695_v8 = vsel %vm1693_vm10, %v1692_v4, %v1638_v18  ;;  %v1700_v27 = vsel %vm1699_vm12, %v1697_v7, %v1654_v10  ;;  %v1741_v36 = vrot.slane %v1728_v48, %v6202_v38 }
0x134f   :  { %v1698_v14 = vsel %vm1696_vm11, %v1695_v8, %v1648_v17  ;;  %v1598_v43 = vcombine.high %v1597_v50, %v1597_v50  ;;  %v1703_v49 = vsel %vm1702_vm13, %v1700_v27, %v1664_v59  ;;  %v1688_v42 = vrot.slane %v1620_v47, %v6202_v38 }
0x1350   :  { %v1701_v37 = vsel %vm1699_vm12, %v1698_v14, %v1658_v19  ;;  %v1706_v57 = vsel %vm1705_vm14, %v1703_v49, %v1674_v52 }
0x1351   :  { %v1605_v46 = vrot.slane %v1598_v43, %v6620_v22  ;;  %v1704_v33 = vsel %vm1702_vm13, %v1701_v37, %v1668_v12 }
0x1352   :  { %v1707_v56 = vsel %vm1705_vm14, %v1704_v33, %v1678_v9 }
0x1353   :  { %v1606_v32 = vcombine.high %v1605_v46, %v1605_v46  ;;  %v1710_v6 = vsel %vm1708_vm15, %v1707_v56, %v1688_v42 }
0x1355   :  { %v1684_v55 = vrot.slane %v1606_v32, %v6202_v38 }
0x1357   :  { %v1709_v28 = vsel %vm1708_vm15, %v1706_v57, %v1684_v55 }
0x1358   :  { %v1711_v18 = vpack.c.bf16 %v1710_v6, %v1709_v28 }
0x135a   :  { %1861 = vmatmul.mubr.bf16.vlgmr.msra.gmra.mrb[16].mxu1 %v1711_v18 }
0x135b   :  { %2168 = vmatpush1.bf16.msra.mxu1 %v6529_v30  ;;  %2199 = vmatprep.mubr.bf16.mxu1 %v5985_v2 }
0x135c   :  { %2169 = vmatprep.subr.bf16.mxu1 %v6546_v40 }
0x135f   :  { %2170 = vmatpush1.bf16.msra.mxu1 %v6555_v41 }
0x1360   :  { %2171 = vmatprep.subr.bf16.mxu1 %v6572_v60 }
0x1363   :  { %2172 = vmatpush1.bf16.msra.mxu1 %v6580_v25 }
0x1364   :  { %2173 = vmatprep.subr.bf16.mxu1 %v6590_v15 }
0x1367   :  { %2174 = vmatpush1.bf16.msra.mxu1 %v6600_v21 }
0x1368   :  { %2435 = vmatprep.subr.bf16.mxu1 %v6521_v29 }
0x13aa   :  { %v1945_v34 = vpop.f32.mrb[20].mxu0 }
0x13ab   :  { %v1947_v0 = vpop.f32.mrb[21].mxu0  ;;  %v1954_v39 = vrot.slane %v1945_v34, 1 }
0x13ac   :  { %v1949_v5 = vpop.f32.mrb[22].mxu0  ;;  %v1955_v58 = vrot.slane %v1947_v0, 1 }
0x13ad   :  { %v1950_v17 = vpop.f32.mrb[23].mxu0 }
0x142d   :  { %v1862_v53 = vpop.f32.mrb[16].mxu1 }
0x142e   :  { %v1864_v23 = vpop.f32.mrb[17].mxu1  ;;  %v6716_v11 = vadd.f32 %v1862_v53, %v1741_v36 }
0x142f   :  { %v6707_v24 = vadd.f32 %v1864_v23, %v1745_v51  ;;  %v1866_v54 = vpop.f32.mrb[18].mxu1 }
0x1430   :  { %v1868_v62 = vpop.f32.mrb[19].mxu1  ;;  %v6718_v3 = vadd.f32 %v1866_v54, %v1741_v36  ;;  %v1960_v19 = vadd.f32 %v1945_v34, %v6716_v11 }
0x1431   :  { %v6709_v63 = vadd.f32 %v1868_v62, %v1745_v51  ;;  %v1961_v61 = vadd.f32 %v1947_v0, %v6707_v24 }
0x1432   :  { %v1962_v13 = vadd.f32 %v1954_v39, %v6718_v3  ;;  %v5160_v44 = vmul.f32 -1.442695, %v1960_v19 }
0x1433   :  { %5695 = vtanh.f32 %v1961_v61  ;;  %v1963_v26 = vadd.f32 %v1955_v58, %v6709_v63  ;;  %v5161_v49 = vmul.f32 -1.442695, %v1961_v61 }
0x1434   :  { %v5162_v4 = vmul.f32 -1.442695, %v1962_v13 }
0x1435   :  { %5697 = vtanh.f32 %v1963_v26  ;;  %v5163_v52 = vmul.f32 -1.442695, %v1963_v26 }
0x1436   :  { %5699 = vpow2.f32 %v5160_v44 }
0x1437   :  { %5701 = vpow2.f32 %v5162_v4 }
0x143d   :  { %v5696_v1 = vpop.eup %5695 }
0x143e   :  { %1994 = vrot.lane.b32.xlu1 %v5696_v1, %s5986_s2 }
0x143f   :  { %v5698_v35 = vpop.eup %5697 }
0x1440   :  { %1996 = vrot.lane.b32.xlu0 %v5698_v35, %s5986_s2  ;;  %v5700_v8 = vpop.eup %5699 }
0x1441   :  { %v5702_v7 = vpop.eup %5701  ;;  %v1976_v50 = vadd.f32 1.0, %v5700_v8 }
0x1442   :  { %v1978_v31 = vadd.f32 1.0, %v5702_v7 }
0x1443   :  { %5703 = vrcp.f32 %v1976_v50 }
0x1444   :  { %5705 = vrcp.f32 %v1978_v31 }
0x144d   :  { %v5704_v10 = vpop.eup %5703 }
0x144e   :  { %v5706_v12 = vpop.eup %5705  ;;  %v1990_v16 = vmul.f32 0.0, %v5704_v10 }
0x144f   :  { %v1991_v46 = vmul.f32 0.0, %v5706_v12 }
0x14b0   :  { %v1995_v45 = vpop.permute.xlu1 %1994 }
0x14b1   :  { %v2000_v14 = vmul.f32 %v5704_v10, %v1995_v45 }
0x14b2   :  { %v1997_v43 = vpop.permute.xlu0 %1996 }
0x14b3   :  { %v2001_v37 = vmul.f32 %v5706_v12, %v1997_v43  ;;  %2004 = vrot.lane.b32.xlu1 %v2000_v14, %s5986_s2 }
0x14b5   :  { %2006 = vrot.lane.b32.xlu0 %v2001_v37, %s5986_s2 }
0x1525   :  { %v2005_v27 = vpop.permute.xlu1 %2004 }
0x1526   :  { %v6724_v59 = vadd.f32 %v2005_v27, %v1990_v16 }
0x1527   :  { %v2007_v47 = vpop.permute.xlu0 %2006 }
0x1528   :  { %5707 = vtanh.f32 %v6724_v59  ;;  %v6727_v33 = vadd.f32 %v2007_v47, %v1991_v46 }
0x152a   :  { %5709 = vtanh.f32 %v6727_v33  ;;  %v2118_v47 = vrot.slane %v6727_v33, 7 }
0x152b   :  { %5711 = vpow2.f32 %v5161_v49 }
0x152c   :  { %5713 = vpow2.f32 %v5163_v52  ;;  %v2117_v52 = vrot.slane %v6724_v59, 7 }
0x1532   :  { %v5708_v9 = vpop.eup %5707 }
0x1533   :  { %2016 = vrot.lane.b32.xlu1 %v5708_v9, %s5986_s2 }
0x1534   :  { %v5710_v32 = vpop.eup %5709 }
0x1535   :  { %2018 = vrot.lane.b32.xlu0 %v5710_v32, %s5986_s2  ;;  %v5712_v56 = vpop.eup %5711 }
0x1536   :  { %v5714_v55 = vpop.eup %5713  ;;  %v1977_v42 = vadd.f32 1.0, %v5712_v56 }
0x1537   :  { %v1979_v57 = vadd.f32 1.0, %v5714_v55 }
0x1538   :  { %5715 = vrcp.f32 %v1977_v42 }
0x1539   :  { %5717 = vrcp.f32 %v1979_v57 }
0x1542   :  { %v5716_v28 = vpop.eup %5715 }
0x1543   :  { %v5718_v34 = vpop.eup %5717 }
0x15a5   :  { %v2017_v6 = vpop.permute.xlu1 %2016 }
0x15a6   :  { %v6732_v18 = vmul.f32 %v5716_v28, %v2017_v6 }
0x15a7   :  { %v2019_v0 = vpop.permute.xlu0 %2018 }
0x15a8   :  { %v6734_v5 = vmul.f32 %v5718_v34, %v2019_v0  ;;  %v2024_v17 = vpack.c.bf16 %v6732_v18, %v6732_v18 }
0x15aa   :  { %v2025_v48 = vpack.c.bf16 %v6734_v5, %v6734_v5  ;;  %v2028_v53 = vunpack.c.l.b16 %v2024_v17 }
0x15ac   :  { %v2029_v51 = vunpack.c.l.b16 %v2025_v48 }
0x15ae   :  { %v2030_v23 = vrot.slane %v2029_v51, 7 }
0x15b0   :  { %v2031_v58 = vsel %vm340_vm1, %v2030_v23, %v2028_v53 }
0x15b1   :  { %v2032_v54 = vpack.c.b16 %v2031_v58, %v2031_v58 }
0x15b3   :  { %5164 = vmatmul.mubr.msk.bf16.vlgmr.msra.gmra.mrb[24].mxu0 %vm130_vm0, %v2032_v54 }
0x15b4   :  { %2302 = vmatpush1.bf16.msra.mxu0 %v6529_v30  ;;  %2333 = vmatprep.mubr.bf16.mxu0 %v5985_v2 }
0x15b5   :  { %2303 = vmatprep.subr.bf16.mxu0 %v6546_v40 }
0x15b8   :  { %2304 = vmatpush1.bf16.msra.mxu0 %v6555_v41 }
0x15b9   :  { %2305 = vmatprep.subr.bf16.mxu0 %v6572_v60 }
0x15bc   :  { %2306 = vmatpush1.bf16.msra.mxu0 %v6580_v25 }
0x15bd   :  { %2307 = vmatprep.subr.bf16.mxu0 %v6590_v15 }
0x15c0   :  { %2308 = vmatpush1.bf16.msra.mxu0 %v6600_v21 }
0x15c1   :  { %2569 = vmatprep.subr.bf16.mxu0 %v6521_v29 }
0x1686   :  { %v2070_v62 = vpop.f32.mrb[24].mxu0 }
0x1687   :  { %v2072_v61 = vpop.f32.mrb[25].mxu0  ;;  %v2087_v44 = vadd.f32 %v2070_v62, %v6718_v3  ;;  %v2079_v4 = vrot.slane %v2070_v62, 7 }
0x1688   :  { %v2080_v26 = vrot.slane %v2072_v61, 7  ;;  %v2088_v1 = vadd.f32 %v2072_v61, %v6709_v63  ;;  %v2074_v35 = vpop.f32.mrb[26].mxu0 }
0x1689   :  { %v2075_v36 = vpop.f32.mrb[27].mxu0  ;;  %v5167_v8 = vmul.f32 -1.442695, %v2087_v44  ;;  %v2085_v7 = vadd.f32 %v2079_v4, %v6716_v11 }
0x168a   :  { %5719 = vtanh.f32 %v2088_v1  ;;  %v2086_v39 = vadd.f32 %v2080_v26, %v6707_v24  ;;  %v5168_v33 = vmul.f32 -1.442695, %v2088_v1 }
0x168b   :  { %v5165_v50 = vmul.f32 -1.442695, %v2085_v7 }
0x168c   :  { %5721 = vtanh.f32 %v2086_v39  ;;  %v5166_v6 = vmul.f32 -1.442695, %v2086_v39 }
0x168d   :  { %5723 = vpow2.f32 %v5167_v8 }
0x168e   :  { %5725 = vpow2.f32 %v5165_v50 }
0x1694   :  { %v5720_v19 = vpop.eup %5719 }
0x1695   :  { %2127 = vrot.lane.b32.xlu1 %v5720_v19, %s5986_s2 }
0x1696   :  { %v5722_v13 = vpop.eup %5721 }
0x1697   :  { %2125 = vrot.lane.b32.xlu0 %v5722_v13, %s5986_s2  ;;  %v5724_v31 = vpop.eup %5723 }
0x1698   :  { %v2103_v10 = vadd.f32 1.0, %v5724_v31  ;;  %v5726_v45 = vpop.eup %5725 }
0x1699   :  { %v2101_v14 = vadd.f32 1.0, %v5726_v45 }
0x169a   :  { %5727 = vrcp.f32 %v2103_v10 }
0x169b   :  { %5729 = vrcp.f32 %v2101_v14 }
0x16a4   :  { %v5728_v12 = vpop.eup %5727 }
0x16a5   :  { %v5730_v16 = vpop.eup %5729  ;;  %v2122_v9 = vmul.f32 %v5728_v12, %v2118_v47 }
0x16a6   :  { %v2121_v56 = vmul.f32 %v5730_v16, %v2117_v52 }
0x1707   :  { %v2128_v43 = vpop.permute.xlu1 %2127 }
0x1708   :  { %v2132_v37 = vmul.f32 %v5728_v12, %v2128_v43 }
0x1709   :  { %v2126_v27 = vpop.permute.xlu0 %2125 }
0x170a   :  { %2137 = vrot.lane.b32.xlu1 %v2132_v37, %s5986_s2  ;;  %v2131_v46 = vmul.f32 %v5730_v16, %v2126_v27 }
0x170c   :  { %2135 = vrot.lane.b32.xlu0 %v2131_v46, %s5986_s2 }
0x177c   :  { %v2138_v32 = vpop.permute.xlu1 %2137 }
0x177d   :  { %v6760_v49 = vadd.f32 %v2138_v32, %v2122_v9 }
0x177e   :  { %v2136_v55 = vpop.permute.xlu0 %2135 }
0x177f   :  { %5731 = vtanh.f32 %v6760_v49  ;;  %v6764_v42 = vadd.f32 %v2136_v55, %v2121_v56 }
0x1781   :  { %5733 = vtanh.f32 %v6764_v42 }
0x1782   :  { %5735 = vpow2.f32 %v5168_v33 }
0x1783   :  { %5737 = vpow2.f32 %v5166_v6 }
0x1789   :  { %v5732_v57 = vpop.eup %5731 }
0x178a   :  { %2149 = vrot.lane.b32.xlu1 %v5732_v57, %s5986_s2 }
0x178b   :  { %v5734_v28 = vpop.eup %5733 }
0x178c   :  { %2147 = vrot.lane.b32.xlu0 %v5734_v28, %s5986_s2  ;;  %v5736_v34 = vpop.eup %5735 }
0x178d   :  { %v2104_v59 = vadd.f32 1.0, %v5736_v34  ;;  %v5738_v0 = vpop.eup %5737 }
0x178e   :  { %v2102_v17 = vadd.f32 1.0, %v5738_v0 }
0x178f   :  { %5739 = vrcp.f32 %v2104_v59 }
0x1790   :  { %5741 = vrcp.f32 %v2102_v17 }
0x1799   :  { %v5740_v48 = vpop.eup %5739 }
0x179a   :  { %v5742_v58 = vpop.eup %5741 }
0x17fc   :  { %v2150_v51 = vpop.permute.xlu1 %2149 }
0x17fd   :  { %v2154_v53 = vmul.f32 %v5740_v48, %v2150_v51  ;;  %v2250_v48 = vrot.slane %v6764_v42, 7 }
0x17fe   :  { %v2148_v54 = vpop.permute.xlu0 %2147 }
0x17ff   :  { %v2972_v23 = vrot.slane %v2154_v53, 7  ;;  %v2153_v62 = vmul.f32 %v5742_v58, %v2148_v54  ;;  %v2156_v61 = vpack.c.bf16 %v2154_v53, %v2154_v53  ;;  %v3025_v26 = vrot.slane %v2154_v53, 2 }
0x1800   :  { %v2251_v58 = vrot.slane %v6760_v49, 7 }
0x1801   :  { %v2155_v35 = vpack.c.bf16 %v2153_v62, %v2153_v62  ;;  %v6770_v1 = vsel %vm1284_vm2, %v2972_v23, %v2153_v62  ;;  %v3024_v36 = vrot.slane %v2153_v62, 3  ;;  %v2160_v13 = vunpack.c.l.b16 %v2156_v61 }
0x1803   :  { %v2159_v39 = vunpack.c.l.b16 %v2155_v35  ;;  %v6773_v19 = vsel %vm1338_vm3, %v3025_v26, %v3024_v36 }
0x1805   :  { %v2161_v44 = vrot.slane %v2159_v39, 1 }
0x1807   :  { %v2162_v4 = vsel %vm340_vm1, %v2160_v13, %v2161_v44 }
0x1808   :  { %v2163_v8 = vpack.c.b16 %v2162_v4, %v2162_v4 }
0x180a   :  { %5169 = vmatmul.mubr.msk.bf16.vlgmr.msra.gmra.mrb[20].mxu1 %vm130_vm0, %v2163_v8 }
0x180b   :  { %2436 = vmatpush1.bf16.msra.mxu1 %v6529_v30  ;;  %2467 = vmatprep.mubr.bf16.mxu1 %v5985_v2 }
0x180c   :  { %2437 = vmatprep.subr.bf16.mxu1 %v6546_v40 }
0x180f   :  { %2438 = vmatpush1.bf16.msra.mxu1 %v6555_v41 }
0x1810   :  { %2439 = vmatprep.subr.bf16.mxu1 %v6572_v60 }
0x1813   :  { %2440 = vmatpush1.bf16.msra.mxu1 %v6580_v25 }
0x1814   :  { %2441 = vmatprep.subr.bf16.mxu1 %v6590_v15 }
0x1817   :  { %2442 = vmatpush1.bf16.msra.mxu1 %v6600_v21 }
0x1818   :  { %2703 = vmatprep.subr.bf16.mxu1 %v6521_v29 }
0x18dd   :  { %v2201_v7 = vpop.f32.mrb[20].mxu1 }
0x18de   :  { %v2203_v50 = vpop.f32.mrb[21].mxu1  ;;  %v2210_v27 = vrot.slane %v2201_v7, 6  ;;  %v2212_v47 = vrot.slane %v2201_v7, 7 }
0x18df   :  { %v2211_v31 = vrot.slane %v2203_v50, 6  ;;  %v2205_v10 = vpop.f32.mrb[22].mxu1  ;;  %v2213_v45 = vrot.slane %v2203_v50, 7 }
0x18e0   :  { %v2206_v14 = vpop.f32.mrb[23].mxu1  ;;  %v2218_v46 = vadd.f32 %v2210_v27, %v6716_v11  ;;  %v2220_v32 = vadd.f32 %v2212_v47, %v6718_v3 }
0x18e1   :  { %v2219_v12 = vadd.f32 %v2211_v31, %v6707_v24  ;;  %v2221_v43 = vadd.f32 %v2213_v45, %v6709_v63 }
0x18e2   :  { %v5170_v9 = vmul.f32 -1.442695, %v2218_v46  ;;  %v5172_v52 = vmul.f32 -1.442695, %v2220_v32 }
0x18e3   :  { %5743 = vtanh.f32 %v2219_v12  ;;  %v5171_v42 = vmul.f32 -1.442695, %v2219_v12  ;;  %v5173_v36 = vmul.f32 -1.442695, %v2221_v43 }
0x18e4   :  { %5745 = vtanh.f32 %v2221_v43 }
0x18e5   :  { %5747 = vpow2.f32 %v5170_v9 }
0x18e6   :  { %5749 = vpow2.f32 %v5172_v52 }
0x18ed   :  { %v5744_v37 = vpop.eup %5743 }
0x18ee   :  { %2258 = vrot.lane.b32.xlu0 %v5744_v37, %s5986_s2  ;;  %v5746_v16 = vpop.eup %5745 }
0x18ef   :  { %2260 = vrot.lane.b32.xlu1 %v5746_v16, %s5986_s2  ;;  %v5748_v56 = vpop.eup %5747 }
0x18f0   :  { %v2234_v55 = vadd.f32 1.0, %v5748_v56  ;;  %v5750_v57 = vpop.eup %5749 }
0x18f1   :  { %v2236_v28 = vadd.f32 1.0, %v5750_v57 }
0x18f2   :  { %5751 = vrcp.f32 %v2234_v55 }
0x18f3   :  { %5753 = vrcp.f32 %v2236_v28 }
0x18fc   :  { %v5752_v33 = vpop.eup %5751 }
0x18fd   :  { %v5754_v59 = vpop.eup %5753  ;;  %v2254_v51 = vmul.f32 %v5752_v33, %v2250_v48 }
0x18fe   :  { %v2255_v54 = vmul.f32 %v5754_v59, %v2251_v58 }
0x1960   :  { %v2259_v6 = vpop.permute.xlu0 %2258 }
0x1961   :  { %v2264_v34 = vmul.f32 %v5752_v33, %v2259_v6  ;;  %v2261_v0 = vpop.permute.xlu1 %2260 }
0x1962   :  { %v2265_v17 = vmul.f32 %v5754_v59, %v2261_v0 }
0x1963   :  { %2268 = vrot.lane.b32.xlu0 %v2264_v34, %s5986_s2 }
0x1964   :  { %2270 = vrot.lane.b32.xlu1 %v2265_v17, %s5986_s2 }
0x19d5   :  { %v2269_v53 = vpop.permute.xlu0 %2268 }
0x19d6   :  { %v6795_v23 = vadd.f32 %v2269_v53, %v2254_v51  ;;  %v2271_v62 = vpop.permute.xlu1 %2270 }
0x19d7   :  { %v6799_v61 = vadd.f32 %v2271_v62, %v2255_v54 }
0x19d8   :  { %5755 = vtanh.f32 %v6795_v23 }
0x19d9   :  { %5757 = vtanh.f32 %v6799_v61 }
0x19da   :  { %5759 = vpow2.f32 %v5171_v42 }
0x19db   :  { %5761 = vpow2.f32 %v5173_v36 }
0x19e2   :  { %v5756_v26 = vpop.eup %5755 }
0x19e3   :  { %2280 = vrot.lane.b32.xlu0 %v5756_v26, %s5986_s2  ;;  %v5758_v35 = vpop.eup %5757 }
0x19e4   :  { %2282 = vrot.lane.b32.xlu1 %v5758_v35, %s5986_s2  ;;  %v5760_v39 = vpop.eup %5759 }
0x19e5   :  { %v2235_v49 = vadd.f32 1.0, %v5760_v39  ;;  %v5762_v13 = vpop.eup %5761 }
0x19e6   :  { %v2237_v44 = vadd.f32 1.0, %v5762_v13 }
0x19e7   :  { %5763 = vrcp.f32 %v2235_v49 }
0x19e8   :  { %5765 = vrcp.f32 %v2237_v44 }
0x19f1   :  { %v5764_v4 = vpop.eup %5763 }
0x19f2   :  { %v5766_v31 = vpop.eup %5765 }
0x1a55   :  { %v2281_v8 = vpop.permute.xlu0 %2280 }
0x1a56   :  { %v2286_v7 = vmul.f32 %v5764_v4, %v2281_v8  ;;  %v2283_v10 = vpop.permute.xlu1 %2282  ;;  %v2384_v8 = vrot.slane %v6795_v23, 7 }
0x1a57   :  { %v2287_v45 = vmul.f32 %v5766_v31, %v2283_v10  ;;  %v2385_v10 = vrot.slane %v6799_v61, 7 }
0x1a58   :  { %v2288_v50 = vpack.c.bf16 %v2286_v7, %v2286_v7  ;;  %v3016_v37 = vrot.slane %v2286_v7, 5 }
0x1a59   :  { %v2289_v16 = vpack.c.bf16 %v2287_v45, %v2287_v45  ;;  %v2984_v12 = vrot.slane %v2287_v45, 7  ;;  %v3017_v27 = vrot.slane %v2287_v45, 4 }
0x1a5a   :  { %v2292_v14 = vunpack.c.l.b16 %v2288_v50 }
0x1a5b   :  { %v2293_v43 = vunpack.c.l.b16 %v2289_v16  ;;  %v6805_v47 = vsel %vm1297_vm4, %v2984_v12, %v2286_v7  ;;  %v6808_v9 = vsel %vm1329_vm5, %v3017_v27, %v3016_v37 }
0x1a5c   :  { %v2294_v46 = vrot.slane %v2292_v14, 2 }
0x1a5d   :  { %v2295_v32 = vrot.slane %v2293_v43, 1 }
0x1a5f   :  { %v2296_v52 = vsel %vm340_vm1, %v2295_v32, %v2294_v46 }
0x1a60   :  { %v2297_v56 = vpack.c.b16 %v2296_v52, %v2296_v52 }
0x1a62   :  { %5174 = vmatmul.mubr.msk.bf16.vlgmr.msra.gmra.mrb[28].mxu0 %vm130_vm0, %v2297_v56 }
0x1a63   :  { %2570 = vmatpush1.bf16.msra.mxu0 %v6529_v30  ;;  %2601 = vmatprep.mubr.bf16.mxu0 %v5985_v2 }
0x1a64   :  { %2571 = vmatprep.subr.bf16.mxu0 %v6546_v40 }
0x1a67   :  { %2572 = vmatpush1.bf16.msra.mxu0 %v6555_v41 }
0x1a68   :  { %2573 = vmatprep.subr.bf16.mxu0 %v6572_v60 }
0x1a6b   :  { %2574 = vmatpush1.bf16.msra.mxu0 %v6580_v25 }
0x1a6c   :  { %2575 = vmatprep.subr.bf16.mxu0 %v6590_v15 }
0x1a6f   :  { %2576 = vmatpush1.bf16.msra.mxu0 %v6600_v21 }
0x1a70   :  { %2837 = vmatprep.subr.bf16.mxu0 %v6521_v29 }
0x1b35   :  { %v2335_v55 = vpop.f32.mrb[28].mxu0 }
0x1b36   :  { %v2337_v57 = vpop.f32.mrb[29].mxu0  ;;  %v2344_v48 = vrot.slane %v2335_v55, 5  ;;  %v2346_v51 = vrot.slane %v2335_v55, 6 }
0x1b37   :  { %v2345_v28 = vrot.slane %v2337_v57, 5  ;;  %v2339_v30 = vpop.f32.mrb[30].mxu0  ;;  %v2347_v33 = vrot.slane %v2337_v57, 6 }
0x1b38   :  { %v2340_v6 = vpop.f32.mrb[31].mxu0  ;;  %v2352_v29 = vadd.f32 %v2344_v48, %v6716_v11  ;;  %v2354_v58 = vadd.f32 %v2346_v51, %v6718_v3 }
0x1b39   :  { %v2353_v34 = vadd.f32 %v2345_v28, %v6707_v24  ;;  %v2355_v59 = vadd.f32 %v2347_v33, %v6709_v63 }
0x1b3a   :  { %v5175_v53 = vmul.f32 -1.442695, %v2352_v29  ;;  %v5177_v54 = vmul.f32 -1.442695, %v2354_v58 }
0x1b3b   :  { %5767 = vtanh.f32 %v2353_v34  ;;  %v5176_v23 = vmul.f32 -1.442695, %v2353_v34  ;;  %v5178_v27 = vmul.f32 -1.442695, %v2355_v59 }
0x1b3c   :  { %5769 = vtanh.f32 %v2355_v59 }
0x1b3d   :  { %5771 = vpow2.f32 %v5175_v53 }
0x1b3e   :  { %5773 = vpow2.f32 %v5177_v54 }
0x1b45   :  { %v5768_v0 = vpop.eup %5767 }
0x1b46   :  { %2392 = vrot.lane.b32.xlu0 %v5768_v0, %s5986_s2  ;;  %v5770_v17 = vpop.eup %5769 }
0x1b47   :  { %2394 = vrot.lane.b32.xlu1 %v5770_v17, %s5986_s2  ;;  %v5772_v62 = vpop.eup %5771 }
0x1b48   :  { %v2368_v26 = vadd.f32 1.0, %v5772_v62  ;;  %v5774_v35 = vpop.eup %5773 }
0x1b49   :  { %v2370_v42 = vadd.f32 1.0, %v5774_v35 }
0x1b4a   :  { %5775 = vrcp.f32 %v2368_v26  ;;  %v6850_v26 = vld [vmem:[%s7318_s6] ss:$8 sps:$4 sm:$0xff]  }
0x1b4b   :  { %5777 = vrcp.f32 %v2370_v42 }
0x1b54   :  { %v5776_v36 = vpop.eup %5775 }
0x1b55   :  { %v5778_v13 = vpop.eup %5777  ;;  %v2388_v7 = vmul.f32 %v5776_v36, %v2384_v8 }
0x1b56   :  { %v2389_v45 = vmul.f32 %v5778_v13, %v2385_v10 }
0x1bb8   :  { %v2393_v39 = vpop.permute.xlu0 %2392 }
0x1bb9   :  { %v2398_v49 = vmul.f32 %v5776_v36, %v2393_v39  ;;  %v2395_v44 = vpop.permute.xlu1 %2394 }
0x1bba   :  { %v2399_v4 = vmul.f32 %v5778_v13, %v2395_v44 }
0x1bbb   :  { %2402 = vrot.lane.b32.xlu0 %v2398_v49, %s5986_s2 }
0x1bbc   :  { %2404 = vrot.lane.b32.xlu1 %v2399_v4, %s5986_s2 }
0x1c2d   :  { %v2403_v50 = vpop.permute.xlu0 %2402 }
0x1c2e   :  { %v6830_v31 = vadd.f32 %v2403_v50, %v2388_v7  ;;  %v2405_v14 = vpop.permute.xlu1 %2404 }
0x1c2f   :  { %v6834_v37 = vadd.f32 %v2405_v14, %v2389_v45 }
0x1c30   :  { %5779 = vtanh.f32 %v6830_v31 }
0x1c31   :  { %5781 = vtanh.f32 %v6834_v37 }
0x1c32   :  { %5783 = vpow2.f32 %v5176_v23 }
0x1c33   :  { %5785 = vpow2.f32 %v5178_v27 }
0x1c3a   :  { %v5780_v16 = vpop.eup %5779 }
0x1c3b   :  { %2414 = vrot.lane.b32.xlu0 %v5780_v16, %s5986_s2  ;;  %v5782_v12 = vpop.eup %5781 }
0x1c3c   :  { %2416 = vrot.lane.b32.xlu1 %v5782_v12, %s5986_s2  ;;  %v5784_v43 = vpop.eup %5783 }
0x1c3d   :  { %v2369_v61 = vadd.f32 1.0, %v5784_v43  ;;  %v5786_v46 = vpop.eup %5785 }
0x1c3e   :  { %v2371_v32 = vadd.f32 1.0, %v5786_v46  ;;  %v2518_v46 = vrot.slane %v6830_v31, 7 }
0x1c3f   :  { %5787 = vrcp.f32 %v2369_v61 }
0x1c40   :  { %5789 = vrcp.f32 %v2371_v32 }
0x1c49   :  { %v5788_v52 = vpop.eup %5787 }
0x1c4a   :  { %v5790_v28 = vpop.eup %5789 }
0x1cad   :  { %v2415_v56 = vpop.permute.xlu0 %2414 }
0x1cae   :  { %v2420_v55 = vmul.f32 %v5788_v52, %v2415_v56  ;;  %v2417_v30 = vpop.permute.xlu1 %2416 }
0x1caf   :  { %v2421_v33 = vmul.f32 %v5790_v28, %v2417_v30 }
0x1cb0   :  { %v2422_v57 = vpack.c.bf16 %v2420_v55, %v2420_v55  ;;  %v3008_v0 = vrot.slane %v2420_v55, 7 }
0x1cb1   :  { %v2423_v17 = vpack.c.bf16 %v2421_v33, %v2421_v33  ;;  %v2996_v34 = vrot.slane %v2421_v33, 7  ;;  %v3009_v48 = vrot.slane %v2421_v33, 6 }
0x1cb2   :  { %v2426_v6 = vunpack.c.l.b16 %v2422_v57 }
0x1cb3   :  { %v2427_v59 = vunpack.c.l.b16 %v2423_v17  ;;  %v6840_v51 = vsel %vm1310_vm6, %v2996_v34, %v2420_v55  ;;  %v6843_v53 = vsel %vm1320_vm7, %v3009_v48, %v3008_v0  ;;  %v2519_v55 = vrot.slane %v6834_v37, 7 }
0x1cb4   :  { %v2428_v29 = vrot.slane %v2426_v6, 3 }
0x1cb5   :  { %v2429_v58 = vrot.slane %v2427_v59, 2 }
0x1cb7   :  { %v2430_v54 = vsel %vm340_vm1, %v2429_v58, %v2428_v29 }
0x1cb8   :  { %v2431_v62 = vpack.c.b16 %v2430_v54, %v2430_v54 }
0x1cba   :  { %5179 = vmatmul.mubr.msk.bf16.vlgmr.msra.gmra.mrb[24].mxu1 %vm130_vm0, %v2431_v62 }
0x1cbb   :  { %2704 = vmatpush1.bf16.msra.mxu1 %v6850_v26  ;;  %2735 = vmatprep.mubr.bf16.mxu1 %v5985_v2 }
0x1cbc   :  { %2705 = vmatprep.subr.bf16.mxu1 %v6546_v40 }
0x1cbf   :  { %2706 = vmatpush1.bf16.msra.mxu1 %v6555_v41 }
0x1cc0   :  { %2707 = vmatprep.subr.bf16.mxu1 %v6572_v60 }
0x1cc3   :  { %2708 = vmatpush1.bf16.msra.mxu1 %v6580_v25 }
0x1cc4   :  { %2709 = vmatprep.subr.bf16.mxu1 %v6590_v15 }
0x1cc7   :  { %2710 = vmatpush1.bf16.msra.mxu1 %v6600_v21 }
0x1d8d   :  { %v2469_v35 = vpop.f32.mrb[24].mxu1 }
0x1d8e   :  { %v2471_v42 = vpop.f32.mrb[25].mxu1  ;;  %v2478_v25 = vrot.slane %v2469_v35, 4  ;;  %v2480_v21 = vrot.slane %v2469_v35, 5 }
0x1d8f   :  { %v2479_v36 = vrot.slane %v2471_v42, 4  ;;  %v2473_v39 = vpop.f32.mrb[26].mxu1  ;;  %v2481_v49 = vrot.slane %v2471_v42, 5 }
0x1d90   :  { %v2474_v13 = vpop.f32.mrb[27].mxu1  ;;  %v2486_v15 = vadd.f32 %v2478_v25, %v6716_v11  ;;  %v2488_v8 = vadd.f32 %v2480_v21, %v6718_v3 }
0x1d91   :  { %v2487_v44 = vadd.f32 %v2479_v36, %v6707_v24  ;;  %v2489_v40 = vadd.f32 %v2481_v49, %v6709_v63 }
0x1d92   :  { %v5180_v4 = vmul.f32 -1.442695, %v2486_v15  ;;  %v5182_v7 = vmul.f32 -1.442695, %v2488_v8 }
0x1d93   :  { %5791 = vtanh.f32 %v2487_v44  ;;  %v5181_v31 = vmul.f32 -1.442695, %v2487_v44  ;;  %v5183_v0 = vmul.f32 -1.442695, %v2489_v40 }
0x1d94   :  { %5793 = vtanh.f32 %v2489_v40 }
0x1d95   :  { %5795 = vpow2.f32 %v5180_v4 }
0x1d96   :  { %5797 = vpow2.f32 %v5182_v7  ;;  %v5933_v7 = vld [vmem:[%s7318_s6 + $0x24] ss:$8 sps:$4 sm:$0xff]  }
0x1d9d   :  { %v5792_v41 = vpop.eup %5791 }
0x1d9e   :  { %2526 = vrot.lane.b32.xlu0 %v5792_v41, %s5986_s2  ;;  %v5794_v60 = vpop.eup %5793 }
0x1d9f   :  { %2528 = vrot.lane.b32.xlu1 %v5794_v60, %s5986_s2  ;;  %v5796_v50 = vpop.eup %5795 }
0x1da0   :  { %v2502_v10 = vadd.f32 1.0, %v5796_v50  ;;  %v5798_v45 = vpop.eup %5797  ;;  %v5935_v50 = vld [vmem:[%s7318_s6 + $0x34] ss:$8 sps:$4 sm:$0xff]  }
0x1da1   :  { %v2504_v14 = vadd.f32 1.0, %v5798_v45 }
0x1da2   :  { %5799 = vrcp.f32 %v2502_v10  ;;  %v5936_v10 = vld [vmem:[%s7318_s6 + $0x30] ss:$8 sps:$4 sm:$0xff]  }
0x1da3   :  { %5801 = vrcp.f32 %v2504_v14 }
0x1dac   :  { %v5800_v16 = vpop.eup %5799 }
0x1dad   :  { %v5802_v27 = vpop.eup %5801  ;;  %v2522_v32 = vmul.f32 %v5800_v16, %v2518_v46 }
0x1dae   :  { %v2523_v57 = vmul.f32 %v5802_v27, %v2519_v55 }
0x1e10   :  { %v2527_v12 = vpop.permute.xlu0 %2526 }
0x1e11   :  { %v2532_v23 = vmul.f32 %v5800_v16, %v2527_v12  ;;  %v2529_v43 = vpop.permute.xlu1 %2528 }
0x1e12   :  { %v2533_v61 = vmul.f32 %v5802_v27, %v2529_v43 }
0x1e13   :  { %2536 = vrot.lane.b32.xlu0 %v2532_v23, %s5986_s2 }
0x1e14   :  { %2538 = vrot.lane.b32.xlu1 %v2533_v61, %s5986_s2 }
0x1e85   :  { %v2537_v52 = vpop.permute.xlu0 %2536 }
0x1e86   :  { %v6869_v56 = vadd.f32 %v2537_v52, %v2522_v32  ;;  %v2539_v28 = vpop.permute.xlu1 %2538 }
0x1e87   :  { %v6873_v30 = vadd.f32 %v2539_v28, %v2523_v57 }
0x1e88   :  { %5803 = vtanh.f32 %v6869_v56 }
0x1e89   :  { %5805 = vtanh.f32 %v6873_v30 }
0x1e8a   :  { %5807 = vpow2.f32 %v5181_v31 }
0x1e8b   :  { %5809 = vpow2.f32 %v5183_v0 }
0x1e92   :  { %v5804_v33 = vpop.eup %5803 }
0x1e93   :  { %2548 = vrot.lane.b32.xlu0 %v5804_v33, %s5986_s2  ;;  %v5806_v6 = vpop.eup %5805 }
0x1e94   :  { %2550 = vrot.lane.b32.xlu1 %v5806_v6, %s5986_s2  ;;  %v5808_v17 = vpop.eup %5807 }
0x1e95   :  { %v2503_v37 = vadd.f32 1.0, %v5808_v17  ;;  %v5810_v34 = vpop.eup %5809 }
0x1e96   :  { %v2505_v48 = vadd.f32 1.0, %v5810_v34 }
0x1e97   :  { %5811 = vrcp.f32 %v2503_v37 }
0x1e98   :  { %5813 = vrcp.f32 %v2505_v48 }
0x1ea1   :  { %v5812_v59 = vpop.eup %5811 }
0x1ea2   :  { %v5814_v35 = vpop.eup %5813 }
0x1f05   :  { %v2549_v29 = vpop.permute.xlu0 %2548 }
0x1f06   :  { %v2554_v58 = vmul.f32 %v5812_v59, %v2549_v29  ;;  %v2551_v42 = vpop.permute.xlu1 %2550 }
0x1f07   :  { %v2555_v36 = vmul.f32 %v5814_v35, %v2551_v42 }
0x1f08   :  { %v2556_v54 = vpack.c.bf16 %v2554_v58, %v2554_v58  ;;  %v3001_v62 = vrot.slane %v2554_v58, 1 }
0x1f09   :  { %v2557_v49 = vpack.c.bf16 %v2555_v36, %v2555_v36  ;;  %v3005_v13 = vrot.slane %v2555_v36, 7 }
0x1f0a   :  { %v2560_v39 = vunpack.c.l.b16 %v2556_v54  ;;  %v3002_v44 = vsel %vm1310_vm6, %v2555_v36, %v3001_v62  ;;  %v2652_v62 = vrot.slane %v6869_v56, 7 }
0x1f0b   :  { %v6881_v40 = vsel %vm1279_vm8, %v6840_v51, %v3002_v44  ;;  %v2561_v41 = vunpack.c.l.b16 %v2557_v49  ;;  %v3006_v25 = vsel %vm1320_vm7, %v3005_v13, %v2554_v58  ;;  %v5931_v51 = vld [vmem:[%s7318_s6 + $0x14] ss:$8 sps:$4 sm:$0xff]  }
0x1f0c   :  { %v2562_v60 = vrot.slane %v2560_v39, 4  ;;  %v6886_v15 = vsel %vm1279_vm8, %v3006_v25, %v6843_v53  ;;  %v5932_v53 = vld [vmem:[%s7318_s6 + $0x10] ss:$8 sps:$4 sm:$0xff]   ;;  %v2653_v39 = vrot.slane %v6873_v30, 7 }
0x1f0d   :  { %v2563_v21 = vrot.slane %v2561_v41, 3 }
0x1f0f   :  { %v2564_v4 = vsel %vm340_vm1, %v2563_v21, %v2562_v60 }
0x1f10   :  { %v2565_v8 = vpack.c.b16 %v2564_v4, %v2564_v4 }
0x1f12   :  { %5184 = vmatmul.mubr.msk.bf16.vlgmr.msra.gmra.mrb[32].mxu0 %vm130_vm0, %v2565_v8 }
0x1f13   :  { %2838 = vmatpush1.bf16.msra.mxu0 %v6850_v26  ;;  %2869 = vmatprep.mubr.bf16.mxu0 %v5985_v2  ;;  %v5934_v26 = vld [vmem:[%s7318_s6 + $0x20] ss:$8 sps:$4 sm:$0xff]  }
0x1f14   :  { %2839 = vmatprep.subr.bf16.mxu0 %v5931_v51 }
0x1f17   :  { %2840 = vmatpush1.bf16.msra.mxu0 %v5932_v53 }
0x1f18   :  { %2841 = vmatprep.subr.bf16.mxu0 %v5933_v7 }
0x1f1b   :  { %2842 = vmatpush1.bf16.msra.mxu0 %v5934_v26 }
0x1f1c   :  { %2843 = vmatprep.subr.bf16.mxu0 %v5935_v50 }
0x1f1f   :  { %2844 = vmatpush1.bf16.msra.mxu0 %v5936_v10 }
0x1fe5   :  { %v2603_v45 = vpop.f32.mrb[32].mxu0 }
0x1fe6   :  { %v2605_v14 = vpop.f32.mrb[33].mxu0  ;;  %v2612_v52 = vrot.slane %v2603_v45, 3  ;;  %v2614_v57 = vrot.slane %v2603_v45, 4 }
0x1fe7   :  { %v2613_v16 = vrot.slane %v2605_v14, 3  ;;  %v2607_v12 = vpop.f32.mrb[34].mxu0  ;;  %v2615_v23 = vrot.slane %v2605_v14, 4 }
0x1fe8   :  { %v2608_v27 = vpop.f32.mrb[35].mxu0  ;;  %v2620_v55 = vadd.f32 %v2612_v52, %v6716_v11  ;;  %v2622_v33 = vadd.f32 %v2614_v57, %v6718_v3 }
0x1fe9   :  { %v2621_v43 = vadd.f32 %v2613_v16, %v6707_v24  ;;  %v2623_v61 = vadd.f32 %v2615_v23, %v6709_v63 }
0x1fea   :  { %v5185_v28 = vmul.f32 -1.442695, %v2620_v55  ;;  %v5187_v6 = vmul.f32 -1.442695, %v2622_v33 }
0x1feb   :  { %5815 = vtanh.f32 %v2621_v43  ;;  %v5186_v56 = vmul.f32 -1.442695, %v2621_v43  ;;  %v5188_v25 = vmul.f32 -1.442695, %v2623_v61 }
0x1fec   :  { %5817 = vtanh.f32 %v2623_v61 }
0x1fed   :  { %5819 = vpow2.f32 %v5185_v28 }
0x1fee   :  { %5821 = vpow2.f32 %v5187_v6 }
0x1ff5   :  { %v5816_v46 = vpop.eup %5815 }
0x1ff6   :  { %2660 = vrot.lane.b32.xlu0 %v5816_v46, %s5986_s2  ;;  %v5818_v32 = vpop.eup %5817 }
0x1ff7   :  { %2662 = vrot.lane.b32.xlu1 %v5818_v32, %s5986_s2  ;;  %v5820_v31 = vpop.eup %5819 }
0x1ff8   :  { %v2636_v0 = vadd.f32 1.0, %v5820_v31  ;;  %v5822_v17 = vpop.eup %5821 }
0x1ff9   :  { %v2638_v37 = vadd.f32 1.0, %v5822_v17 }
0x1ffa   :  { %5823 = vrcp.f32 %v2636_v0 }
0x1ffb   :  { %5825 = vrcp.f32 %v2638_v37 }
0x2004   :  { %v5824_v34 = vpop.eup %5823 }
0x2005   :  { %v5826_v29 = vpop.eup %5825  ;;  %v2656_v35 = vmul.f32 %v5824_v34, %v2652_v62 }
0x2006   :  { %v2657_v49 = vmul.f32 %v5826_v29, %v2653_v39 }
0x2068   :  { %v2661_v48 = vpop.permute.xlu0 %2660 }
0x2069   :  { %v2666_v59 = vmul.f32 %v5824_v34, %v2661_v48  ;;  %v2663_v58 = vpop.permute.xlu1 %2662 }
0x206a   :  { %v2667_v54 = vmul.f32 %v5826_v29, %v2663_v58 }
0x206b   :  { %2670 = vrot.lane.b32.xlu0 %v2666_v59, %s5986_s2 }
0x206c   :  { %2672 = vrot.lane.b32.xlu1 %v2667_v54, %s5986_s2 }
0x20dd   :  { %v2671_v42 = vpop.permute.xlu0 %2670 }
0x20de   :  { %v6919_v36 = vadd.f32 %v2671_v42, %v2656_v35  ;;  %v2673_v13 = vpop.permute.xlu1 %2672 }
0x20df   :  { %v6923_v44 = vadd.f32 %v2673_v13, %v2657_v49 }
0x20e0   :  { %5827 = vtanh.f32 %v6919_v36 }
0x20e1   :  { %5829 = vtanh.f32 %v6923_v44 }
0x20e2   :  { %5831 = vpow2.f32 %v5186_v56 }
0x20e3   :  { %5833 = vpow2.f32 %v5188_v25 }
0x20ea   :  { %v5828_v41 = vpop.eup %5827 }
0x20eb   :  { %2682 = vrot.lane.b32.xlu0 %v5828_v41, %s5986_s2  ;;  %v5830_v60 = vpop.eup %5829 }
0x20ec   :  { %2684 = vrot.lane.b32.xlu1 %v5830_v60, %s5986_s2  ;;  %v5832_v21 = vpop.eup %5831 }
0x20ed   :  { %v2637_v30 = vadd.f32 1.0, %v5832_v21  ;;  %v5834_v4 = vpop.eup %5833 }
0x20ee   :  { %v2639_v8 = vadd.f32 1.0, %v5834_v4  ;;  %v2786_v4 = vrot.slane %v6919_v36, 7 }
0x20ef   :  { %5835 = vrcp.f32 %v2637_v30 }
0x20f0   :  { %5837 = vrcp.f32 %v2639_v8 }
0x20f9   :  { %v5836_v51 = vpop.eup %5835 }
0x20fa   :  { %v5838_v50 = vpop.eup %5837 }
0x215d   :  { %v2683_v53 = vpop.permute.xlu0 %2682 }
0x215e   :  { %v2688_v7 = vmul.f32 %v5836_v51, %v2683_v53  ;;  %v2685_v10 = vpop.permute.xlu1 %2684 }
0x215f   :  { %v2689_v45 = vmul.f32 %v5838_v50, %v2685_v10 }
0x2160   :  { %v2690_v26 = vpack.c.bf16 %v2688_v7, %v2688_v7  ;;  %v2989_v16 = vrot.slane %v2688_v7, 3 }
0x2161   :  { %v2691_v12 = vpack.c.bf16 %v2689_v45, %v2689_v45  ;;  %v2990_v23 = vrot.slane %v2689_v45, 2  ;;  %v3013_v27 = vrot.slane %v2689_v45, 7 }
0x2162   :  { %v2694_v14 = vunpack.c.l.b16 %v2690_v26 }
0x2163   :  { %v2695_v43 = vunpack.c.l.b16 %v2691_v12  ;;  %v2991_v46 = vsel %vm1297_vm4, %v2990_v23, %v2989_v16  ;;  %v3014_v32 = vsel %vm1329_vm5, %v3013_v27, %v2688_v7  ;;  %v2787_v7 = vrot.slane %v6923_v44, 7 }
0x2164   :  { %v2696_v61 = vrot.slane %v2694_v14, 5  ;;  %v6932_v52 = vsel %vm1279_vm8, %v6805_v47, %v2991_v46  ;;  %v6936_v55 = vsel %vm1279_vm8, %v3014_v32, %v6808_v9  ;;  %vm4093_vm4 = vcmask 64512  }
0x2165   :  { %v2697_v57 = vrot.slane %v2695_v43, 4  ;;  %vm4794_vm5 = vcmask 392192  }
0x2167   :  { %v2698_v28 = vsel %vm340_vm1, %v2697_v57, %v2696_v61 }
0x2168   :  { %v2699_v33 = vpack.c.b16 %v2698_v28, %v2698_v28 }
0x216a   :  { %5189 = vmatmul.mubr.msk.bf16.vlgmr.msra.gmra.mrb[28].mxu1 %vm130_vm0, %v2699_v33 }
0x216b   :  { %3431 = vmatprep.mubr.bf16.mxu1 %v5985_v2 }
0x223d   :  { %v2737_v6 = vpop.f32.mrb[28].mxu1 }
0x223e   :  { %v2739_v31 = vpop.f32.mrb[29].mxu1  ;;  %v2746_v29 = vrot.slane %v2737_v6, 2  ;;  %v2748_v58 = vrot.slane %v2737_v6, 3 }
0x223f   :  { %v2747_v0 = vrot.slane %v2739_v31, 2  ;;  %v2741_v17 = vpop.f32.mrb[30].mxu1  ;;  %v2749_v37 = vrot.slane %v2739_v31, 3 }
0x2240   :  { %v2742_v34 = vpop.f32.mrb[31].mxu1  ;;  %v2754_v2 = vadd.f32 %v2746_v29, %v6716_v11  ;;  %v2756_v62 = vadd.f32 %v2748_v58, %v6718_v3 }
0x2241   :  { %v2755_v47 = vadd.f32 %v2747_v0, %v6707_v24  ;;  %v2757_v9 = vadd.f32 %v2749_v37, %v6709_v63 }
0x2242   :  { %v5190_v54 = vmul.f32 -1.442695, %v2754_v2  ;;  %v5192_v35 = vmul.f32 -1.442695, %v2756_v62 }
0x2243   :  { %5839 = vtanh.f32 %v2755_v47  ;;  %v5191_v36 = vmul.f32 -1.442695, %v2755_v47  ;;  %v5193_v16 = vmul.f32 -1.442695, %v2757_v9 }
0x2244   :  { %5841 = vtanh.f32 %v2757_v9 }
0x2245   :  { %5843 = vpow2.f32 %v5190_v54 }
0x2246   :  { %5845 = vpow2.f32 %v5192_v35 }
0x224d   :  { %v5840_v48 = vpop.eup %5839 }
0x224e   :  { %2794 = vrot.lane.b32.xlu0 %v5840_v48, %s5986_s2  ;;  %v5842_v59 = vpop.eup %5841 }
0x224f   :  { %2796 = vrot.lane.b32.xlu1 %v5842_v59, %s5986_s2  ;;  %v5844_v42 = vpop.eup %5843 }
0x2250   :  { %v2770_v39 = vadd.f32 1.0, %v5844_v42  ;;  %v5846_v49 = vpop.eup %5845 }
0x2251   :  { %v2772_v13 = vadd.f32 1.0, %v5846_v49 }
0x2252   :  { %5847 = vrcp.f32 %v2770_v39 }
0x2253   :  { %5849 = vrcp.f32 %v2772_v13 }
0x225c   :  { %v5848_v41 = vpop.eup %5847 }
0x225d   :  { %v5850_v25 = vpop.eup %5849  ;;  %v2790_v8 = vmul.f32 %v5848_v41, %v2786_v4 }
0x225e   :  { %v2791_v26 = vmul.f32 %v5850_v25, %v2787_v7 }
0x22c0   :  { %v2795_v60 = vpop.permute.xlu0 %2794 }
0x22c1   :  { %v2800_v56 = vmul.f32 %v5848_v41, %v2795_v60  ;;  %v2797_v21 = vpop.permute.xlu1 %2796 }
0x22c2   :  { %v2801_v30 = vmul.f32 %v5850_v25, %v2797_v21 }
0x22c3   :  { %2804 = vrot.lane.b32.xlu0 %v2800_v56, %s5986_s2 }
0x22c4   :  { %2806 = vrot.lane.b32.xlu1 %v2801_v30, %s5986_s2 }
0x2335   :  { %v2805_v51 = vpop.permute.xlu0 %2804 }
0x2336   :  { %v6950_v53 = vadd.f32 %v2805_v51, %v2790_v8  ;;  %v2807_v50 = vpop.permute.xlu1 %2806 }
0x2337   :  { %v6954_v10 = vadd.f32 %v2807_v50, %v2791_v26 }
0x2338   :  { %5851 = vtanh.f32 %v6950_v53 }
0x2339   :  { %5853 = vtanh.f32 %v6954_v10 }
0x233a   :  { %5855 = vpow2.f32 %v5191_v36 }
0x233b   :  { %5857 = vpow2.f32 %v5193_v16 }
0x2342   :  { %v5852_v45 = vpop.eup %5851 }
0x2343   :  { %2816 = vrot.lane.b32.xlu0 %v5852_v45, %s5986_s2  ;;  %v5854_v14 = vpop.eup %5853 }
0x2344   :  { %2818 = vrot.lane.b32.xlu1 %v5854_v14, %s5986_s2  ;;  %v5856_v12 = vpop.eup %5855 }
0x2345   :  { %v2771_v44 = vadd.f32 1.0, %v5856_v12  ;;  %v5858_v23 = vpop.eup %5857 }
0x2346   :  { %v2773_v27 = vadd.f32 1.0, %v5858_v23  ;;  %v2921_v23 = vrot.slane %v6954_v10, 7  ;;  %v5488_v10 = vld [vmem:[%s7319_s7 + $0x14] ss:$8 sps:$4 sm:$0xff]  }
0x2347   :  { %5859 = vrcp.f32 %v2771_v44 }
0x2348   :  { %5861 = vrcp.f32 %v2773_v27 }
0x2351   :  { %v5860_v43 = vpop.eup %5859 }
0x2352   :  { %v5862_v57 = vpop.eup %5861 }
0x23b5   :  { %v2817_v61 = vpop.permute.xlu0 %2816 }
0x23b6   :  { %v2822_v46 = vmul.f32 %v5860_v43, %v2817_v61  ;;  %v2819_v28 = vpop.permute.xlu1 %2818 }
0x23b7   :  { %v2823_v33 = vmul.f32 %v5862_v57, %v2819_v28  ;;  %v5486_v57 = vld [vmem:[%s7319_s7 + $0x10] ss:$8 sps:$4 sm:$0xff]   ;;  %v5491_v28 = vld [vmem:[%s7319_s7 + $0x24] ss:$8 sps:$4 sm:$0xff]  }
0x23b8   :  { %v2824_v32 = vpack.c.bf16 %v2822_v46, %v2822_v46  ;;  %v2977_v31 = vrot.slane %v2822_v46, 5 }
0x23b9   :  { %v2825_v0 = vpack.c.bf16 %v2823_v33, %v2823_v33  ;;  %v2978_v17 = vrot.slane %v2823_v33, 4  ;;  %v3021_v37 = vrot.slane %v2823_v33, 7 }
0x23ba   :  { %v2828_v6 = vunpack.c.l.b16 %v2824_v32  ;;  %v5483_v32 = vld [vmem:[%s7319_s7] ss:$8 sps:$4 sm:$0xff]  }
0x23bb   :  { %v2829_v34 = vunpack.c.l.b16 %v2825_v0  ;;  %v2979_v9 = vsel %vm1284_vm2, %v2978_v17, %v2977_v31  ;;  %v3022_v48 = vsel %vm1338_vm3, %v3021_v37, %v2822_v46  ;;  %v5485_v46 = vld [vmem:[%s7319_s7 + $0x4] ss:$8 sps:$4 sm:$0xff]   ;;  %v5494_v31 = vld [vmem:[%s7319_s7 + $0x34] ss:$8 sps:$4 sm:$0xff]   ;;  %v5492_v0 = vld [vmem:[%s7319_s7 + $0x30] ss:$8 sps:$4 sm:$0xff]  }
0x23bc   :  { %v2830_v47 = vrot.slane %v2828_v6, 6  ;;  %v6963_v59 = vsel %vm1279_vm8, %v6770_v1, %v2979_v9  ;;  %v6967_v29 = vsel %vm1279_vm8, %v3022_v48, %v6773_v19  ;;  %3399 = vmatprep.subr.bf16.mxu1 %v5485_v46  ;;  %v5489_v6 = vld [vmem:[%s7319_s7 + $0x20] ss:$8 sps:$4 sm:$0xff]   ;;  %vm5990_vm2 = vmmov 0  }
0x23bd   :  { %v2831_v2 = vrot.slane %v2829_v34, 5  ;;  %3400 = vmatpush1.bf16.msra.mxu1 %v5483_v32  ;;  %vm3478_vm3 = vcmask 130048  }
0x23be   :  { %3401 = vmatprep.subr.bf16.mxu1 %v5488_v10 }
0x23bf   :  { %v2832_v58 = vsel %vm340_vm1, %v2831_v2, %v2830_v47  ;;  %v3119_v2 = vrot.slane %v6881_v40, %v6620_v22 }
0x23c0   :  { %v2833_v54 = vpack.c.b16 %v2832_v58, %v2832_v58  ;;  %v3112_v58 = vcombine.high %v6881_v40, %v6881_v40  ;;  %v3193_v40 = vcombine.high %v6967_v29, %v6967_v29 }
0x23c1   :  { %3402 = vmatpush1.bf16.msra.mxu1 %v5486_v57 }
0x23c2   :  { %5194 = vmatmul.mubr.msk.bf16.vlgmr.msra.gmra.mrb[36].mxu0 %vm130_vm0, %v2833_v54  ;;  %3403 = vmatprep.subr.bf16.mxu1 %v5491_v28  ;;  %v3127_v54 = vcombine.high %v3119_v2, %v3119_v2 }
0x23c5   :  { %3404 = vmatpush1.bf16.msra.mxu1 %v5489_v6 }
0x23c6   :  { %3405 = vmatprep.subr.bf16.mxu1 %v5494_v31 }
0x23c9   :  { %3406 = vmatpush1.bf16.msra.mxu1 %v5492_v0 }
0x2495   :  { %v2871_v62 = vpop.f32.mrb[36].mxu0 }
0x2496   :  { %v2873_v35 = vpop.f32.mrb[37].mxu0  ;;  %v2880_v56 = vrot.slane %v2871_v62, 1  ;;  %v2882_v21 = vrot.slane %v2871_v62, 2  ;;  %v3144_v62 = vcombine.high %v6886_v15, %v6886_v15  ;;  %v2960_v15 = vrot.slane %v6734_v5, 7 }
0x2497   :  { %v2881_v42 = vrot.slane %v2873_v35, 1  ;;  %v2875_v39 = vpop.f32.mrb[38].mxu0  ;;  %v2883_v49 = vrot.slane %v2873_v35, 2 }
0x2498   :  { %v2876_v13 = vpop.f32.mrb[39].mxu0  ;;  %v2888_v25 = vadd.f32 %v2880_v56, %v6716_v11  ;;  %v2890_v4 = vadd.f32 %v2882_v21, %v6718_v3  ;;  %v2920_v3 = vrot.slane %v6950_v53, 7  ;;  %v3093_v39 = vrot.slane %v6932_v52, %v6620_v22 }
0x2499   :  { %v2889_v41 = vadd.f32 %v2881_v42, %v6707_v24  ;;  %v2891_v1 = vadd.f32 %v2883_v49, %v6709_v63  ;;  %v3032_v42 = vrot.slane %v6732_v18, 1  ;;  %v3168_v13 = vcombine.high %v6936_v55, %v6936_v55 }
0x249a   :  { %v5195_v30 = vmul.f32 -1.442695, %v2888_v25  ;;  %v5197_v8 = vmul.f32 -1.442695, %v2890_v4  ;;  %v3151_v56 = vrot.slane %v3144_v62, %v6620_v22  ;;  %v3094_v55 = vcombine.high %v3093_v39, %v3093_v39 }
0x249b   :  { %5863 = vtanh.f32 %v2889_v41  ;;  %v5196_v17 = vmul.f32 -1.442695, %v2889_v41  ;;  %v5198_v37 = vmul.f32 -1.442695, %v2891_v1  ;;  %v3069_v41 = vrot.slane %v6963_v59, %v6620_v22 }
0x249c   :  { %5865 = vtanh.f32 %v2891_v1  ;;  %v3200_v4 = vrot.slane %v3193_v40, %v6620_v22 }
0x249d   :  { %5867 = vpow2.f32 %v5195_v30  ;;  %v3175_v30 = vrot.slane %v3168_v13, %v6620_v22  ;;  %v3070_v59 = vcombine.high %v3069_v41, %v3069_v41 }
0x249e   :  { %5869 = vpow2.f32 %v5197_v8  ;;  %v3208_v32 = vrot.slane %v3200_v4, %v6620_v22 }
0x249f   :  { %v3183_v28 = vrot.slane %v3175_v30, %v6620_v22 }
0x24a1   :  { %v3191_v62 = vcombine.high %v3183_v28, %v3183_v28 }
0x24a5   :  { %v5864_v19 = vpop.eup %5863 }
0x24a6   :  { %2928 = vrot.lane.b32.xlu0 %v5864_v19, %s5986_s2  ;;  %v5866_v60 = vpop.eup %5865  ;;  %v3126_v19 = vrot.slane %v3112_v58, %v6620_v22 }
0x24a7   :  { %2930 = vrot.lane.b32.xlu1 %v5866_v60, %s5986_s2  ;;  %v5868_v24 = vpop.eup %5867  ;;  %v3141_v60 = vrot.slane %v3127_v54, %v6620_v22  ;;  %v3216_v54 = vcombine.high %v3208_v32, %v3208_v32 }
0x24a8   :  { %v2904_v51 = vadd.f32 1.0, %v5868_v24  ;;  %v5870_v63 = vpop.eup %5869  ;;  %v3134_v8 = vrot.slane %v3126_v19, %v6620_v22 }
0x24a9   :  { %v2906_v7 = vadd.f32 1.0, %v5870_v63 }
0x24aa   :  { %5871 = vrcp.f32 %v2904_v51 }
0x24ab   :  { %5873 = vrcp.f32 %v2906_v7  ;;  %v2961_v7 = vsel %vm340_vm1, %v2960_v15, %v6732_v18 }
0x24b4   :  { %v5872_v26 = vpop.eup %5871 }
0x24b5   :  { %v5874_v14 = vpop.eup %5873  ;;  %v2924_v16 = vmul.f32 %v5872_v26, %v2920_v3 }
0x24b6   :  { %v2925_v27 = vmul.f32 %v5874_v14, %v2921_v23  ;;  %v3201_v23 = vcombine.high %v3200_v4, %v3200_v4 }
0x2518   :  { %v2929_v50 = vpop.permute.xlu0 %2928 }
0x2519   :  { %v2934_v45 = vmul.f32 %v5872_v26, %v2929_v50  ;;  %v2931_v11 = vpop.permute.xlu1 %2930  ;;  %v3142_v26 = vcombine.high %v3141_v60, %v3141_v60  ;;  %v3152_v50 = vcombine.high %v3151_v56, %v3151_v56 }
0x251a   :  { %v2935_v36 = vmul.f32 %v5874_v14, %v2931_v11  ;;  %v3077_v14 = vrot.slane %v3069_v41, %v6620_v22 }
0x251b   :  { %2938 = vrot.lane.b32.xlu0 %v2934_v45, %s5986_s2  ;;  %v3101_v45 = vrot.slane %v3093_v39, %v6620_v22  ;;  %v3166_v57 = vrot.slane %v3152_v50, %v6620_v22  ;;  %v3344_v50 = vld [vmem:[%s7320_s8] sm:$0x3]  ;;  %s5991_s8 = smov 96  }
0x251c   :  { %2940 = vrot.lane.b32.xlu1 %v2935_v36, %s5986_s2 }
0x251d   :  { %v3109_v46 = vcombine.high %v3101_v45, %v3101_v45  ;;  %v3349_v45 = vrot.slane %v3344_v50, %v6202_v38 }
0x251f   :  { %v3264_v58 = vrot.slane %v3109_v46, %v6202_v38 }
0x258d   :  { %v2939_v12 = vpop.permute.xlu0 %2938 }
0x258e   :  { %v2944_v44 = vadd.f32 %v2939_v12, %v2924_v16  ;;  %v2941_v43 = vpop.permute.xlu1 %2940  ;;  %v3108_v16 = vrot.slane %v3094_v55, %v6620_v22  ;;  %v3176_v12 = vcombine.high %v3175_v30, %v3175_v30  ;;  %v3298_v55 = vrot.slane %v3191_v62, %v6202_v38 }
0x258f   :  { %v2945_v61 = vadd.f32 %v2941_v43, %v2925_v27  ;;  %v3159_v27 = vrot.slane %v3151_v56, %v6620_v22  ;;  %v3278_v43 = vrot.slane %v3134_v8, %v6202_v38  ;;  %v3288_v56 = vrot.slane %v3166_v57, %v6202_v38 }
0x2590   :  { %5875 = vtanh.f32 %v2944_v44  ;;  %v3084_v44 = vrot.slane %v3070_v59, %v6620_v22  ;;  %v3110_v31 = vcombine.high %v3108_v16, %v3108_v16  ;;  %v3190_v0 = vrot.slane %v3176_v12, %v6620_v22 }
0x2591   :  { %5877 = vtanh.f32 %v2945_v61  ;;  %v3284_v2 = vrot.slane %v3159_v27, %v6202_v38 }
0x2592   :  { %5879 = vpow2.f32 %v5196_v17  ;;  %v3215_v17 = vrot.slane %v3201_v23, %v6620_v22  ;;  %v3294_v13 = vrot.slane %v3190_v0, %v6202_v38 }
0x2593   :  { %5881 = vpow2.f32 %v5198_v37  ;;  %v3254_v37 = vrot.slane %v3084_v44, %v6202_v38 }
0x2594   :  { %v3217_v41 = vcombine.high %v3215_v17, %v3215_v17 }
0x2596   :  { %v3308_v59 = vrot.slane %v3217_v41, %v6202_v38 }
0x259a   :  { %v5876_v53 = vpop.eup %5875 }
0x259b   :  { %2950 = vrot.lane.b32.xlu0 %v5876_v53, %s5986_s2  ;;  %v5878_v33 = vpop.eup %5877 }
0x259c   :  { %2952 = vrot.lane.b32.xlu1 %v5878_v33, %s5986_s2  ;;  %v5880_v34 = vpop.eup %5879  ;;  %v3085_v33 = vcombine.high %v3077_v14, %v3077_v14 }
0x259d   :  { %v2905_v47 = vadd.f32 1.0, %v5880_v34  ;;  %v5882_v9 = vpop.eup %5881 }
0x259e   :  { %v2907_v48 = vadd.f32 1.0, %v5882_v9 }
0x259f   :  { %5883 = vrcp.f32 %v2905_v47 }
0x25a0   :  { %5885 = vrcp.f32 %v2907_v48  ;;  %v3274_v48 = vrot.slane %v3142_v26, %v6202_v38 }
0x25a9   :  { %v5884_v35 = vpop.eup %5883 }
0x25aa   :  { %v5886_v21 = vpop.eup %5885 }
0x260d   :  { %v2951_v49 = vpop.permute.xlu0 %2950 }
0x260e   :  { %v2956_v1 = vmul.f32 %v5884_v35, %v2951_v49  ;;  %v2953_v29 = vpop.permute.xlu1 %2952  ;;  %v3258_v35 = vrot.slane %v3085_v33, %v6202_v38  ;;  %v3268_v49 = vrot.slane %v3110_v31, %v6202_v38  ;;  %v3353_v33 = vrot.slane %v3344_v50, %v6187_v20 }
0x260f   :  { %v2957_v24 = vmul.f32 %v5886_v21, %v2953_v29 }
0x2610   :  { %v3035_v52 = vsel %vm1279_vm8, %v2956_v1, %v3032_v42  ;;  %v2965_v51 = vrot.slane %v2956_v1, 7 }
0x2611   :  { %v3220_v25 = vcombine.high %v3035_v52, %v3035_v52  ;;  %v2966_v11 = vrot.slane %v2957_v24, 6  ;;  %v3029_v36 = vrot.slane %v2957_v24, 7  ;;  %v3304_v52 = vrot.slane %v3216_v54, %v6202_v38 }
0x2613   :  { %v3227_v63 = vrot.slane %v3220_v25, %v6620_v22  ;;  %v2967_v18 = vsel %vm340_vm1, %v2966_v11, %v2965_v51  ;;  %v3036_v53 = vsel %vm1279_vm8, %v3029_v36, %v6734_v5 }
0x2614   :  { %v2969_v10 = vsel %vm1279_vm8, %v2961_v7, %v2967_v18  ;;  %v3243_v34 = vrot.slane %v3036_v53, %v6620_v22 }
0x2615   :  { %v3228_v3 = vcombine.high %v3227_v63, %v3227_v63  ;;  %v3044_v6 = vrot.slane %v2969_v10, %v6620_v22 }
0x2616   :  { %v3250_v1 = vrot.slane %v3243_v34, %v6620_v22 }
0x2617   :  { %v3235_v61 = vrot.slane %v3228_v3, %v6620_v22  ;;  %v3045_v47 = vcombine.high %v3044_v6, %v3044_v6  ;;  %v3052_v5 = vrot.slane %v3044_v6, %v6620_v22  ;;  %v5988_v3 = vmov 0.0  }
0x2618   :  { %v3318_v8 = vrot.slane %v3250_v1, %v6202_v38  ;;  %5288 = vmatprep.subr.mxu0 %v5988_v3  ;;  %5293 = vmatprep.subr.mxu1 %v5988_v3 }
0x2619   :  { %v3236_v9 = vcombine.high %v3235_v61, %v3235_v61  ;;  %v3059_v42 = vrot.slane %v3045_v47, %v6620_v22  ;;  %v3321_v39 = vsel %vm1356_vm9, %v3052_v5, %v3254_v37  ;;  %5290 = vmatprep.mubr.msk.f32.mxu0 %vm5990_vm2, %v5988_v3 }
0x261a   :  { %v3323_v40 = vsel %vm1693_vm10, %v3321_v39, %v3264_v58 }
0x261b   :  { %v3314_v19 = vrot.slane %v3236_v9, %v6202_v38  ;;  %v3322_v15 = vsel %vm1356_vm9, %v3059_v42, %v3258_v35  ;;  %v3325_v60 = vsel %vm1696_vm11, %v3323_v40, %v3274_v48 }
0x261c   :  { %v3324_v25 = vsel %vm1693_vm10, %v3322_v15, %v3268_v49  ;;  %v3327_v21 = vsel %vm1699_vm12, %v3325_v60, %v3284_v2 }
0x261d   :  { %v3326_v30 = vsel %vm1696_vm11, %v3324_v25, %v3278_v43  ;;  %v3329_v22 = vsel %vm1702_vm13, %v3327_v21, %v3294_v13 }
0x261e   :  { %v3328_v4 = vsel %vm1699_vm12, %v3326_v30, %v3288_v56  ;;  %v3331_v29 = vsel %vm1705_vm14, %v3329_v22, %v3304_v52 }
0x261f   :  { %v3330_v24 = vsel %vm1702_vm13, %v3328_v4, %v3298_v55  ;;  %v7079_v51 = vsel %vm1708_vm15, %v3331_v29, %v3314_v19 }
0x2620   :  { %v3332_v63 = vsel %vm1705_vm14, %v3330_v24, %v3308_v59 }
0x2621   :  { %v7083_v7 = vsel %vm1708_vm15, %v3332_v63, %v3318_v8 }
0x2622   :  { %v3335_v26 = vpack.c.bf16 %v7083_v7, %v7079_v51 }
0x2624   :  { %5207 = vmatmul.mubr.msk.bf16.vlgmr.msra.gmra.mrb[32].mxu1 %vm130_vm0, %v3335_v26 }
0x2625   :  { %5295 = vmatprep.mubr.msk.f32.mxu1 %vm5990_vm2, %v5988_v3 }
0x26f7   :  { %v3433_v14 = vpop.f32.mrb[32].mxu1 }
0x26f8   :  { %v3434_v11 = vadd.f32 %v3433_v14, %v3349_v45  ;;  %v7092_v36 = vpop.f32.mrb[33].mxu1 }
0x26f9   :  { %v3437_v16 = vpop.f32.mrb[34].mxu1  ;;  %v7148_v20 = vadd.f32 %v7092_v36, %v3353_v33 }
0x26fa   :  { %v3438_v12 = vadd.f32 %v3437_v16, %v3349_v45  ;;  %v7096_v44 = vpop.f32.mrb[35].mxu1  ;;  %3444 = vrot.lane.b32.xlu0 %v3434_v11, %s5989_s17 }
0x26fb   :  { %v7156_v0 = vadd.f32 %v7096_v44, %v3353_v33 }
0x26fc   :  { %3446 = vrot.lane.b32.xlu1 %v3438_v12, %s5989_s17 }
0x26fe   :  { %3448 = vrot.lane.b32.xlu0 %v3434_v11, %s5991_s8 }
0x2700   :  { %3450 = vrot.lane.b32.xlu1 %v3438_v12, %s5991_s8 }
0x2702   :  { %3452 = vrot.lane.b32.xlu0 %v3434_v11, %s5992_s18 }
0x2704   :  { %3454 = vrot.lane.b32.xlu1 %v3438_v12, %s5992_s18 }
0x2706   :  { %3476 = vrot.lane.b32.xlu0 %v3434_v11, %s5986_s2 }
0x2708   :  { %3553 = vrot.lane.b32.xlu1 %v3438_v12, %s5986_s2 }
0x276c   :  { %v3445_v38 = vpop.permute.xlu0 %3444 }
0x276d   :  { %3629 = vrot.lane.b32.xlu0 %v3445_v38, %s5986_s2 }
0x276e   :  { %v3447_v23 = vpop.permute.xlu1 %3446 }
0x276f   :  { %3705 = vrot.lane.b32.xlu1 %v3447_v23, %s5986_s2 }
0x2770   :  { %v3449_v27 = vpop.permute.xlu0 %3448 }
0x2771   :  { %3781 = vrot.lane.b32.xlu0 %v3449_v27, %s5986_s2 }
0x2772   :  { %v3451_v43 = vpop.permute.xlu1 %3450 }
0x2773   :  { %3857 = vrot.lane.b32.xlu1 %v3451_v43, %s5986_s2 }
0x2774   :  { %v3453_v18 = vpop.permute.xlu0 %3452 }
0x2775   :  { %3933 = vrot.lane.b32.xlu0 %v3453_v18, %s5986_s2 }
0x2776   :  { %v3455_v61 = vpop.permute.xlu1 %3454 }
0x2777   :  { %4009 = vrot.lane.b32.xlu1 %v3455_v61, %s5986_s2 }
0x2778   :  { %v3477_v46 = vpop.permute.xlu0 %3476 }
0x2779   :  { %5289 = vmatpush3.xpose.msk.msra.mxu0 %vm3478_vm3, %v3477_v46 }
0x277a   :  { %v3554_v32 = vpop.permute.xlu1 %3553  ;;  %5298 = vmatprep.subr.mxu0 %v5988_v3 }
0x277b   :  { %5294 = vmatpush3.xpose.msk.msra.mxu1 %vm3478_vm3, %v3554_v32 }
0x277c   :  { %5291 = vmatmul.mubr.msk.f32.vlgmr.msra.gmra.mrb[40].mxu0 %vm3478_vm3, %v3434_v11  ;;  %5303 = vmatprep.subr.mxu1 %v5988_v3 }
0x277d   :  { %5300 = vmatprep.mubr.msk.f32.mxu0 %vm5990_vm2, %v5988_v3 }
0x277e   :  { %5296 = vmatmul.mubr.msk.f32.vlgmr.msra.gmra.mrb[36].mxu1 %vm3478_vm3, %v3438_v12 }
0x277f   :  { %5305 = vmatprep.mubr.msk.f32.mxu1 %vm5990_vm2, %v5988_v3 }
0x27df   :  { %v3630_v53 = vpop.permute.xlu0 %3629 }
0x27e0   :  { %5299 = vmatpush3.xpose.msk.msra.mxu0 %vm3478_vm3, %v3630_v53 }
0x27e1   :  { %v3706_v10 = vpop.permute.xlu1 %3705  ;;  %5308 = vmatprep.subr.mxu0 %v5988_v3 }
0x27e2   :  { %5304 = vmatpush3.xpose.msk.msra.mxu1 %vm3478_vm3, %v3706_v10 }
0x27e3   :  { %5301 = vmatmul.mubr.msk.f32.vlgmr.msra.gmra.mrb[42].mxu0 %vm3478_vm3, %v3445_v38  ;;  %v3782_v57 = vpop.permute.xlu0 %3781  ;;  %5313 = vmatprep.subr.mxu1 %v5988_v3 }
0x27e4   :  { %5309 = vmatpush3.xpose.msk.msra.mxu0 %vm3478_vm3, %v3782_v57  ;;  %5310 = vmatprep.mubr.msk.f32.mxu0 %vm5990_vm2, %v5988_v3 }
0x27e5   :  { %5306 = vmatmul.mubr.msk.f32.vlgmr.msra.gmra.mrb[38].mxu1 %vm3478_vm3, %v3447_v23  ;;  %v3858_v28 = vpop.permute.xlu1 %3857  ;;  %5318 = vmatprep.subr.mxu0 %v5988_v3 }
0x27e6   :  { %5314 = vmatpush3.xpose.msk.msra.mxu1 %vm3478_vm3, %v3858_v28  ;;  %5315 = vmatprep.mubr.msk.f32.mxu1 %vm5990_vm2, %v5988_v3 }
0x27e7   :  { %5311 = vmatmul.mubr.msk.f32.vlgmr.msra.gmra.mrb[44].mxu0 %vm3478_vm3, %v3449_v27  ;;  %v3934_v6 = vpop.permute.xlu0 %3933  ;;  %5323 = vmatprep.subr.mxu1 %v5988_v3 }
0x27e8   :  { %5319 = vmatpush3.xpose.msk.msra.mxu0 %vm3478_vm3, %v3934_v6  ;;  %5320 = vmatprep.mubr.msk.f32.mxu0 %vm5990_vm2, %v5988_v3 }
0x27e9   :  { %5316 = vmatmul.mubr.msk.f32.vlgmr.msra.gmra.mrb[40].mxu1 %vm3478_vm3, %v3451_v43  ;;  %v4010_v31 = vpop.permute.xlu1 %4009  ;;  %5328 = vmatprep.subr.mxu0 %v5988_v3 }
0x27ea   :  { %5324 = vmatpush3.xpose.msk.msra.mxu1 %vm3478_vm3, %v4010_v31  ;;  %5325 = vmatprep.mubr.msk.f32.mxu1 %vm5990_vm2, %v5988_v3 }
0x27eb   :  { %5321 = vmatmul.mubr.msk.f32.vlgmr.msra.gmra.mrb[46].mxu0 %vm3478_vm3, %v3453_v18  ;;  %5333 = vmatprep.subr.mxu1 %v5988_v3 }
0x27ec   :  { %5329 = vmatpush3.msra.mxu0 %v7148_v20  ;;  %5330 = vmatprep.mubr.msk.f32.mxu0 %vm5990_vm2, %v5988_v3 }
0x27ed   :  { %5326 = vmatmul.mubr.msk.f32.vlgmr.msra.gmra.mrb[42].mxu1 %vm3478_vm3, %v3455_v61  ;;  %5338 = vmatprep.subr.mxu0 %v5988_v3 }
0x27ee   :  { %5334 = vmatpush3.msra.mxu1 %v7156_v0  ;;  %5335 = vmatprep.mubr.msk.f32.mxu1 %vm5990_vm2, %v5988_v3 }
0x27ef   :  { %5343 = vmatprep.subr.mxu1 %v5988_v3 }
0x284f   :  { %v3549_v17 = vpop.f32.mrb[40].mxu0 }
0x2850   :  { %v4085_v37 = vmul.f32 0.25, %v3549_v17  ;;  %v5292_v34 = vpop.f32.mrb[41].mxu0 }
0x2851   :  { %v3625_v47 = vpop.f32.mrb[36].mxu1 }
0x2852   :  { %v4086_v5 = vmul.f32 0.25, %v3625_v47  ;;  %v5297_v9 = vpop.f32.mrb[37].mxu1  ;;  %v4094_v48 = vsel %vm4093_vm4, %v4085_v37, -inf }
0x2853   :  { %4095 = vmax.xlane.f32.xlu0 %v4094_v48 }
0x2854   :  { %v4097_v2 = vsel %vm4093_vm4, %v4086_v5, -inf }
0x2855   :  { %4098 = vmax.xlane.f32.xlu1 %v4097_v2 }
0x28b6   :  { %v3701_v58 = vpop.f32.mrb[42].mxu0 }
0x28b7   :  { %v4087_v54 = vmul.f32 0.25, %v3701_v58  ;;  %v5302_v62 = vpop.f32.mrb[43].mxu0 }
0x28b8   :  { %v3777_v35 = vpop.f32.mrb[38].mxu1 }
0x28b9   :  { %v4088_v42 = vmul.f32 0.25, %v3777_v35  ;;  %v5307_v39 = vpop.f32.mrb[39].mxu1  ;;  %v4100_v49 = vsel %vm4093_vm4, %v4087_v54, -inf }
0x28ba   :  { %4101 = vmax.xlane.f32.xlu0 %v4100_v49  ;;  %v3853_v13 = vpop.f32.mrb[44].mxu0 }
0x28bb   :  { %v4089_v41 = vmul.f32 0.25, %v3853_v13  ;;  %v5312_v40 = vpop.f32.mrb[45].mxu0  ;;  %v4103_v60 = vsel %vm4093_vm4, %v4088_v42, -inf }
0x28bc   :  { %v3929_v1 = vpop.f32.mrb[40].mxu1 }
0x28bd   :  { %v4090_v19 = vmul.f32 0.25, %v3929_v1  ;;  %v5317_v15 = vpop.f32.mrb[41].mxu1  ;;  %v4106_v56 = vsel %vm4093_vm4, %v4089_v41, -inf }
0x28be   :  { %4104 = vmax.xlane.f32.xlu0 %v4103_v60  ;;  %4107 = vmax.xlane.f32.xlu1 %v4106_v56  ;;  %v4005_v52 = vpop.f32.mrb[46].mxu0 }
0x28bf   :  { %v4091_v25 = vmul.f32 0.25, %v4005_v52  ;;  %v5322_v21 = vpop.f32.mrb[47].mxu0  ;;  %v4109_v59 = vsel %vm4093_vm4, %v4090_v19, -inf }
0x28c0   :  { %v4081_v55 = vpop.f32.mrb[42].mxu1 }
0x28c1   :  { %v4092_v30 = vmul.f32 0.25, %v4081_v55  ;;  %v5327_v22 = vpop.f32.mrb[43].mxu1  ;;  %v4112_v4 = vsel %vm4093_vm4, %v4091_v25, -inf }
0x28c2   :  { %4110 = vmax.xlane.f32.xlu0 %v4109_v59  ;;  %4113 = vmax.xlane.f32.xlu1 %v4112_v4 }
0x28c3   :  { %v4115_v29 = vsel %vm4093_vm4, %v4092_v30, -inf }
0x28c6   :  { %4116 = vmax.xlane.f32.xlu0 %v4115_v29 }
0x28d3   :  { %3458 = vrot.lane.b32.xlu1 %v7148_v20, %s5989_s17 }
0x28d7   :  { %3464 = vrot.lane.b32.xlu1 %v7148_v20, %s5991_s8 }
0x28db   :  { %3466 = vrot.lane.b32.xlu1 %v7156_v0, %s5991_s8 }
0x28dc   :  { %3460 = vrot.lane.b32.xlu0 %v7156_v0, %s5989_s17 }
0x28e0   :  { %v4096_v63 = vpop.xlane.xlu0 %4095 }
0x28e1   :  { %v4118_v26 = vsub.f32 %v4085_v37, %v4096_v63 }
0x28e2   :  { %v4099_v8 = vpop.xlane.xlu1 %4098 }
0x28e3   :  { %v4119_v24 = vsub.f32 %v4086_v5, %v4099_v8  ;;  %v4126_v45 = vmul.f32 1.442695, %v4118_v26 }
0x28e5   :  { %v4128_v50 = vmul.f32 1.442695, %v4119_v24 }
0x28e7   :  { %5887 = vpow2.f32 %v4128_v50 }
0x28e8   :  { %5889 = vpow2.f32 %v4126_v45 }
0x28f1   :  { %v5888_v14 = vpop.eup %5887 }
0x28f2   :  { %v4145_v11 = vsel %vm4093_vm4, %v5888_v14, 0.0  ;;  %v5890_v36 = vpop.eup %5889 }
0x28f3   :  { %v4142_v16 = vsel %vm4093_vm4, %v5890_v36, 0.0 }
0x28fb   :  { %4146 = vadd.xlane.f32.xlu0 %v4145_v11 }
0x28ff   :  { %4143 = vadd.xlane.f32.xlu1 %v4142_v16 }
0x2947   :  { %v4102_v12 = vpop.xlane.xlu0 %4101 }
0x2948   :  { %v4120_v44 = vsub.f32 %v4087_v54, %v4102_v12 }
0x294a   :  { %v4130_v38 = vmul.f32 1.442695, %v4120_v44 }
0x294b   :  { %v4105_v23 = vpop.xlane.xlu0 %4104  ;;  %v4108_v27 = vpop.xlane.xlu1 %4107 }
0x294c   :  { %5891 = vpow2.f32 %v4130_v38  ;;  %v4121_v43 = vsub.f32 %v4088_v42, %v4105_v23  ;;  %v4122_v18 = vsub.f32 %v4089_v41, %v4108_v27 }
0x294e   :  { %v4132_v61 = vmul.f32 1.442695, %v4121_v43  ;;  %v4134_v46 = vmul.f32 1.442695, %v4122_v18 }
0x294f   :  { %v4111_v32 = vpop.xlane.xlu0 %4110  ;;  %v4114_v53 = vpop.xlane.xlu1 %4113 }
0x2950   :  { %5893 = vpow2.f32 %v4132_v61  ;;  %v4123_v10 = vsub.f32 %v4090_v19, %v4111_v32  ;;  %v4124_v57 = vsub.f32 %v4091_v25, %v4114_v53  ;;  %v5495_v61 = vld [vmem:[%s7321_s9] sm:$0xff]  }
0x2951   :  { %5895 = vpow2.f32 %v4134_v46 }
0x2952   :  { %v4136_v28 = vmul.f32 1.442695, %v4123_v10  ;;  %v4138_v33 = vmul.f32 1.442695, %v4124_v57  ;;  %v5496_v57 = vld [vmem:[%s7321_s9 + $0x8] sm:$0xff]  }
0x2953   :  { %v4117_v6 = vpop.xlane.xlu0 %4116  ;;  %v3459_v39 = vpop.permute.xlu1 %3458 }
0x2954   :  { %5897 = vpow2.f32 %v4136_v28  ;;  %v4125_v31 = vsub.f32 %v4092_v30, %v4117_v6 }
0x2955   :  { %5899 = vpow2.f32 %v4138_v33  ;;  %v5497_v33 = vld [vmem:[%s7321_s9 + $0x10] sm:$0xff]  }
0x2956   :  { %v5892_v17 = vpop.eup %5891  ;;  %v4140_v37 = vmul.f32 1.442695, %v4125_v31 }
0x2957   :  { %v4148_v34 = vsel %vm4093_vm4, %v5892_v17, 0.0  ;;  %v3465_v49 = vpop.permute.xlu1 %3464  ;;  %v3461_v13 = vpop.permute.xlu0 %3460 }
0x2958   :  { %5901 = vpow2.f32 %v4140_v37  ;;  %4149 = vadd.xlane.f32.xlu1 %v4148_v34 }
0x295a   :  { %v5894_v47 = vpop.eup %5893 }
0x295b   :  { %v5896_v5 = vpop.eup %5895  ;;  %v4151_v9 = vsel %vm4093_vm4, %v5894_v47, 0.0  ;;  %v3467_v41 = vpop.permute.xlu1 %3466 }
0x295c   :  { %4152 = vadd.xlane.f32.xlu0 %v4151_v9  ;;  %v4154_v48 = vsel %vm4093_vm4, %v5896_v5, 0.0 }
0x295d   :  { %4155 = vadd.xlane.f32.xlu1 %v4154_v48 }
0x295e   :  { %v5898_v2 = vpop.eup %5897 }
0x295f   :  { %v5900_v58 = vpop.eup %5899  ;;  %v4157_v54 = vsel %vm4093_vm4, %v5898_v2, 0.0 }
0x2960   :  { %4158 = vadd.xlane.f32.xlu0 %v4157_v54  ;;  %v4160_v62 = vsel %vm4093_vm4, %v5900_v58, 0.0 }
0x2961   :  { %4161 = vadd.xlane.f32.xlu1 %v4160_v62 }
0x2962   :  { %v7190_v35 = vpop.eup %5901 }
0x2963   :  { %v4163_v42 = vsel %vm4093_vm4, %v7190_v35, 0.0 }
0x2964   :  { %4164 = vadd.xlane.f32.xlu0 %v4163_v42 }
0x2972   :  { %3472 = vrot.lane.b32.xlu1 %v7156_v0, %s5992_s18 }
0x297a   :  { %3470 = vrot.lane.b32.xlu0 %v7148_v20, %s5992_s18 }
0x2988   :  { %v4147_v40 = vpop.xlane.xlu0 %4146 }
0x2989   :  { %5903 = vrcp.f32 %v4147_v40 }
0x298c   :  { %v4144_v1 = vpop.xlane.xlu1 %4143 }
0x298d   :  { %5905 = vrcp.f32 %v4144_v1 }
0x2993   :  { %v5904_v19 = vpop.eup %5903 }
0x2994   :  { %v4169_v15 = vmul.f32 %v5904_v19, %v5888_v14 }
0x2996   :  { %5336 = vmatmul.mubr.msk.f32.vlgmr.msra.gmra.mrb[44].mxu1 %vm4093_vm4, %v4169_v15 }
0x2997   :  { %v5906_v60 = vpop.eup %5905  ;;  %5344 = vmatpush3.msra.mxu1 %v3461_v13  ;;  %5345 = vmatprep.mubr.msk.f32.mxu1 %vm5990_vm2, %v5988_v3 }
0x2998   :  { %v4167_v0 = vmul.f32 %v5906_v60, %v5890_v36  ;;  %5353 = vmatprep.subr.mxu1 %v5988_v3 }
0x299a   :  { %5331 = vmatmul.mubr.msk.f32.vlgmr.msra.gmra.mrb[48].mxu0 %vm4093_vm4, %v4167_v0 }
0x299b   :  { %5339 = vmatpush3.msra.mxu0 %v3459_v39  ;;  %5340 = vmatprep.mubr.msk.f32.mxu0 %vm5990_vm2, %v5988_v3 }
0x299c   :  { %5348 = vmatprep.subr.mxu0 %v5988_v3 }
0x29e5   :  { %v4150_v20 = vpop.xlane.xlu1 %4149 }
0x29e6   :  { %5907 = vrcp.f32 %v4150_v20 }
0x29e9   :  { %v4153_v56 = vpop.xlane.xlu0 %4152 }
0x29ea   :  { %5909 = vrcp.f32 %v4153_v56  ;;  %v4156_v52 = vpop.xlane.xlu1 %4155 }
0x29eb   :  { %5911 = vrcp.f32 %v4156_v52 }
0x29ed   :  { %v4159_v25 = vpop.xlane.xlu0 %4158 }
0x29ee   :  { %5913 = vrcp.f32 %v4159_v25  ;;  %v4162_v21 = vpop.xlane.xlu1 %4161 }
0x29ef   :  { %5915 = vrcp.f32 %v4162_v21 }
0x29f0   :  { %v5908_v55 = vpop.eup %5907 }
0x29f1   :  { %v4171_v30 = vmul.f32 %v5908_v55, %v5892_v17  ;;  %v4165_v22 = vpop.xlane.xlu0 %4164  ;;  %v5498_v17 = vld [vmem:[%s7321_s9 + $0x18] sm:$0xff]  }
0x29f2   :  { %5917 = vrcp.f32 %v4165_v22  ;;  %v3473_v16 = vpop.permute.xlu1 %3472 }
0x29f3   :  { %5341 = vmatmul.mubr.msk.f32.vlgmr.msra.gmra.mrb[50].mxu0 %vm4093_vm4, %v4171_v30  ;;  %v4799_v26 = vadd.f32 %v4171_v30, %v4167_v0  ;;  %v5232_v30 = vld [vmem:[%s7322_s10] ss:$0 sm:$0xff] }
0x29f4   :  { %v5910_v59 = vpop.eup %5909  ;;  %5349 = vmatpush3.msra.mxu0 %v3465_v49  ;;  %5350 = vmatprep.mubr.msk.f32.mxu0 %vm5990_vm2, %v5988_v3 }
0x29f5   :  { %v5912_v4 = vpop.eup %5911  ;;  %v4173_v29 = vmul.f32 %v5910_v59, %v5894_v47  ;;  %5358 = vmatprep.subr.mxu0 %v5988_v3  ;;  %v3471_v24 = vpop.permute.xlu0 %3470 }
0x29f6   :  { %v4175_v8 = vmul.f32 %v5912_v4, %v5896_v5 }
0x29f7   :  { %5346 = vmatmul.mubr.msk.f32.vlgmr.msra.gmra.mrb[46].mxu1 %vm4093_vm4, %v4173_v29  ;;  %v4800_v36 = vadd.f32 %v4173_v29, %v4169_v15 }
0x29f8   :  { %v5914_v63 = vpop.eup %5913  ;;  %5351 = vmatmul.mubr.msk.f32.vlgmr.msra.gmra.mrb[52].mxu0 %vm4093_vm4, %v4175_v8  ;;  %5354 = vmatpush3.msra.mxu1 %v3467_v41  ;;  %v4801_v11 = vadd.f32 %v4799_v26, %v4175_v8 }
0x29f9   :  { %v5916_v50 = vpop.eup %5915  ;;  %v4177_v45 = vmul.f32 %v5914_v63, %v5898_v2  ;;  %5359 = vmatpush3.msra.mxu0 %v3471_v24  ;;  %5355 = vmatprep.mubr.msk.f32.mxu1 %vm5990_vm2, %v5988_v3 }
0x29fa   :  { %v4179_v14 = vmul.f32 %v5916_v50, %v5900_v58  ;;  %5360 = vmatprep.mubr.msk.f32.mxu0 %vm5990_vm2, %v5988_v3  ;;  %5363 = vmatprep.subr.mxu1 %v5988_v3 }
0x29fb   :  { %5356 = vmatmul.mubr.msk.f32.vlgmr.msra.gmra.mrb[48].mxu1 %vm4093_vm4, %v4177_v45  ;;  %5368 = vmatprep.subr.bf16.mxu0 %v5988_v3  ;;  %v4802_v23 = vadd.f32 %v4800_v36, %v4177_v45 }
0x29fc   :  { %v5918_v12 = vpop.eup %5917  ;;  %5361 = vmatmul.mubr.msk.f32.vlgmr.msra.gmra.mrb[54].mxu0 %vm4093_vm4, %v4179_v14  ;;  %5364 = vmatpush3.msra.mxu1 %v3473_v16  ;;  %v4803_v44 = vadd.f32 %v4801_v11, %v4179_v14 }
0x29fd   :  { %v4181_v38 = vmul.f32 %v5918_v12, %v7190_v35  ;;  %5365 = vmatprep.mubr.msk.f32.mxu1 %vm5990_vm2, %v5988_v3  ;;  %5376 = vmatprep.mubr.msk.bf16.mxu0 %vm5990_vm2, %v5988_v3 }
0x29fe   :  { %5380 = vmatprep.subr.bf16.mxu1 %v5988_v3  ;;  %v4805_v27 = vmul.f32 0.25, %v4803_v44  ;;  %5369 = vmatpush3.bf16.msra.mxu0 %v5495_v61  ;;  %v5502_v61 = vld [vmem:[%s7325_s13 + $0x18] sm:$0xff]  }
0x29ff   :  { %5366 = vmatmul.mubr.msk.f32.vlgmr.msra.gmra.mrb[50].mxu1 %vm4093_vm4, %v4181_v38  ;;  %v4804_v43 = vadd.f32 %v4802_v23, %v4181_v38  ;;  %5370 = vmatprep.subr.bf16.mxu0 %v5988_v3 }
0x2a00   :  { %5388 = vmatprep.mubr.msk.bf16.mxu1 %vm5990_vm2, %v5988_v3  ;;  %4807 = vst.msk [vmem:[#allocation4] sm:$0xff] %vm4093_vm4, %v4805_v27 }
0x2a01   :  { %v4806_v18 = vmul.f32 0.25, %v4804_v43  ;;  %v5500_v43 = vld [vmem:[%s7325_s13 + $0x8] sm:$0xff]  }
0x2a02   :  { %5371 = vmatpush3.bf16.msra.mxu0 %v5496_v57 }
0x2a03   :  { %4808 = vst.msk [vmem:[#allocation4 + $0x8] sm:$0xff] %vm4093_vm4, %v4806_v18  ;;  %5372 = vmatprep.subr.bf16.mxu0 %v5988_v3  ;;  %v5501_v18 = vld [vmem:[%s7325_s13 + $0x10] sm:$0xff]  }
0x2a06   :  { %5373 = vmatpush3.bf16.msra.mxu0 %v5497_v33 }
0x2a07   :  { %5374 = vmatprep.subr.bf16.mxu0 %v5988_v3 }
0x2a0a   :  { %5375 = vmatpush3.bf16.msra.mxu0 %v5498_v17 }
0x2a69   :  { %v4324_v46 = vpop.f32.mrb[44].mxu1 }
0x2a6a   :  { %v5337_v32 = vpop.f32.mrb[45].mxu1 }
0x2a6d   :  { %v4251_v53 = vpop.f32.mrb[48].mxu0 }
0x2a6e   :  { %v5332_v10 = vpop.f32.mrb[49].mxu0 }
0x2ac6   :  { %v4397_v28 = vpop.f32.mrb[50].mxu0 }
0x2ac7   :  { %v5342_v6 = vpop.f32.mrb[51].mxu0 }
0x2ac8   :  { %v5238_v6 = vld [vmem:[%s7323_s11] ss:$0 sm:$0xff]  ;;  %s5996_s11 = smov [#allocation4]  }
0x2aca   :  { %v4470_v31 = vpop.f32.mrb[46].mxu1 }
0x2acb   :  { %v5407_v37 = vpack.i.bf16 %v4470_v31, %v4397_v28  ;;  %v4543_v34 = vpop.f32.mrb[52].mxu0  ;;  %v5347_v47 = vpop.f32.mrb[47].mxu1 }
0x2acc   :  { %v5352_v5 = vpop.f32.mrb[53].mxu0 }
0x2acd   :  { %5408 = vrot.lane.b32.xlu0 %v5407_v37, %s5993_s5 }
0x2ace   :  { %v4616_v9 = vpop.f32.mrb[48].mxu1 }
0x2acf   :  { %v5412_v48 = vpack.i.bf16 %v4616_v9, %v4543_v34  ;;  %v4689_v2 = vpop.f32.mrb[54].mxu0  ;;  %v5357_v58 = vpop.f32.mrb[49].mxu1 }
0x2ad0   :  { %v5362_v54 = vpop.f32.mrb[55].mxu0 }
0x2ad1   :  { %5413 = vrot.lane.b32.xlu1 %v5412_v48, %s5994_s24 }
0x2ad2   :  { %v4762_v62 = vpop.f32.mrb[50].mxu1 }
0x2ad3   :  { %v5417_v35 = vpack.i.bf16 %v4762_v62, %v4689_v2  ;;  %v5367_v42 = vpop.f32.mrb[51].mxu1 }
0x2ad5   :  { %5418 = vrot.lane.b32.xlu0 %v5417_v35, %s5995_s25 }
0x2b3f   :  { %v5409_v39 = vpop.permute.xlu0 %5408 }
0x2b40   :  { %v5411_v13 = vunpack.i.h.bf16 %v5409_v39  ;;  %v5410_v41 = vunpack.i.l.bf16 %v5409_v39 }
0x2b42   :  { %v4791_v15 = vsel %vm3478_vm3, %v4324_v46, %v5411_v13  ;;  %v4790_v60 = vsel %vm3478_vm3, %v4251_v53, %v5410_v41 }
0x2b43   :  { %v5414_v49 = vpop.permute.xlu1 %5413 }
0x2b44   :  { %v5416_v40 = vunpack.i.h.bf16 %v5414_v49  ;;  %v5415_v1 = vunpack.i.l.bf16 %v5414_v49 }
0x2b46   :  { %v4793_v56 = vsel %vm1279_vm8, %v4791_v15, %v5416_v40  ;;  %v4792_v52 = vsel %vm1279_vm8, %v4790_v60, %v5415_v1 }
0x2b47   :  { %v5419_v19 = vpop.permute.xlu0 %5418 }
0x2b48   :  { %v5421_v0 = vunpack.i.h.bf16 %v5419_v19  ;;  %v5420_v20 = vunpack.i.l.bf16 %v5419_v19 }
0x2b4a   :  { %v4796_v25 = vsel %vm4794_vm5, %v4793_v56, %v5421_v0  ;;  %v4795_v21 = vsel %vm4794_vm5, %v4792_v52, %v5420_v20 }
0x2b4b   :  { %v4809_v55 = vpack.c.bf16 %v4796_v25, %v4795_v21 }
0x2b4d   :  { %5377 = vmatmul.mubr.msk.bf16.vlgmr.msra.gmra.mrb[56].mxu0 %vm130_vm0, %v4809_v55 }
0x2c20   :  { %v4886_v22 = vpop.f32.mrb[56].mxu0 }
0x2c21   :  { %v4887_v59 = vadd.f32 %v5232_v30, %v4886_v22  ;;  %v5378_v4 = vpop.f32.mrb[57].mxu0 }
0x2c22   :  { %v4889_v29 = vpop.f32.mrb[58].mxu0 }
0x2c23   :  { %v4893_v8 = vadd.f32 %v4887_v59, %v7079_v51  ;;  %v4890_v24 = vadd.f32 %v5232_v30, %v4889_v29  ;;  %v5379_v63 = vpop.f32.mrb[59].mxu0 }
0x2c25   :  { %v4894_v26 = vadd.f32 %v4890_v24, %v7083_v7  ;;  %v4895_v50 = vsel %vm130_vm0, %v4893_v8, 0.0  ;;  %v5499_v7 = vld [vmem:[%s7325_s13] sm:$0xff]  }
0x2c26   :  { %4896 = vadd.xlane.f32.xlu1 %v4895_v50  ;;  %5381 = vmatpush3.bf16.msra.mxu1 %v5499_v7 }
0x2c27   :  { %v4898_v45 = vsel %vm130_vm0, %v4894_v26, 0.0  ;;  %5382 = vmatprep.subr.bf16.mxu1 %v5988_v3 }
0x2c28   :  { %4899 = vadd.xlane.f32.xlu0 %v4898_v45 }
0x2c2a   :  { %5383 = vmatpush3.bf16.msra.mxu1 %v5500_v43 }
0x2c2b   :  { %5384 = vmatprep.subr.bf16.mxu1 %v5988_v3 }
0x2c2e   :  { %5385 = vmatpush3.bf16.msra.mxu1 %v5501_v18 }
0x2c2f   :  { %5386 = vmatprep.subr.bf16.mxu1 %v5988_v3  ;;  %v5239_v3 = vld [vmem:[%s7324_s12] ss:$0 sm:$0xff]  ;;  %s5064_s12 = sshll.u32 %s5996_s11, 4  ;;  %s5065_s12 = int_to_ptr.vmem [resolvable:$true] %s5064_s12 }
0x2c30   :  { %s5937_s18 = scalar_lea.vmem %s5065_s12, 256  ;;  %p5942_p1 = scmp.lt.s32.totalorder %s5065_s12, %s5065_s12 }
0x2c31   :  { %p5938_p0 = scmp.ne.s32.totalorder %s5065_s12, %s5937_s18  ;;  %p5943_p2 = scmp.lt.s32.totalorder %s5937_s18, %s5937_s18 }
0x2c32   :  { %5387 = vmatpush3.bf16.msra.mxu1 %v5502_v61 }
0x2c33   :  { %p5944_p3 = por %p5943_p2, %p5942_p1 }
0x2c35   :  { %p5945_p4 = pnand %p5944_p3, %p5938_p0 }
0x2cb3   :  { %v4897_v14 = vpop.xlane.xlu1 %4896 }
0x2cb4   :  { %v4902_v11 = vmul.f32 0.015625, %v4897_v14 }
0x2cb5   :  { %v4900_v36 = vpop.xlane.xlu0 %4899 }
0x2cb6   :  { %v4904_v16 = vsub.f32 %v4893_v8, %v4902_v11  ;;  %v4903_v12 = vmul.f32 0.015625, %v4900_v36 }
0x2cb8   :  { %v4905_v44 = vsub.f32 %v4894_v26, %v4903_v12  ;;  %v4906_v38 = vmul.f32 %v4904_v16, %v4904_v16 }
0x2cba   :  { %v4908_v23 = vsel %vm130_vm0, %v4906_v38, 0.0  ;;  %v4907_v51 = vmul.f32 %v4905_v44, %v4905_v44 }
0x2cbb   :  { %4909 = vadd.xlane.f32.xlu0 %v4908_v23 }
0x2cbc   :  { %v4911_v27 = vsel %vm130_vm0, %v4907_v51, 0.0 }
0x2cbd   :  { %4912 = vadd.xlane.f32.xlu1 %v4911_v27 }
0x2d48   :  { %v4910_v46 = vpop.xlane.xlu0 %4909 }
0x2d49   :  { %v4914_v32 = vmul.f32 0.015625, %v4910_v46 }
0x2d4a   :  { %v4913_v53 = vpop.xlane.xlu1 %4912 }
0x2d4b   :  { %v4916_v10 = vadd.f32 1e-05, %v4914_v32  ;;  %v4915_v57 = vmul.f32 0.015625, %v4913_v53 }
0x2d4d   :  { %5919 = vrsqrt.f32 %v4916_v10  ;;  %v4917_v28 = vadd.f32 1e-05, %v4915_v57 }
0x2d4f   :  { %5921 = vrsqrt.f32 %v4917_v28 }
0x2d57   :  { %v5920_v33 = vpop.eup %5919 }
0x2d58   :  { %v4920_v31 = vmul.f32 %v5920_v33, %v4904_v16 }
0x2d59   :  { %v5922_v17 = vpop.eup %5921 }
0x2d5a   :  { %v4929_v37 = vmul.f32 %v5238_v6, %v4920_v31  ;;  %v4921_v34 = vmul.f32 %v5922_v17, %v4905_v44 }
0x2d5c   :  { %v4938_v47 = vadd.f32 %v5239_v3, %v4929_v37  ;;  %v4930_v5 = vmul.f32 %v5238_v6, %v4921_v34 }
0x2d5e   :  { %v4940_v9 = vsel %vm130_vm0, %v4938_v47, 0.0  ;;  %v4939_v48 = vadd.f32 %v5239_v3, %v4930_v5 }
0x2d5f   :  { %v4941_v2 = vrot.slane %v4940_v9, 4 }
0x2d60   :  { %v4947_v58 = vsel %vm130_vm0, %v4939_v48, 0.0 }
0x2d61   :  { %v4942_v54 = vadd.f32 %v4941_v2, %v4940_v9  ;;  %v4948_v62 = vrot.slane %v4947_v58, 4 }
0x2d63   :  { %v4943_v35 = vrot.slane %v4942_v54, 2  ;;  %v4949_v42 = vadd.f32 %v4948_v62, %v4947_v58 }
0x2d65   :  { %v4950_v39 = vrot.slane %v4949_v42, 2  ;;  %v4944_v49 = vadd.f32 %v4943_v35, %v4942_v54 }
0x2d67   :  { %v4945_v13 = vrot.slane %v4944_v49, 1  ;;  %v4951_v41 = vadd.f32 %v4950_v39, %v4949_v42 }
0x2d69   :  { %v4946_v40 = vadd.f32 %v4945_v13, %v4944_v49  ;;  %v4952_v1 = vrot.slane %v4951_v41, 1 }
0x2d6b   :  { %v4953_v19 = vadd.f32 %v4952_v1, %v4951_v41  ;;  %v4955_v15 = vmul.f32 0.125, %v4946_v40 }
0x2d6d   :  { %v4956_v60 = vmul.f32 0.125, %v4953_v19  ;;  %v4957_v0 = vpack.c.bf16 %v4955_v15, %v4955_v15 }
0x2d6f   :  { %v4958_v20 = vpack.c.bf16 %v4956_v60, %v4956_v60  ;;  %v4976_v56 = vunpack.c.l.b16 %v4957_v0 }
0x2d71   :  { %v4977_v52 = vunpack.c.l.b16 %v4958_v20 }
0x2d73   :  { %v4978_v25 = vsel %vm340_vm1, %v4977_v52, %v4976_v56 }
0x2d74   :  { %v4979_v21 = vpack.c.b16 %v4978_v25, %v4978_v25 }
0x2d76   :  { %5389 = vmatmul.mubr.msk.bf16.vlgmr.msra.gmra.mrb[52].mxu1 %vm130_vm0, %v4979_v21 }
0x2d77   :  { %5948 = shalt.err (!%p5945_p4)
}
0x2d78   :  { %s5949_s6 = scalar_lea.hbm %s7328_s16, 256 }
0x2d79   :  { %p5950_p5 = scmp.ne.s32.totalorder %s7328_s16, %s5949_s6  ;;  %p5953_p6 = scmp.lt.u32.totalorder %s5949_s6, %s7328_s16 }
0x2d7b   :  { %p5955_p7 = pnand %p5953_p6, %p5950_p5 }
0x2d7d   :  { %5958 = shalt.err (!%p5955_p7)
}
0x2d7e   :  { %s5997_s23 = smov 128   ;;  %s5998_s5 = smov 8   ;;  %v5240_v55 = vld [vmem:[%s7326_s14] ss:$0 sm:$0xff]  ;;  %vm5047_vm0 = vcmask 9216  }
0x2d7f   :  { %5070 = dma.vmem_to_hbm [thread:$0]  %s5065_s12, 256, %s7328_s16, [#allocation5], %s5997_s23, %s5997_s23, %s5998_s5  }
0x2d80   :  { %s5999_s10 = smov [#allocation2]  }
0x2d81   :  { %s5055_s1 = sshll.u32 %s5999_s10, 4  ;;  %s5056_s1 = int_to_ptr.vmem [resolvable:$true] %s5055_s1 }
0x2d82   :  { %s5959_s26 = scalar_lea.vmem %s5056_s1, 32  ;;  %p5964_p9 = scmp.lt.s32.totalorder %s5056_s1, %s5056_s1 }
0x2d83   :  { %p5960_p8 = scmp.ne.s32.totalorder %s5056_s1, %s5959_s26  ;;  %p5965_p10 = scmp.lt.s32.totalorder %s5959_s26, %s5959_s26 }
0x2d85   :  { %p5966_p11 = por %p5965_p10, %p5964_p9 }
0x2d87   :  { %p5967_p12 = pnand %p5966_p11, %p5960_p8 }
0x2e49   :  { %v5041_v30 = vpop.f32.mrb[52].mxu1 }
0x2e4a   :  { %v5042_v22 = vadd.f32 %v5240_v55, %v5041_v30  ;;  %v5390_v59 = vpop.f32.mrb[53].mxu1 }
0x2e4b   :  { %v5044_v4 = vpop.f32.mrb[54].mxu1 }
0x2e4c   :  { %v5391_v29 = vpop.f32.mrb[55].mxu1  ;;  %5048 = vst.msk [vmem:[#allocation2] sm:$0x3] %vm5047_vm0, %v5042_v22 }
0x2e4d   :  { %5970 = shalt.err (!%p5967_p12)
}
0x2e4e   :  { %s5971_s14 = scalar_lea.hbm %s7327_s15, 32 }
0x2e4f   :  { %p5972_p13 = scmp.ne.s32.totalorder %s7327_s15, %s5971_s14  ;;  %p5975_p0 = scmp.lt.u32.totalorder %s5971_s14, %s7327_s15 }
0x2e51   :  { %p5977_p1 = pnand %p5975_p0, %p5972_p13 }
0x2e53   :  { %5980 = shalt.err (!%p5977_p1)
}
0x2e54   :  { %5058 = dma.vmem_to_hbm [thread:$0]  %s5056_s1, 32, %s7327_s15, [#allocation3]  }
0x2e55   :  { %5981 = dma.done.wait [#allocation3], 32  }
0x2e56   :  { %5982 = vsyncadd [#allocation3], 4294967264 }
0x2e57   :  { %5983 = dma.done.wait [#allocation5], 256  }
0x2e58   :  { %5984 = vsyncadd [#allocation5], 4294967040 }
0x2e59   :  { %5077 = vsyncpa [#allocation3], 1 }
0x2e5a   :  { %5078 = vsyncpa [#allocation5], 1 }

</bundles_post_ra>
